<compile_context>
chip_gen: v6e
topology: v6e:2x2x1
jax: 0.10.0
libtpu: 0.0.40
codegen_flags: <defaults>
</compile_context>

<pallas_src>
import functools

import jax
import jax.numpy as jnp
from jax.experimental import pallas as pl
from jax.experimental.pallas import tpu as pltpu


# ---------------------------------------------------------------------------
# Fused kernel: per grid step (a lane-tile of Nb batches), compute the whole
# GCN: A-power chain + natural 1x1 conv.
# ---------------------------------------------------------------------------
def _gcn_fused_kernel(x_ref, at_ref, w_ref, b_ref, o_ref, h_ref, *,
                      num_supports, order, c_in, j_per_block):
    # x_ref : (Vp, Jb*C)      activation slab; V on sublanes, lanes = (n, l, c)
    # at_ref: (S, Vp, Vp)     pre-transposed adjacencies (VMEM-resident)
    # w_ref : (K*C, Cout)     natural 1x1-conv weight (NO Kron expansion)
    # b_ref : (1, Cout)       bias (f32)
    # o_ref : (Vp, Jb*Cout)   lane-dense output slab, lanes = (n, l, o)
    # h_ref : (K, Vp, Jb*C)   VMEM scratch holding [x0, h_1, ..., h_{K-1}]
    f32 = jnp.float32
    num_k = num_supports * order + 1

    # ---- graph-conv chain (dominant term: contraction dim = Vp, wide free dim) ----
    x0 = x_ref[...]                                              # (Vp, Jb*C)
    h_ref[0] = x0
    slot = 1
    for s in range(num_supports):                                # static unroll
        h = x0
        for _ in range(order):
            # h <- A_s^T @ h  ==  einsum('ncvl,vw->ncwl') for this slab.
            h = jnp.dot(at_ref[s], h, preferred_element_type=f32).astype(x0.dtype)
            h_ref[slot] = h                                      # stage for the conv
            slot += 1

    # ---- 1x1 conv with the un-expanded weight -------------------------------
    # For each (batch, time) lane-group j, gather the K channel blocks into a
    # (Vp, K*C) operand and do ONE dot with contraction K*C (natural FLOP count).
    w = w_ref[...]                                               # (K*C, Cout)
    b = b_ref[...]                                               # (1, Cout)  f32
    cols = []
    for j in range(j_per_block):                                 # static unroll
        hj = jnp.concatenate(
            [h_ref[k, :, j * c_in:(j + 1) * c_in] for k in range(num_k)],
            axis=-1)                                             # (Vp, K*C)
        cols.append(jnp.dot(hj, w, preferred_element_type=f32) + b)   # (Vp, Cout)

    # Single lane-dense store of the whole output slab.
    o_ref[...] = jnp.concatenate(cols, axis=-1).astype(o_ref.dtype)


# ---------------------------------------------------------------------------
# Wrapper: layout plumbing (done once, in plain JAX) + pallas_call.
# ---------------------------------------------------------------------------
def _pick_batches_per_step(n, lanes_in_per_batch, lanes_out_per_batch):
    """Smallest divisor of n giving 128-aligned input & output lane tiles.

    Smallest -> as many grid steps as possible (keeps v7x's 2 TCs busy) while
    every block stays lane-dense.  Fallback: one step over all batches (block
    equals the full array, which is always a legal BlockSpec).
    """
    for nb in range(1, n + 1):
        if (n % nb == 0
                and (nb * lanes_in_per_batch) % 128 == 0
                and (nb * lanes_out_per_batch) % 128 == 0):
            return nb
    return n


def gcn_forward(x, supports, weight, bias, order=2, compute_dtype=jnp.float32):
    """Fused GCN forward.

    x       : (N, C, V, L)   activations (NCVL, as in the PyTorch module)
    supports: list of S (V, V) adjacency matrices
    weight  : (Cout, K*C)    1x1-conv weight, K = order*S + 1
    bias    : (Cout,)
    compute_dtype: jnp.float32 (default, matches 1e-4 check) or jnp.bfloat16
                   (fast path on v5e/v6e/v7x; f32 accumulation kept).
    """
    N, C, V, L = x.shape
    S = len(supports)
    K = order * S + 1
    Cout = weight.shape[0]
    assert weight.shape[1] == K * C, (weight.shape, K, C)

    # --- pad V to a sublane-friendly multiple of 8 (exact: padding is zeros) ---
    Vp = ((V + 7) // 8) * 8

    # --- batches per grid step (lane-stacked) ---
    Nb = _pick_batches_per_step(N, L * C, L * Cout)
    T = N // Nb                        # grid steps
    Jb = Nb * L                        # (batch, time) groups per step

    # --- x: (N,C,V,L) -> (V, N, L, C) -> (Vp, N*L*C): V on sublanes (graph-conv
    #     contraction axis), lanes ordered (n, l, c) -> lane-dense matmuls. ---
    # NOTE: in a production integration this relayout (and the inverse one at the
    # end) would be avoided by keeping the V-major layout end-to-end.
    xt = jnp.transpose(x, (2, 0, 3, 1)).reshape(V, N * L * C)
    if Vp != V:
        xt = jnp.pad(xt, ((0, Vp - V), (0, 0)))

    # --- adjacencies: stack + transpose once (no in-kernel .T / XLU work). ---
    At = jnp.stack([a.T for a in supports], axis=0)              # (S, V, V)
    if Vp != V:
        At = jnp.pad(At, ((0, 0), (0, Vp - V), (0, Vp - V)))

    # --- natural 1x1-conv weight: (Cout, K*C) -> (K*C, Cout).  No expansion. ---
    Wt = weight.T
    b_row = bias.astype(jnp.float32).reshape(1, Cout)

    # Optional bf16 fast path (f32 accumulation kept inside the kernel).
    xt = xt.astype(compute_dtype)
    At = At.astype(compute_dtype)
    Wt = Wt.astype(compute_dtype)

    kernel = functools.partial(
        _gcn_fused_kernel,
        num_supports=S, order=order, c_in=C, j_per_block=Jb)

    out2d = pl.pallas_call(
        kernel,
        out_shape=jax.ShapeDtypeStruct((Vp, N * L * Cout), x.dtype),
        grid=(T,),
        in_specs=[
            pl.BlockSpec((Vp, Jb * C), lambda t: (0, t)),         # x lane-tile
            pl.BlockSpec((S, Vp, Vp), lambda t: (0, 0, 0)),       # A^T (resident)
            pl.BlockSpec((K * C, Cout), lambda t: (0, 0)),        # W (resident)
            pl.BlockSpec((1, Cout), lambda t: (0, 0)),            # bias (resident)
        ],
        out_specs=pl.BlockSpec((Vp, Jb * Cout), lambda t: (0, t)),
        scratch_shapes=[pltpu.VMEM((K, Vp, Jb * C), compute_dtype)],
        compiler_params=pltpu.CompilerParams(
            dimension_semantics=("parallel",)),
    )(xt, At, Wt, b_row)

    # (Vp, N*L*Cout) -> drop V padding -> (N, Cout, V, L)
    # (padded V rows carry only the bias value; they are sliced off here.)
    out = out2d[:V, :].reshape(V, N, L, Cout)
    # TODO(synk): F.dropout is stochastic in training mode; inference semantics
    # (identity) are implemented here.
    return jnp.transpose(out, (1, 3, 0, 2))


# ---------------------------------------------------------------------------
# Pure-JAX reference for correctness checking
# ---------------------------------------------------------------------------
def gcn_ref(x, supports, weight, bias, order=2):
    out = [x]
    for a in supports:
        x1 = jnp.einsum("ncvl,vw->ncwl", x, a)
        out.append(x1)
        for _ in range(2, order + 1):
            x2 = jnp.einsum("ncvl,vw->ncwl", x1, a)
            out.append(x2)
            x1 = x2
    h = jnp.concatenate(out, axis=1)
    return jnp.einsum("oi,nivl->novl", weight, h) + bias[None, :, None, None]


# ---------------------------------------------------------------------------
# Harness
# ---------------------------------------------------------------------------
def _run_case(N, C_IN, V, L, support_len, order, C_OUT, seed,
              compute_dtype=jnp.float32, tol=1e-4):
    c_in_total = (order * support_len + 1) * C_IN
    key = jax.random.PRNGKey(seed)
    kx, ka, kw, kb = jax.random.split(key, 4)

    x = jax.random.normal(kx, (N, C_IN, V, L), dtype=jnp.float32)
    supports = [
        jax.random.uniform(k, (V, V), dtype=jnp.float32) / V
        for k in jax.random.split(ka, support_len)
    ]
    # Conv2d(c_in_total, c_out, kernel_size=(1,1), bias=True) parameters:
    conv_w = 0.1 * jax.random.normal(kw, (C_OUT, c_in_total, 1, 1), dtype=jnp.float32)
    conv_b = 0.1 * jax.random.normal(kb, (C_OUT,), dtype=jnp.float32)
    w2d = conv_w[:, :, 0, 0]                                     # (C_OUT, c_in_total)

    fwd = jax.jit(functools.partial(gcn_forward, order=order,
                                    compute_dtype=compute_dtype))
    y = jax.block_until_ready(fwd(x, supports, w2d, conv_b))

    y_ref = gcn_ref(x, supports, w2d, conv_b, order=order)
    assert y.shape == (N, C_OUT, V, L), y.shape
    max_err = float(jnp.max(jnp.abs(y - y_ref)))
    assert jnp.allclose(y, y_ref, atol=tol, rtol=tol), max_err
    return max_err


if __name__ == "__main__":
    # Primary small case consistent with the module's forward
    # (batch=2, channels=4, nodes=8, seq=16, support_len=3, order=2, c_out=8).
    _run_case(N=2, C_IN=4, V=8, L=16, support_len=3, order=2, C_OUT=8, seed=0)
    # Second case exercising the V-padding path (V=10 -> padded to 16).
    _run_case(N=2, C_IN=4, V=10, L=16, support_len=3, order=2, C_OUT=8, seed=1)
    # bf16 fast path (x / A^T / W in bf16, f32 accumulation) with relaxed tolerance.
    _run_case(N=2, C_IN=4, V=8, L=16, support_len=3, order=2, C_OUT=8, seed=2,
              compute_dtype=jnp.bfloat16, tol=5e-2)
    print("KERNEL_OK")
</pallas_src>

<mosaic_0001>
module attributes {stable_mosaic.version = 11 : i64} {
  func.func @_gcn_fused_kernel(%arg0: i32, %arg1: memref<8x128xf32, #tpu.memory_space<vmem>>, %arg2: memref<3x8x8xf32, #tpu.memory_space<vmem>>, %arg3: memref<28x8xf32, #tpu.memory_space<vmem>>, %arg4: memref<1x8xf32, #tpu.memory_space<vmem>>, %arg5: memref<8x256xf32, #tpu.memory_space<vmem>>, %arg6: memref<7x8x128xf32, #tpu.memory_space<vmem>>) attributes {dimension_semantics = [#tpu.dimension_semantics<parallel>], iteration_bounds = array<i64: 1>, scalar_prefetch = 0 : i64, scratch_operands = 1 : i64, tpu.core_type = #tpu.core_type<tc>, window_params = [{transform_indices = @transform_0, window_bounds = array<i64: 8, 128>}, {pipeline_mode = #tpu.pipeline_mode<synchronous>, transform_indices = @transform_1, window_bounds = array<i64: 3, 8, 8>}, {pipeline_mode = #tpu.pipeline_mode<synchronous>, transform_indices = @transform_2, window_bounds = array<i64: 28, 8>}, {pipeline_mode = #tpu.pipeline_mode<synchronous>, transform_indices = @transform_3, window_bounds = array<i64: 1, 8>}, {transform_indices = @transform_4, window_bounds = array<i64: 8, 256>}]} {
    %c0 = arith.constant 0 : index
    %c0_0 = arith.constant 0 : index
    %0 = vector.load %arg1[%c0, %c0_0] : memref<8x128xf32, #tpu.memory_space<vmem>>, vector<8x128xf32>
    %c0_1 = arith.constant 0 : index
    %c0_2 = arith.constant 0 : index
    %c0_3 = arith.constant 0 : index
    %1 = vector.load %arg6[%c0_1, %c0_2, %c0_3] : memref<7x8x128xf32, #tpu.memory_space<vmem>>, vector<1x8x128xf32>
    %2 = vector.shape_cast %1 : vector<1x8x128xf32> to vector<8x128xf32>
    %3 = vector.shape_cast %0 : vector<8x128xf32> to vector<1x8x128xf32>
    tpu.vector_store %arg6[%c0_1, %c0_2, %c0_3], %3 {strides = array<i32>} : memref<7x8x128xf32, #tpu.memory_space<vmem>>, vector<1x8x128xf32>,
    %c0_4 = arith.constant 0 : index
    %c0_5 = arith.constant 0 : index
    %c0_6 = arith.constant 0 : index
    %4 = vector.load %arg2[%c0_4, %c0_5, %c0_6] : memref<3x8x8xf32, #tpu.memory_space<vmem>>, vector<1x8x8xf32>
    %5 = vector.shape_cast %4 : vector<1x8x8xf32> to vector<8x8xf32>
    %cst = arith.constant dense<0.000000e+00> : vector<8x128xf32>
    %6 = tpu.matmul %5, %0, %cst {dimension_numbers = #tpu.dot_dimension_numbers<[1], [0], [0], [1], [0, 0, 1, 1], [], []>} : vector<8x8xf32>, vector<8x128xf32>, vector<8x128xf32> -> vector<8x128xf32>
    %c1 = arith.constant 1 : index
    %c0_7 = arith.constant 0 : index
    %c0_8 = arith.constant 0 : index
    %7 = vector.load %arg6[%c1, %c0_7, %c0_8] : memref<7x8x128xf32, #tpu.memory_space<vmem>>, vector<1x8x128xf32>
    %8 = vector.shape_cast %7 : vector<1x8x128xf32> to vector<8x128xf32>
    %9 = vector.shape_cast %6 : vector<8x128xf32> to vector<1x8x128xf32>
    tpu.vector_store %arg6[%c1, %c0_7, %c0_8], %9 {strides = array<i32>} : memref<7x8x128xf32, #tpu.memory_space<vmem>>, vector<1x8x128xf32>,
    %c0_9 = arith.constant 0 : index
    %c0_10 = arith.constant 0 : index
    %c0_11 = arith.constant 0 : index
    %10 = vector.load %arg2[%c0_9, %c0_10, %c0_11] : memref<3x8x8xf32, #tpu.memory_space<vmem>>, vector<1x8x8xf32>
    %11 = vector.shape_cast %10 : vector<1x8x8xf32> to vector<8x8xf32>
    %cst_12 = arith.constant dense<0.000000e+00> : vector<8x128xf32>
    %12 = tpu.matmul %11, %6, %cst_12 {dimension_numbers = #tpu.dot_dimension_numbers<[1], [0], [0], [1], [0, 0, 1, 1], [], []>} : vector<8x8xf32>, vector<8x128xf32>, vector<8x128xf32> -> vector<8x128xf32>
    %c2 = arith.constant 2 : index
    %c0_13 = arith.constant 0 : index
    %c0_14 = arith.constant 0 : index
    %13 = vector.load %arg6[%c2, %c0_13, %c0_14] : memref<7x8x128xf32, #tpu.memory_space<vmem>>, vector<1x8x128xf32>
    %14 = vector.shape_cast %13 : vector<1x8x128xf32> to vector<8x128xf32>
    %15 = vector.shape_cast %12 : vector<8x128xf32> to vector<1x8x128xf32>
    tpu.vector_store %arg6[%c2, %c0_13, %c0_14], %15 {strides = array<i32>} : memref<7x8x128xf32, #tpu.memory_space<vmem>>, vector<1x8x128xf32>,
    %c1_15 = arith.constant 1 : index
    %c0_16 = arith.constant 0 : index
    %c0_17 = arith.constant 0 : index
    %16 = vector.load %arg2[%c1_15, %c0_16, %c0_17] : memref<3x8x8xf32, #tpu.memory_space<vmem>>, vector<1x8x8xf32>
    %17 = vector.shape_cast %16 : vector<1x8x8xf32> to vector<8x8xf32>
    %cst_18 = arith.constant dense<0.000000e+00> : vector<8x128xf32>
    %18 = tpu.matmul %17, %0, %cst_18 {dimension_numbers = #tpu.dot_dimension_numbers<[1], [0], [0], [1], [0, 0, 1, 1], [], []>} : vector<8x8xf32>, vector<8x128xf32>, vector<8x128xf32> -> vector<8x128xf32>
    %c3 = arith.constant 3 : index
    %c0_19 = arith.constant 0 : index
    %c0_20 = arith.constant 0 : index
    %19 = vector.load %arg6[%c3, %c0_19, %c0_20] : memref<7x8x128xf32, #tpu.memory_space<vmem>>, vector<1x8x128xf32>
    %20 = vector.shape_cast %19 : vector<1x8x128xf32> to vector<8x128xf32>
    %21 = vector.shape_cast %18 : vector<8x128xf32> to vector<1x8x128xf32>
    tpu.vector_store %arg6[%c3, %c0_19, %c0_20], %21 {strides = array<i32>} : memref<7x8x128xf32, #tpu.memory_space<vmem>>, vector<1x8x128xf32>,
    %c1_21 = arith.constant 1 : index
    %c0_22 = arith.constant 0 : index
    %c0_23 = arith.constant 0 : index
    %22 = vector.load %arg2[%c1_21, %c0_22, %c0_23] : memref<3x8x8xf32, #tpu.memory_space<vmem>>, vector<1x8x8xf32>
    %23 = vector.shape_cast %22 : vector<1x8x8xf32> to vector<8x8xf32>
    %cst_24 = arith.constant dense<0.000000e+00> : vector<8x128xf32>
    %24 = tpu.matmul %23, %18, %cst_24 {dimension_numbers = #tpu.dot_dimension_numbers<[1], [0], [0], [1], [0, 0, 1, 1], [], []>} : vector<8x8xf32>, vector<8x128xf32>, vector<8x128xf32> -> vector<8x128xf32>
    %c4 = arith.constant 4 : index
    %c0_25 = arith.constant 0 : index
    %c0_26 = arith.constant 0 : index
    %25 = vector.load %arg6[%c4, %c0_25, %c0_26] : memref<7x8x128xf32, #tpu.memory_space<vmem>>, vector<1x8x128xf32>
    %26 = vector.shape_cast %25 : vector<1x8x128xf32> to vector<8x128xf32>
    %27 = vector.shape_cast %24 : vector<8x128xf32> to vector<1x8x128xf32>
    tpu.vector_store %arg6[%c4, %c0_25, %c0_26], %27 {strides = array<i32>} : memref<7x8x128xf32, #tpu.memory_space<vmem>>, vector<1x8x128xf32>,
    %c2_27 = arith.constant 2 : index
    %c0_28 = arith.constant 0 : index
    %c0_29 = arith.constant 0 : index
    %28 = vector.load %arg2[%c2_27, %c0_28, %c0_29] : memref<3x8x8xf32, #tpu.memory_space<vmem>>, vector<1x8x8xf32>
    %29 = vector.shape_cast %28 : vector<1x8x8xf32> to vector<8x8xf32>
    %cst_30 = arith.constant dense<0.000000e+00> : vector<8x128xf32>
    %30 = tpu.matmul %29, %0, %cst_30 {dimension_numbers = #tpu.dot_dimension_numbers<[1], [0], [0], [1], [0, 0, 1, 1], [], []>} : vector<8x8xf32>, vector<8x128xf32>, vector<8x128xf32> -> vector<8x128xf32>
    %c5 = arith.constant 5 : index
    %c0_31 = arith.constant 0 : index
    %c0_32 = arith.constant 0 : index
    %31 = vector.load %arg6[%c5, %c0_31, %c0_32] : memref<7x8x128xf32, #tpu.memory_space<vmem>>, vector<1x8x128xf32>
    %32 = vector.shape_cast %31 : vector<1x8x128xf32> to vector<8x128xf32>
    %33 = vector.shape_cast %30 : vector<8x128xf32> to vector<1x8x128xf32>
    tpu.vector_store %arg6[%c5, %c0_31, %c0_32], %33 {strides = array<i32>} : memref<7x8x128xf32, #tpu.memory_space<vmem>>, vector<1x8x128xf32>,
    %c2_33 = arith.constant 2 : index
    %c0_34 = arith.constant 0 : index
    %c0_35 = arith.constant 0 : index
    %34 = vector.load %arg2[%c2_33, %c0_34, %c0_35] : memref<3x8x8xf32, #tpu.memory_space<vmem>>, vector<1x8x8xf32>
    %35 = vector.shape_cast %34 : vector<1x8x8xf32> to vector<8x8xf32>
    %cst_36 = arith.constant dense<0.000000e+00> : vector<8x128xf32>
    %36 = tpu.matmul %35, %30, %cst_36 {dimension_numbers = #tpu.dot_dimension_numbers<[1], [0], [0], [1], [0, 0, 1, 1], [], []>} : vector<8x8xf32>, vector<8x128xf32>, vector<8x128xf32> -> vector<8x128xf32>
    %c6 = arith.constant 6 : index
    %c0_37 = arith.constant 0 : index
    %c0_38 = arith.constant 0 : index
    %37 = vector.load %arg6[%c6, %c0_37, %c0_38] : memref<7x8x128xf32, #tpu.memory_space<vmem>>, vector<1x8x128xf32>
    %38 = vector.shape_cast %37 : vector<1x8x128xf32> to vector<8x128xf32>
    %39 = vector.shape_cast %36 : vector<8x128xf32> to vector<1x8x128xf32>
    tpu.vector_store %arg6[%c6, %c0_37, %c0_38], %39 {strides = array<i32>} : memref<7x8x128xf32, #tpu.memory_space<vmem>>, vector<1x8x128xf32>,
    %c0_39 = arith.constant 0 : index
    %c0_40 = arith.constant 0 : index
    %40 = vector.load %arg3[%c0_39, %c0_40] : memref<28x8xf32, #tpu.memory_space<vmem>>, vector<28x8xf32>
    %c0_41 = arith.constant 0 : index
    %c0_42 = arith.constant 0 : index
    %41 = vector.load %arg4[%c0_41, %c0_42] : memref<1x8xf32, #tpu.memory_space<vmem>>, vector<1x8xf32>
    %c0_43 = arith.constant 0 : index
    %c0_44 = arith.constant 0 : index
    %c0_45 = arith.constant 0 : index
    %42 = vector.load %arg6[%c0_43, %c0_44, %c0_45] : memref<7x8x128xf32, #tpu.memory_space<vmem>>, vector<1x8x4xf32>
    %43 = vector.shape_cast %42 : vector<1x8x4xf32> to vector<8x4xf32>
    %c1_46 = arith.constant 1 : index
    %c0_47 = arith.constant 0 : index
    %c0_48 = arith.constant 0 : index
    %44 = vector.load %arg6[%c1_46, %c0_47, %c0_48] : memref<7x8x128xf32, #tpu.memory_space<vmem>>, vector<1x8x4xf32>
    %45 = vector.shape_cast %44 : vector<1x8x4xf32> to vector<8x4xf32>
    %c2_49 = arith.constant 2 : index
    %c0_50 = arith.constant 0 : index
    %c0_51 = arith.constant 0 : index
    %46 = vector.load %arg6[%c2_49, %c0_50, %c0_51] : memref<7x8x128xf32, #tpu.memory_space<vmem>>, vector<1x8x4xf32>
    %47 = vector.shape_cast %46 : vector<1x8x4xf32> to vector<8x4xf32>
    %c3_52 = arith.constant 3 : index
    %c0_53 = arith.constant 0 : index
    %c0_54 = arith.constant 0 : index
    %48 = vector.load %arg6[%c3_52, %c0_53, %c0_54] : memref<7x8x128xf32, #tpu.memory_space<vmem>>, vector<1x8x4xf32>
    %49 = vector.shape_cast %48 : vector<1x8x4xf32> to vector<8x4xf32>
    %c4_55 = arith.constant 4 : index
    %c0_56 = arith.constant 0 : index
    %c0_57 = arith.constant 0 : index
    %50 = vector.load %arg6[%c4_55, %c0_56, %c0_57] : memref<7x8x128xf32, #tpu.memory_space<vmem>>, vector<1x8x4xf32>
    %51 = vector.shape_cast %50 : vector<1x8x4xf32> to vector<8x4xf32>
    %c5_58 = arith.constant 5 : index
    %c0_59 = arith.constant 0 : index
    %c0_60 = arith.constant 0 : index
    %52 = vector.load %arg6[%c5_58, %c0_59, %c0_60] : memref<7x8x128xf32, #tpu.memory_space<vmem>>, vector<1x8x4xf32>
    %53 = vector.shape_cast %52 : vector<1x8x4xf32> to vector<8x4xf32>
    %c6_61 = arith.constant 6 : index
    %c0_62 = arith.constant 0 : index
    %c0_63 = arith.constant 0 : index
    %54 = vector.load %arg6[%c6_61, %c0_62, %c0_63] : memref<7x8x128xf32, #tpu.memory_space<vmem>>, vector<1x8x4xf32>
    %55 = vector.shape_cast %54 : vector<1x8x4xf32> to vector<8x4xf32>
    %56 = tpu.concatenate %43, %45, %47, %49, %51, %53, %55 in 1 : vector<8x4xf32>, vector<8x4xf32>, vector<8x4xf32>, vector<8x4xf32>, vector<8x4xf32>, vector<8x4xf32>, vector<8x4xf32> -> vector<8x28xf32>
    %cst_64 = arith.constant dense<0.000000e+00> : vector<8x8xf32>
    %57 = tpu.matmul %56, %40, %cst_64 {dimension_numbers = #tpu.dot_dimension_numbers<[1], [0], [0], [1], [0, 0, 1, 1], [], []>} : vector<8x28xf32>, vector<28x8xf32>, vector<8x8xf32> -> vector<8x8xf32>
    %58 = vector.broadcast %41 : vector<1x8xf32> to vector<8x8xf32>
    %59 = arith.addf %57, %58 : vector<8x8xf32>
    %c0_65 = arith.constant 0 : index
    %c0_66 = arith.constant 0 : index
    %c4_67 = arith.constant 4 : index
    %60 = vector.load %arg6[%c0_65, %c0_66, %c4_67] : memref<7x8x128xf32, #tpu.memory_space<vmem>>, vector<1x8x4xf32>
    %61 = vector.shape_cast %60 : vector<1x8x4xf32> to vector<8x4xf32>
    %c1_68 = arith.constant 1 : index
    %c0_69 = arith.constant 0 : index
    %c4_70 = arith.constant 4 : index
    %62 = vector.load %arg6[%c1_68, %c0_69, %c4_70] : memref<7x8x128xf32, #tpu.memory_space<vmem>>, vector<1x8x4xf32>
    %63 = vector.shape_cast %62 : vector<1x8x4xf32> to vector<8x4xf32>
    %c2_71 = arith.constant 2 : index
    %c0_72 = arith.constant 0 : index
    %c4_73 = arith.constant 4 : index
    %64 = vector.load %arg6[%c2_71, %c0_72, %c4_73] : memref<7x8x128xf32, #tpu.memory_space<vmem>>, vector<1x8x4xf32>
    %65 = vector.shape_cast %64 : vector<1x8x4xf32> to vector<8x4xf32>
    %c3_74 = arith.constant 3 : index
    %c0_75 = arith.constant 0 : index
    %c4_76 = arith.constant 4 : index
    %66 = vector.load %arg6[%c3_74, %c0_75, %c4_76] : memref<7x8x128xf32, #tpu.memory_space<vmem>>, vector<1x8x4xf32>
    %67 = vector.shape_cast %66 : vector<1x8x4xf32> to vector<8x4xf32>
    %c4_77 = arith.constant 4 : index
    %c0_78 = arith.constant 0 : index
    %c4_79 = arith.constant 4 : index
    %68 = vector.load %arg6[%c4_77, %c0_78, %c4_79] : memref<7x8x128xf32, #tpu.memory_space<vmem>>, vector<1x8x4xf32>
    %69 = vector.shape_cast %68 : vector<1x8x4xf32> to vector<8x4xf32>
    %c5_80 = arith.constant 5 : index
    %c0_81 = arith.constant 0 : index
    %c4_82 = arith.constant 4 : index
    %70 = vector.load %arg6[%c5_80, %c0_81, %c4_82] : memref<7x8x128xf32, #tpu.memory_space<vmem>>, vector<1x8x4xf32>
    %71 = vector.shape_cast %70 : vector<1x8x4xf32> to vector<8x4xf32>
    %c6_83 = arith.constant 6 : index
    %c0_84 = arith.constant 0 : index
    %c4_85 = arith.constant 4 : index
    %72 = vector.load %arg6[%c6_83, %c0_84, %c4_85] : memref<7x8x128xf32, #tpu.memory_space<vmem>>, vector<1x8x4xf32>
    %73 = vector.shape_cast %72 : vector<1x8x4xf32> to vector<8x4xf32>
    %74 = tpu.concatenate %61, %63, %65, %67, %69, %71, %73 in 1 : vector<8x4xf32>, vector<8x4xf32>, vector<8x4xf32>, vector<8x4xf32>, vector<8x4xf32>, vector<8x4xf32>, vector<8x4xf32> -> vector<8x28xf32>
    %cst_86 = arith.constant dense<0.000000e+00> : vector<8x8xf32>
    %75 = tpu.matmul %74, %40, %cst_86 {dimension_numbers = #tpu.dot_dimension_numbers<[1], [0], [0], [1], [0, 0, 1, 1], [], []>} : vector<8x28xf32>, vector<28x8xf32>, vector<8x8xf32> -> vector<8x8xf32>
    %76 = vector.broadcast %41 : vector<1x8xf32> to vector<8x8xf32>
    %77 = arith.addf %75, %76 : vector<8x8xf32>
    %c0_87 = arith.constant 0 : index
    %c0_88 = arith.constant 0 : index
    %c8 = arith.constant 8 : index
    %78 = vector.load %arg6[%c0_87, %c0_88, %c8] : memref<7x8x128xf32, #tpu.memory_space<vmem>>, vector<1x8x4xf32>
    %79 = vector.shape_cast %78 : vector<1x8x4xf32> to vector<8x4xf32>
    %c1_89 = arith.constant 1 : index
    %c0_90 = arith.constant 0 : index
    %c8_91 = arith.constant 8 : index
    %80 = vector.load %arg6[%c1_89, %c0_90, %c8_91] : memref<7x8x128xf32, #tpu.memory_space<vmem>>, vector<1x8x4xf32>
    %81 = vector.shape_cast %80 : vector<1x8x4xf32> to vector<8x4xf32>
    %c2_92 = arith.constant 2 : index
    %c0_93 = arith.constant 0 : index
    %c8_94 = arith.constant 8 : index
    %82 = vector.load %arg6[%c2_92, %c0_93, %c8_94] : memref<7x8x128xf32, #tpu.memory_space<vmem>>, vector<1x8x4xf32>
    %83 = vector.shape_cast %82 : vector<1x8x4xf32> to vector<8x4xf32>
    %c3_95 = arith.constant 3 : index
    %c0_96 = arith.constant 0 : index
    %c8_97 = arith.constant 8 : index
    %84 = vector.load %arg6[%c3_95, %c0_96, %c8_97] : memref<7x8x128xf32, #tpu.memory_space<vmem>>, vector<1x8x4xf32>
    %85 = vector.shape_cast %84 : vector<1x8x4xf32> to vector<8x4xf32>
    %c4_98 = arith.constant 4 : index
    %c0_99 = arith.constant 0 : index
    %c8_100 = arith.constant 8 : index
    %86 = vector.load %arg6[%c4_98, %c0_99, %c8_100] : memref<7x8x128xf32, #tpu.memory_space<vmem>>, vector<1x8x4xf32>
    %87 = vector.shape_cast %86 : vector<1x8x4xf32> to vector<8x4xf32>
    %c5_101 = arith.constant 5 : index
    %c0_102 = arith.constant 0 : index
    %c8_103 = arith.constant 8 : index
    %88 = vector.load %arg6[%c5_101, %c0_102, %c8_103] : memref<7x8x128xf32, #tpu.memory_space<vmem>>, vector<1x8x4xf32>
    %89 = vector.shape_cast %88 : vector<1x8x4xf32> to vector<8x4xf32>
    %c6_104 = arith.constant 6 : index
    %c0_105 = arith.constant 0 : index
    %c8_106 = arith.constant 8 : index
    %90 = vector.load %arg6[%c6_104, %c0_105, %c8_106] : memref<7x8x128xf32, #tpu.memory_space<vmem>>, vector<1x8x4xf32>
    %91 = vector.shape_cast %90 : vector<1x8x4xf32> to vector<8x4xf32>
    %92 = tpu.concatenate %79, %81, %83, %85, %87, %89, %91 in 1 : vector<8x4xf32>, vector<8x4xf32>, vector<8x4xf32>, vector<8x4xf32>, vector<8x4xf32>, vector<8x4xf32>, vector<8x4xf32> -> vector<8x28xf32>
    %cst_107 = arith.constant dense<0.000000e+00> : vector<8x8xf32>
    %93 = tpu.matmul %92, %40, %cst_107 {dimension_numbers = #tpu.dot_dimension_numbers<[1], [0], [0], [1], [0, 0, 1, 1], [], []>} : vector<8x28xf32>, vector<28x8xf32>, vector<8x8xf32> -> vector<8x8xf32>
    %94 = vector.broadcast %41 : vector<1x8xf32> to vector<8x8xf32>
    %95 = arith.addf %93, %94 : vector<8x8xf32>
    %c0_108 = arith.constant 0 : index
    %c0_109 = arith.constant 0 : index
    %c12 = arith.constant 12 : index
    %96 = vector.load %arg6[%c0_108, %c0_109, %c12] : memref<7x8x128xf32, #tpu.memory_space<vmem>>, vector<1x8x4xf32>
    %97 = vector.shape_cast %96 : vector<1x8x4xf32> to vector<8x4xf32>
    %c1_110 = arith.constant 1 : index
    %c0_111 = arith.constant 0 : index
    %c12_112 = arith.constant 12 : index
    %98 = vector.load %arg6[%c1_110, %c0_111, %c12_112] : memref<7x8x128xf32, #tpu.memory_space<vmem>>, vector<1x8x4xf32>
    %99 = vector.shape_cast %98 : vector<1x8x4xf32> to vector<8x4xf32>
    %c2_113 = arith.constant 2 : index
    %c0_114 = arith.constant 0 : index
    %c12_115 = arith.constant 12 : index
    %100 = vector.load %arg6[%c2_113, %c0_114, %c12_115] : memref<7x8x128xf32, #tpu.memory_space<vmem>>, vector<1x8x4xf32>
    %101 = vector.shape_cast %100 : vector<1x8x4xf32> to vector<8x4xf32>
    %c3_116 = arith.constant 3 : index
    %c0_117 = arith.constant 0 : index
    %c12_118 = arith.constant 12 : index
    %102 = vector.load %arg6[%c3_116, %c0_117, %c12_118] : memref<7x8x128xf32, #tpu.memory_space<vmem>>, vector<1x8x4xf32>
    %103 = vector.shape_cast %102 : vector<1x8x4xf32> to vector<8x4xf32>
    %c4_119 = arith.constant 4 : index
    %c0_120 = arith.constant 0 : index
    %c12_121 = arith.constant 12 : index
    %104 = vector.load %arg6[%c4_119, %c0_120, %c12_121] : memref<7x8x128xf32, #tpu.memory_space<vmem>>, vector<1x8x4xf32>
    %105 = vector.shape_cast %104 : vector<1x8x4xf32> to vector<8x4xf32>
    %c5_122 = arith.constant 5 : index
    %c0_123 = arith.constant 0 : index
    %c12_124 = arith.constant 12 : index
    %106 = vector.load %arg6[%c5_122, %c0_123, %c12_124] : memref<7x8x128xf32, #tpu.memory_space<vmem>>, vector<1x8x4xf32>
    %107 = vector.shape_cast %106 : vector<1x8x4xf32> to vector<8x4xf32>
    %c6_125 = arith.constant 6 : index
    %c0_126 = arith.constant 0 : index
    %c12_127 = arith.constant 12 : index
    %108 = vector.load %arg6[%c6_125, %c0_126, %c12_127] : memref<7x8x128xf32, #tpu.memory_space<vmem>>, vector<1x8x4xf32>
    %109 = vector.shape_cast %108 : vector<1x8x4xf32> to vector<8x4xf32>
    %110 = tpu.concatenate %97, %99, %101, %103, %105, %107, %109 in 1 : vector<8x4xf32>, vector<8x4xf32>, vector<8x4xf32>, vector<8x4xf32>, vector<8x4xf32>, vector<8x4xf32>, vector<8x4xf32> -> vector<8x28xf32>
    %cst_128 = arith.constant dense<0.000000e+00> : vector<8x8xf32>
    %111 = tpu.matmul %110, %40, %cst_128 {dimension_numbers = #tpu.dot_dimension_numbers<[1], [0], [0], [1], [0, 0, 1, 1], [], []>} : vector<8x28xf32>, vector<28x8xf32>, vector<8x8xf32> -> vector<8x8xf32>
    %112 = vector.broadcast %41 : vector<1x8xf32> to vector<8x8xf32>
    %113 = arith.addf %111, %112 : vector<8x8xf32>
    %c0_129 = arith.constant 0 : index
    %c0_130 = arith.constant 0 : index
    %c16 = arith.constant 16 : index
    %114 = vector.load %arg6[%c0_129, %c0_130, %c16] : memref<7x8x128xf32, #tpu.memory_space<vmem>>, vector<1x8x4xf32>
    %115 = vector.shape_cast %114 : vector<1x8x4xf32> to vector<8x4xf32>
    %c1_131 = arith.constant 1 : index
    %c0_132 = arith.constant 0 : index
    %c16_133 = arith.constant 16 : index
    %116 = vector.load %arg6[%c1_131, %c0_132, %c16_133] : memref<7x8x128xf32, #tpu.memory_space<vmem>>, vector<1x8x4xf32>
    %117 = vector.shape_cast %116 : vector<1x8x4xf32> to vector<8x4xf32>
    %c2_134 = arith.constant 2 : index
    %c0_135 = arith.constant 0 : index
    %c16_136 = arith.constant 16 : index
    %118 = vector.load %arg6[%c2_134, %c0_135, %c16_136] : memref<7x8x128xf32, #tpu.memory_space<vmem>>, vector<1x8x4xf32>
    %119 = vector.shape_cast %118 : vector<1x8x4xf32> to vector<8x4xf32>
    %c3_137 = arith.constant 3 : index
    %c0_138 = arith.constant 0 : index
    %c16_139 = arith.constant 16 : index
    %120 = vector.load %arg6[%c3_137, %c0_138, %c16_139] : memref<7x8x128xf32, #tpu.memory_space<vmem>>, vector<1x8x4xf32>
    %121 = vector.shape_cast %120 : vector<1x8x4xf32> to vector<8x4xf32>
    %c4_140 = arith.constant 4 : index
    %c0_141 = arith.constant 0 : index
    %c16_142 = arith.constant 16 : index
    %122 = vector.load %arg6[%c4_140, %c0_141, %c16_142] : memref<7x8x128xf32, #tpu.memory_space<vmem>>, vector<1x8x4xf32>
    %123 = vector.shape_cast %122 : vector<1x8x4xf32> to vector<8x4xf32>
    %c5_143 = arith.constant 5 : index
    %c0_144 = arith.constant 0 : index
    %c16_145 = arith.constant 16 : index
    %124 = vector.load %arg6[%c5_143, %c0_144, %c16_145] : memref<7x8x128xf32, #tpu.memory_space<vmem>>, vector<1x8x4xf32>
    %125 = vector.shape_cast %124 : vector<1x8x4xf32> to vector<8x4xf32>
    %c6_146 = arith.constant 6 : index
    %c0_147 = arith.constant 0 : index
    %c16_148 = arith.constant 16 : index
    %126 = vector.load %arg6[%c6_146, %c0_147, %c16_148] : memref<7x8x128xf32, #tpu.memory_space<vmem>>, vector<1x8x4xf32>
    %127 = vector.shape_cast %126 : vector<1x8x4xf32> to vector<8x4xf32>
    %128 = tpu.concatenate %115, %117, %119, %121, %123, %125, %127 in 1 : vector<8x4xf32>, vector<8x4xf32>, vector<8x4xf32>, vector<8x4xf32>, vector<8x4xf32>, vector<8x4xf32>, vector<8x4xf32> -> vector<8x28xf32>
    %cst_149 = arith.constant dense<0.000000e+00> : vector<8x8xf32>
    %129 = tpu.matmul %128, %40, %cst_149 {dimension_numbers = #tpu.dot_dimension_numbers<[1], [0], [0], [1], [0, 0, 1, 1], [], []>} : vector<8x28xf32>, vector<28x8xf32>, vector<8x8xf32> -> vector<8x8xf32>
    %130 = vector.broadcast %41 : vector<1x8xf32> to vector<8x8xf32>
    %131 = arith.addf %129, %130 : vector<8x8xf32>
    %c0_150 = arith.constant 0 : index
    %c0_151 = arith.constant 0 : index
    %c20 = arith.constant 20 : index
    %132 = vector.load %arg6[%c0_150, %c0_151, %c20] : memref<7x8x128xf32, #tpu.memory_space<vmem>>, vector<1x8x4xf32>
    %133 = vector.shape_cast %132 : vector<1x8x4xf32> to vector<8x4xf32>
    %c1_152 = arith.constant 1 : index
    %c0_153 = arith.constant 0 : index
    %c20_154 = arith.constant 20 : index
    %134 = vector.load %arg6[%c1_152, %c0_153, %c20_154] : memref<7x8x128xf32, #tpu.memory_space<vmem>>, vector<1x8x4xf32>
    %135 = vector.shape_cast %134 : vector<1x8x4xf32> to vector<8x4xf32>
    %c2_155 = arith.constant 2 : index
    %c0_156 = arith.constant 0 : index
    %c20_157 = arith.constant 20 : index
    %136 = vector.load %arg6[%c2_155, %c0_156, %c20_157] : memref<7x8x128xf32, #tpu.memory_space<vmem>>, vector<1x8x4xf32>
    %137 = vector.shape_cast %136 : vector<1x8x4xf32> to vector<8x4xf32>
    %c3_158 = arith.constant 3 : index
    %c0_159 = arith.constant 0 : index
    %c20_160 = arith.constant 20 : index
    %138 = vector.load %arg6[%c3_158, %c0_159, %c20_160] : memref<7x8x128xf32, #tpu.memory_space<vmem>>, vector<1x8x4xf32>
    %139 = vector.shape_cast %138 : vector<1x8x4xf32> to vector<8x4xf32>
    %c4_161 = arith.constant 4 : index
    %c0_162 = arith.constant 0 : index
    %c20_163 = arith.constant 20 : index
    %140 = vector.load %arg6[%c4_161, %c0_162, %c20_163] : memref<7x8x128xf32, #tpu.memory_space<vmem>>, vector<1x8x4xf32>
    %141 = vector.shape_cast %140 : vector<1x8x4xf32> to vector<8x4xf32>
    %c5_164 = arith.constant 5 : index
    %c0_165 = arith.constant 0 : index
    %c20_166 = arith.constant 20 : index
    %142 = vector.load %arg6[%c5_164, %c0_165, %c20_166] : memref<7x8x128xf32, #tpu.memory_space<vmem>>, vector<1x8x4xf32>
    %143 = vector.shape_cast %142 : vector<1x8x4xf32> to vector<8x4xf32>
    %c6_167 = arith.constant 6 : index
    %c0_168 = arith.constant 0 : index
    %c20_169 = arith.constant 20 : index
    %144 = vector.load %arg6[%c6_167, %c0_168, %c20_169] : memref<7x8x128xf32, #tpu.memory_space<vmem>>, vector<1x8x4xf32>
    %145 = vector.shape_cast %144 : vector<1x8x4xf32> to vector<8x4xf32>
    %146 = tpu.concatenate %133, %135, %137, %139, %141, %143, %145 in 1 : vector<8x4xf32>, vector<8x4xf32>, vector<8x4xf32>, vector<8x4xf32>, vector<8x4xf32>, vector<8x4xf32>, vector<8x4xf32> -> vector<8x28xf32>
    %cst_170 = arith.constant dense<0.000000e+00> : vector<8x8xf32>
    %147 = tpu.matmul %146, %40, %cst_170 {dimension_numbers = #tpu.dot_dimension_numbers<[1], [0], [0], [1], [0, 0, 1, 1], [], []>} : vector<8x28xf32>, vector<28x8xf32>, vector<8x8xf32> -> vector<8x8xf32>
    %148 = vector.broadcast %41 : vector<1x8xf32> to vector<8x8xf32>
    %149 = arith.addf %147, %148 : vector<8x8xf32>
    %c0_171 = arith.constant 0 : index
    %c0_172 = arith.constant 0 : index
    %c24 = arith.constant 24 : index
    %150 = vector.load %arg6[%c0_171, %c0_172, %c24] : memref<7x8x128xf32, #tpu.memory_space<vmem>>, vector<1x8x4xf32>
    %151 = vector.shape_cast %150 : vector<1x8x4xf32> to vector<8x4xf32>
    %c1_173 = arith.constant 1 : index
    %c0_174 = arith.constant 0 : index
    %c24_175 = arith.constant 24 : index
    %152 = vector.load %arg6[%c1_173, %c0_174, %c24_175] : memref<7x8x128xf32, #tpu.memory_space<vmem>>, vector<1x8x4xf32>
    %153 = vector.shape_cast %152 : vector<1x8x4xf32> to vector<8x4xf32>
    %c2_176 = arith.constant 2 : index
    %c0_177 = arith.constant 0 : index
    %c24_178 = arith.constant 24 : index
    %154 = vector.load %arg6[%c2_176, %c0_177, %c24_178] : memref<7x8x128xf32, #tpu.memory_space<vmem>>, vector<1x8x4xf32>
    %155 = vector.shape_cast %154 : vector<1x8x4xf32> to vector<8x4xf32>
    %c3_179 = arith.constant 3 : index
    %c0_180 = arith.constant 0 : index
    %c24_181 = arith.constant 24 : index
    %156 = vector.load %arg6[%c3_179, %c0_180, %c24_181] : memref<7x8x128xf32, #tpu.memory_space<vmem>>, vector<1x8x4xf32>
    %157 = vector.shape_cast %156 : vector<1x8x4xf32> to vector<8x4xf32>
    %c4_182 = arith.constant 4 : index
    %c0_183 = arith.constant 0 : index
    %c24_184 = arith.constant 24 : index
    %158 = vector.load %arg6[%c4_182, %c0_183, %c24_184] : memref<7x8x128xf32, #tpu.memory_space<vmem>>, vector<1x8x4xf32>
    %159 = vector.shape_cast %158 : vector<1x8x4xf32> to vector<8x4xf32>
    %c5_185 = arith.constant 5 : index
    %c0_186 = arith.constant 0 : index
    %c24_187 = arith.constant 24 : index
    %160 = vector.load %arg6[%c5_185, %c0_186, %c24_187] : memref<7x8x128xf32, #tpu.memory_space<vmem>>, vector<1x8x4xf32>
    %161 = vector.shape_cast %160 : vector<1x8x4xf32> to vector<8x4xf32>
    %c6_188 = arith.constant 6 : index
    %c0_189 = arith.constant 0 : index
    %c24_190 = arith.constant 24 : index
    %162 = vector.load %arg6[%c6_188, %c0_189, %c24_190] : memref<7x8x128xf32, #tpu.memory_space<vmem>>, vector<1x8x4xf32>
    %163 = vector.shape_cast %162 : vector<1x8x4xf32> to vector<8x4xf32>
    %164 = tpu.concatenate %151, %153, %155, %157, %159, %161, %163 in 1 : vector<8x4xf32>, vector<8x4xf32>, vector<8x4xf32>, vector<8x4xf32>, vector<8x4xf32>, vector<8x4xf32>, vector<8x4xf32> -> vector<8x28xf32>
    %cst_191 = arith.constant dense<0.000000e+00> : vector<8x8xf32>
    %165 = tpu.matmul %164, %40, %cst_191 {dimension_numbers = #tpu.dot_dimension_numbers<[1], [0], [0], [1], [0, 0, 1, 1], [], []>} : vector<8x28xf32>, vector<28x8xf32>, vector<8x8xf32> -> vector<8x8xf32>
    %166 = vector.broadcast %41 : vector<1x8xf32> to vector<8x8xf32>
    %167 = arith.addf %165, %166 : vector<8x8xf32>
    %c0_192 = arith.constant 0 : index
    %c0_193 = arith.constant 0 : index
    %c28 = arith.constant 28 : index
    %168 = vector.load %arg6[%c0_192, %c0_193, %c28] : memref<7x8x128xf32, #tpu.memory_space<vmem>>, vector<1x8x4xf32>
    %169 = vector.shape_cast %168 : vector<1x8x4xf32> to vector<8x4xf32>
    %c1_194 = arith.constant 1 : index
    %c0_195 = arith.constant 0 : index
    %c28_196 = arith.constant 28 : index
    %170 = vector.load %arg6[%c1_194, %c0_195, %c28_196] : memref<7x8x128xf32, #tpu.memory_space<vmem>>, vector<1x8x4xf32>
    %171 = vector.shape_cast %170 : vector<1x8x4xf32> to vector<8x4xf32>
    %c2_197 = arith.constant 2 : index
    %c0_198 = arith.constant 0 : index
    %c28_199 = arith.constant 28 : index
    %172 = vector.load %arg6[%c2_197, %c0_198, %c28_199] : memref<7x8x128xf32, #tpu.memory_space<vmem>>, vector<1x8x4xf32>
    %173 = vector.shape_cast %172 : vector<1x8x4xf32> to vector<8x4xf32>
    %c3_200 = arith.constant 3 : index
    %c0_201 = arith.constant 0 : index
    %c28_202 = arith.constant 28 : index
    %174 = vector.load %arg6[%c3_200, %c0_201, %c28_202] : memref<7x8x128xf32, #tpu.memory_space<vmem>>, vector<1x8x4xf32>
    %175 = vector.shape_cast %174 : vector<1x8x4xf32> to vector<8x4xf32>
    %c4_203 = arith.constant 4 : index
    %c0_204 = arith.constant 0 : index
    %c28_205 = arith.constant 28 : index
    %176 = vector.load %arg6[%c4_203, %c0_204, %c28_205] : memref<7x8x128xf32, #tpu.memory_space<vmem>>, vector<1x8x4xf32>
    %177 = vector.shape_cast %176 : vector<1x8x4xf32> to vector<8x4xf32>
    %c5_206 = arith.constant 5 : index
    %c0_207 = arith.constant 0 : index
    %c28_208 = arith.constant 28 : index
    %178 = vector.load %arg6[%c5_206, %c0_207, %c28_208] : memref<7x8x128xf32, #tpu.memory_space<vmem>>, vector<1x8x4xf32>
    %179 = vector.shape_cast %178 : vector<1x8x4xf32> to vector<8x4xf32>
    %c6_209 = arith.constant 6 : index
    %c0_210 = arith.constant 0 : index
    %c28_211 = arith.constant 28 : index
    %180 = vector.load %arg6[%c6_209, %c0_210, %c28_211] : memref<7x8x128xf32, #tpu.memory_space<vmem>>, vector<1x8x4xf32>
    %181 = vector.shape_cast %180 : vector<1x8x4xf32> to vector<8x4xf32>
    %182 = tpu.concatenate %169, %171, %173, %175, %177, %179, %181 in 1 : vector<8x4xf32>, vector<8x4xf32>, vector<8x4xf32>, vector<8x4xf32>, vector<8x4xf32>, vector<8x4xf32>, vector<8x4xf32> -> vector<8x28xf32>
    %cst_212 = arith.constant dense<0.000000e+00> : vector<8x8xf32>
    %183 = tpu.matmul %182, %40, %cst_212 {dimension_numbers = #tpu.dot_dimension_numbers<[1], [0], [0], [1], [0, 0, 1, 1], [], []>} : vector<8x28xf32>, vector<28x8xf32>, vector<8x8xf32> -> vector<8x8xf32>
    %184 = vector.broadcast %41 : vector<1x8xf32> to vector<8x8xf32>
    %185 = arith.addf %183, %184 : vector<8x8xf32>
    %c0_213 = arith.constant 0 : index
    %c0_214 = arith.constant 0 : index
    %c32 = arith.constant 32 : index
    %186 = vector.load %arg6[%c0_213, %c0_214, %c32] : memref<7x8x128xf32, #tpu.memory_space<vmem>>, vector<1x8x4xf32>
    %187 = vector.shape_cast %186 : vector<1x8x4xf32> to vector<8x4xf32>
    %c1_215 = arith.constant 1 : index
    %c0_216 = arith.constant 0 : index
    %c32_217 = arith.constant 32 : index
    %188 = vector.load %arg6[%c1_215, %c0_216, %c32_217] : memref<7x8x128xf32, #tpu.memory_space<vmem>>, vector<1x8x4xf32>
    %189 = vector.shape_cast %188 : vector<1x8x4xf32> to vector<8x4xf32>
    %c2_218 = arith.constant 2 : index
    %c0_219 = arith.constant 0 : index
    %c32_220 = arith.constant 32 : index
    %190 = vector.load %arg6[%c2_218, %c0_219, %c32_220] : memref<7x8x128xf32, #tpu.memory_space<vmem>>, vector<1x8x4xf32>
    %191 = vector.shape_cast %190 : vector<1x8x4xf32> to vector<8x4xf32>
    %c3_221 = arith.constant 3 : index
    %c0_222 = arith.constant 0 : index
    %c32_223 = arith.constant 32 : index
    %192 = vector.load %arg6[%c3_221, %c0_222, %c32_223] : memref<7x8x128xf32, #tpu.memory_space<vmem>>, vector<1x8x4xf32>
    %193 = vector.shape_cast %192 : vector<1x8x4xf32> to vector<8x4xf32>
    %c4_224 = arith.constant 4 : index
    %c0_225 = arith.constant 0 : index
    %c32_226 = arith.constant 32 : index
    %194 = vector.load %arg6[%c4_224, %c0_225, %c32_226] : memref<7x8x128xf32, #tpu.memory_space<vmem>>, vector<1x8x4xf32>
    %195 = vector.shape_cast %194 : vector<1x8x4xf32> to vector<8x4xf32>
    %c5_227 = arith.constant 5 : index
    %c0_228 = arith.constant 0 : index
    %c32_229 = arith.constant 32 : index
    %196 = vector.load %arg6[%c5_227, %c0_228, %c32_229] : memref<7x8x128xf32, #tpu.memory_space<vmem>>, vector<1x8x4xf32>
    %197 = vector.shape_cast %196 : vector<1x8x4xf32> to vector<8x4xf32>
    %c6_230 = arith.constant 6 : index
    %c0_231 = arith.constant 0 : index
    %c32_232 = arith.constant 32 : index
    %198 = vector.load %arg6[%c6_230, %c0_231, %c32_232] : memref<7x8x128xf32, #tpu.memory_space<vmem>>, vector<1x8x4xf32>
    %199 = vector.shape_cast %198 : vector<1x8x4xf32> to vector<8x4xf32>
    %200 = tpu.concatenate %187, %189, %191, %193, %195, %197, %199 in 1 : vector<8x4xf32>, vector<8x4xf32>, vector<8x4xf32>, vector<8x4xf32>, vector<8x4xf32>, vector<8x4xf32>, vector<8x4xf32> -> vector<8x28xf32>
    %cst_233 = arith.constant dense<0.000000e+00> : vector<8x8xf32>
    %201 = tpu.matmul %200, %40, %cst_233 {dimension_numbers = #tpu.dot_dimension_numbers<[1], [0], [0], [1], [0, 0, 1, 1], [], []>} : vector<8x28xf32>, vector<28x8xf32>, vector<8x8xf32> -> vector<8x8xf32>
    %202 = vector.broadcast %41 : vector<1x8xf32> to vector<8x8xf32>
    %203 = arith.addf %201, %202 : vector<8x8xf32>
    %c0_234 = arith.constant 0 : index
    %c0_235 = arith.constant 0 : index
    %c36 = arith.constant 36 : index
    %204 = vector.load %arg6[%c0_234, %c0_235, %c36] : memref<7x8x128xf32, #tpu.memory_space<vmem>>, vector<1x8x4xf32>
    %205 = vector.shape_cast %204 : vector<1x8x4xf32> to vector<8x4xf32>
    %c1_236 = arith.constant 1 : index
    %c0_237 = arith.constant 0 : index
    %c36_238 = arith.constant 36 : index
    %206 = vector.load %arg6[%c1_236, %c0_237, %c36_238] : memref<7x8x128xf32, #tpu.memory_space<vmem>>, vector<1x8x4xf32>
    %207 = vector.shape_cast %206 : vector<1x8x4xf32> to vector<8x4xf32>
    %c2_239 = arith.constant 2 : index
    %c0_240 = arith.constant 0 : index
    %c36_241 = arith.constant 36 : index
    %208 = vector.load %arg6[%c2_239, %c0_240, %c36_241] : memref<7x8x128xf32, #tpu.memory_space<vmem>>, vector<1x8x4xf32>
    %209 = vector.shape_cast %208 : vector<1x8x4xf32> to vector<8x4xf32>
    %c3_242 = arith.constant 3 : index
    %c0_243 = arith.constant 0 : index
    %c36_244 = arith.constant 36 : index
    %210 = vector.load %arg6[%c3_242, %c0_243, %c36_244] : memref<7x8x128xf32, #tpu.memory_space<vmem>>, vector<1x8x4xf32>
    %211 = vector.shape_cast %210 : vector<1x8x4xf32> to vector<8x4xf32>
    %c4_245 = arith.constant 4 : index
    %c0_246 = arith.constant 0 : index
    %c36_247 = arith.constant 36 : index
    %212 = vector.load %arg6[%c4_245, %c0_246, %c36_247] : memref<7x8x128xf32, #tpu.memory_space<vmem>>, vector<1x8x4xf32>
    %213 = vector.shape_cast %212 : vector<1x8x4xf32> to vector<8x4xf32>
    %c5_248 = arith.constant 5 : index
    %c0_249 = arith.constant 0 : index
    %c36_250 = arith.constant 36 : index
    %214 = vector.load %arg6[%c5_248, %c0_249, %c36_250] : memref<7x8x128xf32, #tpu.memory_space<vmem>>, vector<1x8x4xf32>
    %215 = vector.shape_cast %214 : vector<1x8x4xf32> to vector<8x4xf32>
    %c6_251 = arith.constant 6 : index
    %c0_252 = arith.constant 0 : index
    %c36_253 = arith.constant 36 : index
    %216 = vector.load %arg6[%c6_251, %c0_252, %c36_253] : memref<7x8x128xf32, #tpu.memory_space<vmem>>, vector<1x8x4xf32>
    %217 = vector.shape_cast %216 : vector<1x8x4xf32> to vector<8x4xf32>
    %218 = tpu.concatenate %205, %207, %209, %211, %213, %215, %217 in 1 : vector<8x4xf32>, vector<8x4xf32>, vector<8x4xf32>, vector<8x4xf32>, vector<8x4xf32>, vector<8x4xf32>, vector<8x4xf32> -> vector<8x28xf32>
    %cst_254 = arith.constant dense<0.000000e+00> : vector<8x8xf32>
    %219 = tpu.matmul %218, %40, %cst_254 {dimension_numbers = #tpu.dot_dimension_numbers<[1], [0], [0], [1], [0, 0, 1, 1], [], []>} : vector<8x28xf32>, vector<28x8xf32>, vector<8x8xf32> -> vector<8x8xf32>
    %220 = vector.broadcast %41 : vector<1x8xf32> to vector<8x8xf32>
    %221 = arith.addf %219, %220 : vector<8x8xf32>
    %c0_255 = arith.constant 0 : index
    %c0_256 = arith.constant 0 : index
    %c40 = arith.constant 40 : index
    %222 = vector.load %arg6[%c0_255, %c0_256, %c40] : memref<7x8x128xf32, #tpu.memory_space<vmem>>, vector<1x8x4xf32>
    %223 = vector.shape_cast %222 : vector<1x8x4xf32> to vector<8x4xf32>
    %c1_257 = arith.constant 1 : index
    %c0_258 = arith.constant 0 : index
    %c40_259 = arith.constant 40 : index
    %224 = vector.load %arg6[%c1_257, %c0_258, %c40_259] : memref<7x8x128xf32, #tpu.memory_space<vmem>>, vector<1x8x4xf32>
    %225 = vector.shape_cast %224 : vector<1x8x4xf32> to vector<8x4xf32>
    %c2_260 = arith.constant 2 : index
    %c0_261 = arith.constant 0 : index
    %c40_262 = arith.constant 40 : index
    %226 = vector.load %arg6[%c2_260, %c0_261, %c40_262] : memref<7x8x128xf32, #tpu.memory_space<vmem>>, vector<1x8x4xf32>
    %227 = vector.shape_cast %226 : vector<1x8x4xf32> to vector<8x4xf32>
    %c3_263 = arith.constant 3 : index
    %c0_264 = arith.constant 0 : index
    %c40_265 = arith.constant 40 : index
    %228 = vector.load %arg6[%c3_263, %c0_264, %c40_265] : memref<7x8x128xf32, #tpu.memory_space<vmem>>, vector<1x8x4xf32>
    %229 = vector.shape_cast %228 : vector<1x8x4xf32> to vector<8x4xf32>
    %c4_266 = arith.constant 4 : index
    %c0_267 = arith.constant 0 : index
    %c40_268 = arith.constant 40 : index
    %230 = vector.load %arg6[%c4_266, %c0_267, %c40_268] : memref<7x8x128xf32, #tpu.memory_space<vmem>>, vector<1x8x4xf32>
    %231 = vector.shape_cast %230 : vector<1x8x4xf32> to vector<8x4xf32>
    %c5_269 = arith.constant 5 : index
    %c0_270 = arith.constant 0 : index
    %c40_271 = arith.constant 40 : index
    %232 = vector.load %arg6[%c5_269, %c0_270, %c40_271] : memref<7x8x128xf32, #tpu.memory_space<vmem>>, vector<1x8x4xf32>
    %233 = vector.shape_cast %232 : vector<1x8x4xf32> to vector<8x4xf32>
    %c6_272 = arith.constant 6 : index
    %c0_273 = arith.constant 0 : index
    %c40_274 = arith.constant 40 : index
    %234 = vector.load %arg6[%c6_272, %c0_273, %c40_274] : memref<7x8x128xf32, #tpu.memory_space<vmem>>, vector<1x8x4xf32>
    %235 = vector.shape_cast %234 : vector<1x8x4xf32> to vector<8x4xf32>
    %236 = tpu.concatenate %223, %225, %227, %229, %231, %233, %235 in 1 : vector<8x4xf32>, vector<8x4xf32>, vector<8x4xf32>, vector<8x4xf32>, vector<8x4xf32>, vector<8x4xf32>, vector<8x4xf32> -> vector<8x28xf32>
    %cst_275 = arith.constant dense<0.000000e+00> : vector<8x8xf32>
    %237 = tpu.matmul %236, %40, %cst_275 {dimension_numbers = #tpu.dot_dimension_numbers<[1], [0], [0], [1], [0, 0, 1, 1], [], []>} : vector<8x28xf32>, vector<28x8xf32>, vector<8x8xf32> -> vector<8x8xf32>
    %238 = vector.broadcast %41 : vector<1x8xf32> to vector<8x8xf32>
    %239 = arith.addf %237, %238 : vector<8x8xf32>
    %c0_276 = arith.constant 0 : index
    %c0_277 = arith.constant 0 : index
    %c44 = arith.constant 44 : index
    %240 = vector.load %arg6[%c0_276, %c0_277, %c44] : memref<7x8x128xf32, #tpu.memory_space<vmem>>, vector<1x8x4xf32>
    %241 = vector.shape_cast %240 : vector<1x8x4xf32> to vector<8x4xf32>
    %c1_278 = arith.constant 1 : index
    %c0_279 = arith.constant 0 : index
    %c44_280 = arith.constant 44 : index
    %242 = vector.load %arg6[%c1_278, %c0_279, %c44_280] : memref<7x8x128xf32, #tpu.memory_space<vmem>>, vector<1x8x4xf32>
    %243 = vector.shape_cast %242 : vector<1x8x4xf32> to vector<8x4xf32>
    %c2_281 = arith.constant 2 : index
    %c0_282 = arith.constant 0 : index
    %c44_283 = arith.constant 44 : index
    %244 = vector.load %arg6[%c2_281, %c0_282, %c44_283] : memref<7x8x128xf32, #tpu.memory_space<vmem>>, vector<1x8x4xf32>
    %245 = vector.shape_cast %244 : vector<1x8x4xf32> to vector<8x4xf32>
    %c3_284 = arith.constant 3 : index
    %c0_285 = arith.constant 0 : index
    %c44_286 = arith.constant 44 : index
    %246 = vector.load %arg6[%c3_284, %c0_285, %c44_286] : memref<7x8x128xf32, #tpu.memory_space<vmem>>, vector<1x8x4xf32>
    %247 = vector.shape_cast %246 : vector<1x8x4xf32> to vector<8x4xf32>
    %c4_287 = arith.constant 4 : index
    %c0_288 = arith.constant 0 : index
    %c44_289 = arith.constant 44 : index
    %248 = vector.load %arg6[%c4_287, %c0_288, %c44_289] : memref<7x8x128xf32, #tpu.memory_space<vmem>>, vector<1x8x4xf32>
    %249 = vector.shape_cast %248 : vector<1x8x4xf32> to vector<8x4xf32>
    %c5_290 = arith.constant 5 : index
    %c0_291 = arith.constant 0 : index
    %c44_292 = arith.constant 44 : index
    %250 = vector.load %arg6[%c5_290, %c0_291, %c44_292] : memref<7x8x128xf32, #tpu.memory_space<vmem>>, vector<1x8x4xf32>
    %251 = vector.shape_cast %250 : vector<1x8x4xf32> to vector<8x4xf32>
    %c6_293 = arith.constant 6 : index
    %c0_294 = arith.constant 0 : index
    %c44_295 = arith.constant 44 : index
    %252 = vector.load %arg6[%c6_293, %c0_294, %c44_295] : memref<7x8x128xf32, #tpu.memory_space<vmem>>, vector<1x8x4xf32>
    %253 = vector.shape_cast %252 : vector<1x8x4xf32> to vector<8x4xf32>
    %254 = tpu.concatenate %241, %243, %245, %247, %249, %251, %253 in 1 : vector<8x4xf32>, vector<8x4xf32>, vector<8x4xf32>, vector<8x4xf32>, vector<8x4xf32>, vector<8x4xf32>, vector<8x4xf32> -> vector<8x28xf32>
    %cst_296 = arith.constant dense<0.000000e+00> : vector<8x8xf32>
    %255 = tpu.matmul %254, %40, %cst_296 {dimension_numbers = #tpu.dot_dimension_numbers<[1], [0], [0], [1], [0, 0, 1, 1], [], []>} : vector<8x28xf32>, vector<28x8xf32>, vector<8x8xf32> -> vector<8x8xf32>
    %256 = vector.broadcast %41 : vector<1x8xf32> to vector<8x8xf32>
    %257 = arith.addf %255, %256 : vector<8x8xf32>
    %c0_297 = arith.constant 0 : index
    %c0_298 = arith.constant 0 : index
    %c48 = arith.constant 48 : index
    %258 = vector.load %arg6[%c0_297, %c0_298, %c48] : memref<7x8x128xf32, #tpu.memory_space<vmem>>, vector<1x8x4xf32>
    %259 = vector.shape_cast %258 : vector<1x8x4xf32> to vector<8x4xf32>
    %c1_299 = arith.constant 1 : index
    %c0_300 = arith.constant 0 : index
    %c48_301 = arith.constant 48 : index
    %260 = vector.load %arg6[%c1_299, %c0_300, %c48_301] : memref<7x8x128xf32, #tpu.memory_space<vmem>>, vector<1x8x4xf32>
    %261 = vector.shape_cast %260 : vector<1x8x4xf32> to vector<8x4xf32>
    %c2_302 = arith.constant 2 : index
    %c0_303 = arith.constant 0 : index
    %c48_304 = arith.constant 48 : index
    %262 = vector.load %arg6[%c2_302, %c0_303, %c48_304] : memref<7x8x128xf32, #tpu.memory_space<vmem>>, vector<1x8x4xf32>
    %263 = vector.shape_cast %262 : vector<1x8x4xf32> to vector<8x4xf32>
    %c3_305 = arith.constant 3 : index
    %c0_306 = arith.constant 0 : index
    %c48_307 = arith.constant 48 : index
    %264 = vector.load %arg6[%c3_305, %c0_306, %c48_307] : memref<7x8x128xf32, #tpu.memory_space<vmem>>, vector<1x8x4xf32>
    %265 = vector.shape_cast %264 : vector<1x8x4xf32> to vector<8x4xf32>
    %c4_308 = arith.constant 4 : index
    %c0_309 = arith.constant 0 : index
    %c48_310 = arith.constant 48 : index
    %266 = vector.load %arg6[%c4_308, %c0_309, %c48_310] : memref<7x8x128xf32, #tpu.memory_space<vmem>>, vector<1x8x4xf32>
    %267 = vector.shape_cast %266 : vector<1x8x4xf32> to vector<8x4xf32>
    %c5_311 = arith.constant 5 : index
    %c0_312 = arith.constant 0 : index
    %c48_313 = arith.constant 48 : index
    %268 = vector.load %arg6[%c5_311, %c0_312, %c48_313] : memref<7x8x128xf32, #tpu.memory_space<vmem>>, vector<1x8x4xf32>
    %269 = vector.shape_cast %268 : vector<1x8x4xf32> to vector<8x4xf32>
    %c6_314 = arith.constant 6 : index
    %c0_315 = arith.constant 0 : index
    %c48_316 = arith.constant 48 : index
    %270 = vector.load %arg6[%c6_314, %c0_315, %c48_316] : memref<7x8x128xf32, #tpu.memory_space<vmem>>, vector<1x8x4xf32>
    %271 = vector.shape_cast %270 : vector<1x8x4xf32> to vector<8x4xf32>
    %272 = tpu.concatenate %259, %261, %263, %265, %267, %269, %271 in 1 : vector<8x4xf32>, vector<8x4xf32>, vector<8x4xf32>, vector<8x4xf32>, vector<8x4xf32>, vector<8x4xf32>, vector<8x4xf32> -> vector<8x28xf32>
    %cst_317 = arith.constant dense<0.000000e+00> : vector<8x8xf32>
    %273 = tpu.matmul %272, %40, %cst_317 {dimension_numbers = #tpu.dot_dimension_numbers<[1], [0], [0], [1], [0, 0, 1, 1], [], []>} : vector<8x28xf32>, vector<28x8xf32>, vector<8x8xf32> -> vector<8x8xf32>
    %274 = vector.broadcast %41 : vector<1x8xf32> to vector<8x8xf32>
    %275 = arith.addf %273, %274 : vector<8x8xf32>
    %c0_318 = arith.constant 0 : index
    %c0_319 = arith.constant 0 : index
    %c52 = arith.constant 52 : index
    %276 = vector.load %arg6[%c0_318, %c0_319, %c52] : memref<7x8x128xf32, #tpu.memory_space<vmem>>, vector<1x8x4xf32>
    %277 = vector.shape_cast %276 : vector<1x8x4xf32> to vector<8x4xf32>
    %c1_320 = arith.constant 1 : index
    %c0_321 = arith.constant 0 : index
    %c52_322 = arith.constant 52 : index
    %278 = vector.load %arg6[%c1_320, %c0_321, %c52_322] : memref<7x8x128xf32, #tpu.memory_space<vmem>>, vector<1x8x4xf32>
    %279 = vector.shape_cast %278 : vector<1x8x4xf32> to vector<8x4xf32>
    %c2_323 = arith.constant 2 : index
    %c0_324 = arith.constant 0 : index
    %c52_325 = arith.constant 52 : index
    %280 = vector.load %arg6[%c2_323, %c0_324, %c52_325] : memref<7x8x128xf32, #tpu.memory_space<vmem>>, vector<1x8x4xf32>
    %281 = vector.shape_cast %280 : vector<1x8x4xf32> to vector<8x4xf32>
    %c3_326 = arith.constant 3 : index
    %c0_327 = arith.constant 0 : index
    %c52_328 = arith.constant 52 : index
    %282 = vector.load %arg6[%c3_326, %c0_327, %c52_328] : memref<7x8x128xf32, #tpu.memory_space<vmem>>, vector<1x8x4xf32>
    %283 = vector.shape_cast %282 : vector<1x8x4xf32> to vector<8x4xf32>
    %c4_329 = arith.constant 4 : index
    %c0_330 = arith.constant 0 : index
    %c52_331 = arith.constant 52 : index
    %284 = vector.load %arg6[%c4_329, %c0_330, %c52_331] : memref<7x8x128xf32, #tpu.memory_space<vmem>>, vector<1x8x4xf32>
    %285 = vector.shape_cast %284 : vector<1x8x4xf32> to vector<8x4xf32>
    %c5_332 = arith.constant 5 : index
    %c0_333 = arith.constant 0 : index
    %c52_334 = arith.constant 52 : index
    %286 = vector.load %arg6[%c5_332, %c0_333, %c52_334] : memref<7x8x128xf32, #tpu.memory_space<vmem>>, vector<1x8x4xf32>
    %287 = vector.shape_cast %286 : vector<1x8x4xf32> to vector<8x4xf32>
    %c6_335 = arith.constant 6 : index
    %c0_336 = arith.constant 0 : index
    %c52_337 = arith.constant 52 : index
    %288 = vector.load %arg6[%c6_335, %c0_336, %c52_337] : memref<7x8x128xf32, #tpu.memory_space<vmem>>, vector<1x8x4xf32>
    %289 = vector.shape_cast %288 : vector<1x8x4xf32> to vector<8x4xf32>
    %290 = tpu.concatenate %277, %279, %281, %283, %285, %287, %289 in 1 : vector<8x4xf32>, vector<8x4xf32>, vector<8x4xf32>, vector<8x4xf32>, vector<8x4xf32>, vector<8x4xf32>, vector<8x4xf32> -> vector<8x28xf32>
    %cst_338 = arith.constant dense<0.000000e+00> : vector<8x8xf32>
    %291 = tpu.matmul %290, %40, %cst_338 {dimension_numbers = #tpu.dot_dimension_numbers<[1], [0], [0], [1], [0, 0, 1, 1], [], []>} : vector<8x28xf32>, vector<28x8xf32>, vector<8x8xf32> -> vector<8x8xf32>
    %292 = vector.broadcast %41 : vector<1x8xf32> to vector<8x8xf32>
    %293 = arith.addf %291, %292 : vector<8x8xf32>
    %c0_339 = arith.constant 0 : index
    %c0_340 = arith.constant 0 : index
    %c56 = arith.constant 56 : index
    %294 = vector.load %arg6[%c0_339, %c0_340, %c56] : memref<7x8x128xf32, #tpu.memory_space<vmem>>, vector<1x8x4xf32>
    %295 = vector.shape_cast %294 : vector<1x8x4xf32> to vector<8x4xf32>
    %c1_341 = arith.constant 1 : index
    %c0_342 = arith.constant 0 : index
    %c56_343 = arith.constant 56 : index
    %296 = vector.load %arg6[%c1_341, %c0_342, %c56_343] : memref<7x8x128xf32, #tpu.memory_space<vmem>>, vector<1x8x4xf32>
    %297 = vector.shape_cast %296 : vector<1x8x4xf32> to vector<8x4xf32>
    %c2_344 = arith.constant 2 : index
    %c0_345 = arith.constant 0 : index
    %c56_346 = arith.constant 56 : index
    %298 = vector.load %arg6[%c2_344, %c0_345, %c56_346] : memref<7x8x128xf32, #tpu.memory_space<vmem>>, vector<1x8x4xf32>
    %299 = vector.shape_cast %298 : vector<1x8x4xf32> to vector<8x4xf32>
    %c3_347 = arith.constant 3 : index
    %c0_348 = arith.constant 0 : index
    %c56_349 = arith.constant 56 : index
    %300 = vector.load %arg6[%c3_347, %c0_348, %c56_349] : memref<7x8x128xf32, #tpu.memory_space<vmem>>, vector<1x8x4xf32>
    %301 = vector.shape_cast %300 : vector<1x8x4xf32> to vector<8x4xf32>
    %c4_350 = arith.constant 4 : index
    %c0_351 = arith.constant 0 : index
    %c56_352 = arith.constant 56 : index
    %302 = vector.load %arg6[%c4_350, %c0_351, %c56_352] : memref<7x8x128xf32, #tpu.memory_space<vmem>>, vector<1x8x4xf32>
    %303 = vector.shape_cast %302 : vector<1x8x4xf32> to vector<8x4xf32>
    %c5_353 = arith.constant 5 : index
    %c0_354 = arith.constant 0 : index
    %c56_355 = arith.constant 56 : index
    %304 = vector.load %arg6[%c5_353, %c0_354, %c56_355] : memref<7x8x128xf32, #tpu.memory_space<vmem>>, vector<1x8x4xf32>
    %305 = vector.shape_cast %304 : vector<1x8x4xf32> to vector<8x4xf32>
    %c6_356 = arith.constant 6 : index
    %c0_357 = arith.constant 0 : index
    %c56_358 = arith.constant 56 : index
    %306 = vector.load %arg6[%c6_356, %c0_357, %c56_358] : memref<7x8x128xf32, #tpu.memory_space<vmem>>, vector<1x8x4xf32>
    %307 = vector.shape_cast %306 : vector<1x8x4xf32> to vector<8x4xf32>
    %308 = tpu.concatenate %295, %297, %299, %301, %303, %305, %307 in 1 : vector<8x4xf32>, vector<8x4xf32>, vector<8x4xf32>, vector<8x4xf32>, vector<8x4xf32>, vector<8x4xf32>, vector<8x4xf32> -> vector<8x28xf32>
    %cst_359 = arith.constant dense<0.000000e+00> : vector<8x8xf32>
    %309 = tpu.matmul %308, %40, %cst_359 {dimension_numbers = #tpu.dot_dimension_numbers<[1], [0], [0], [1], [0, 0, 1, 1], [], []>} : vector<8x28xf32>, vector<28x8xf32>, vector<8x8xf32> -> vector<8x8xf32>
    %310 = vector.broadcast %41 : vector<1x8xf32> to vector<8x8xf32>
    %311 = arith.addf %309, %310 : vector<8x8xf32>
    %c0_360 = arith.constant 0 : index
    %c0_361 = arith.constant 0 : index
    %c60 = arith.constant 60 : index
    %312 = vector.load %arg6[%c0_360, %c0_361, %c60] : memref<7x8x128xf32, #tpu.memory_space<vmem>>, vector<1x8x4xf32>
    %313 = vector.shape_cast %312 : vector<1x8x4xf32> to vector<8x4xf32>
    %c1_362 = arith.constant 1 : index
    %c0_363 = arith.constant 0 : index
    %c60_364 = arith.constant 60 : index
    %314 = vector.load %arg6[%c1_362, %c0_363, %c60_364] : memref<7x8x128xf32, #tpu.memory_space<vmem>>, vector<1x8x4xf32>
    %315 = vector.shape_cast %314 : vector<1x8x4xf32> to vector<8x4xf32>
    %c2_365 = arith.constant 2 : index
    %c0_366 = arith.constant 0 : index
    %c60_367 = arith.constant 60 : index
    %316 = vector.load %arg6[%c2_365, %c0_366, %c60_367] : memref<7x8x128xf32, #tpu.memory_space<vmem>>, vector<1x8x4xf32>
    %317 = vector.shape_cast %316 : vector<1x8x4xf32> to vector<8x4xf32>
    %c3_368 = arith.constant 3 : index
    %c0_369 = arith.constant 0 : index
    %c60_370 = arith.constant 60 : index
    %318 = vector.load %arg6[%c3_368, %c0_369, %c60_370] : memref<7x8x128xf32, #tpu.memory_space<vmem>>, vector<1x8x4xf32>
    %319 = vector.shape_cast %318 : vector<1x8x4xf32> to vector<8x4xf32>
    %c4_371 = arith.constant 4 : index
    %c0_372 = arith.constant 0 : index
    %c60_373 = arith.constant 60 : index
    %320 = vector.load %arg6[%c4_371, %c0_372, %c60_373] : memref<7x8x128xf32, #tpu.memory_space<vmem>>, vector<1x8x4xf32>
    %321 = vector.shape_cast %320 : vector<1x8x4xf32> to vector<8x4xf32>
    %c5_374 = arith.constant 5 : index
    %c0_375 = arith.constant 0 : index
    %c60_376 = arith.constant 60 : index
    %322 = vector.load %arg6[%c5_374, %c0_375, %c60_376] : memref<7x8x128xf32, #tpu.memory_space<vmem>>, vector<1x8x4xf32>
    %323 = vector.shape_cast %322 : vector<1x8x4xf32> to vector<8x4xf32>
    %c6_377 = arith.constant 6 : index
    %c0_378 = arith.constant 0 : index
    %c60_379 = arith.constant 60 : index
    %324 = vector.load %arg6[%c6_377, %c0_378, %c60_379] : memref<7x8x128xf32, #tpu.memory_space<vmem>>, vector<1x8x4xf32>
    %325 = vector.shape_cast %324 : vector<1x8x4xf32> to vector<8x4xf32>
    %326 = tpu.concatenate %313, %315, %317, %319, %321, %323, %325 in 1 : vector<8x4xf32>, vector<8x4xf32>, vector<8x4xf32>, vector<8x4xf32>, vector<8x4xf32>, vector<8x4xf32>, vector<8x4xf32> -> vector<8x28xf32>
    %cst_380 = arith.constant dense<0.000000e+00> : vector<8x8xf32>
    %327 = tpu.matmul %326, %40, %cst_380 {dimension_numbers = #tpu.dot_dimension_numbers<[1], [0], [0], [1], [0, 0, 1, 1], [], []>} : vector<8x28xf32>, vector<28x8xf32>, vector<8x8xf32> -> vector<8x8xf32>
    %328 = vector.broadcast %41 : vector<1x8xf32> to vector<8x8xf32>
    %329 = arith.addf %327, %328 : vector<8x8xf32>
    %c0_381 = arith.constant 0 : index
    %c0_382 = arith.constant 0 : index
    %c64 = arith.constant 64 : index
    %330 = vector.load %arg6[%c0_381, %c0_382, %c64] : memref<7x8x128xf32, #tpu.memory_space<vmem>>, vector<1x8x4xf32>
    %331 = vector.shape_cast %330 : vector<1x8x4xf32> to vector<8x4xf32>
    %c1_383 = arith.constant 1 : index
    %c0_384 = arith.constant 0 : index
    %c64_385 = arith.constant 64 : index
    %332 = vector.load %arg6[%c1_383, %c0_384, %c64_385] : memref<7x8x128xf32, #tpu.memory_space<vmem>>, vector<1x8x4xf32>
    %333 = vector.shape_cast %332 : vector<1x8x4xf32> to vector<8x4xf32>
    %c2_386 = arith.constant 2 : index
    %c0_387 = arith.constant 0 : index
    %c64_388 = arith.constant 64 : index
    %334 = vector.load %arg6[%c2_386, %c0_387, %c64_388] : memref<7x8x128xf32, #tpu.memory_space<vmem>>, vector<1x8x4xf32>
    %335 = vector.shape_cast %334 : vector<1x8x4xf32> to vector<8x4xf32>
    %c3_389 = arith.constant 3 : index
    %c0_390 = arith.constant 0 : index
    %c64_391 = arith.constant 64 : index
    %336 = vector.load %arg6[%c3_389, %c0_390, %c64_391] : memref<7x8x128xf32, #tpu.memory_space<vmem>>, vector<1x8x4xf32>
    %337 = vector.shape_cast %336 : vector<1x8x4xf32> to vector<8x4xf32>
    %c4_392 = arith.constant 4 : index
    %c0_393 = arith.constant 0 : index
    %c64_394 = arith.constant 64 : index
    %338 = vector.load %arg6[%c4_392, %c0_393, %c64_394] : memref<7x8x128xf32, #tpu.memory_space<vmem>>, vector<1x8x4xf32>
    %339 = vector.shape_cast %338 : vector<1x8x4xf32> to vector<8x4xf32>
    %c5_395 = arith.constant 5 : index
    %c0_396 = arith.constant 0 : index
    %c64_397 = arith.constant 64 : index
    %340 = vector.load %arg6[%c5_395, %c0_396, %c64_397] : memref<7x8x128xf32, #tpu.memory_space<vmem>>, vector<1x8x4xf32>
    %341 = vector.shape_cast %340 : vector<1x8x4xf32> to vector<8x4xf32>
    %c6_398 = arith.constant 6 : index
    %c0_399 = arith.constant 0 : index
    %c64_400 = arith.constant 64 : index
    %342 = vector.load %arg6[%c6_398, %c0_399, %c64_400] : memref<7x8x128xf32, #tpu.memory_space<vmem>>, vector<1x8x4xf32>
    %343 = vector.shape_cast %342 : vector<1x8x4xf32> to vector<8x4xf32>
    %344 = tpu.concatenate %331, %333, %335, %337, %339, %341, %343 in 1 : vector<8x4xf32>, vector<8x4xf32>, vector<8x4xf32>, vector<8x4xf32>, vector<8x4xf32>, vector<8x4xf32>, vector<8x4xf32> -> vector<8x28xf32>
    %cst_401 = arith.constant dense<0.000000e+00> : vector<8x8xf32>
    %345 = tpu.matmul %344, %40, %cst_401 {dimension_numbers = #tpu.dot_dimension_numbers<[1], [0], [0], [1], [0, 0, 1, 1], [], []>} : vector<8x28xf32>, vector<28x8xf32>, vector<8x8xf32> -> vector<8x8xf32>
    %346 = vector.broadcast %41 : vector<1x8xf32> to vector<8x8xf32>
    %347 = arith.addf %345, %346 : vector<8x8xf32>
    %c0_402 = arith.constant 0 : index
    %c0_403 = arith.constant 0 : index
    %c68 = arith.constant 68 : index
    %348 = vector.load %arg6[%c0_402, %c0_403, %c68] : memref<7x8x128xf32, #tpu.memory_space<vmem>>, vector<1x8x4xf32>
    %349 = vector.shape_cast %348 : vector<1x8x4xf32> to vector<8x4xf32>
    %c1_404 = arith.constant 1 : index
    %c0_405 = arith.constant 0 : index
    %c68_406 = arith.constant 68 : index
    %350 = vector.load %arg6[%c1_404, %c0_405, %c68_406] : memref<7x8x128xf32, #tpu.memory_space<vmem>>, vector<1x8x4xf32>
    %351 = vector.shape_cast %350 : vector<1x8x4xf32> to vector<8x4xf32>
    %c2_407 = arith.constant 2 : index
    %c0_408 = arith.constant 0 : index
    %c68_409 = arith.constant 68 : index
    %352 = vector.load %arg6[%c2_407, %c0_408, %c68_409] : memref<7x8x128xf32, #tpu.memory_space<vmem>>, vector<1x8x4xf32>
    %353 = vector.shape_cast %352 : vector<1x8x4xf32> to vector<8x4xf32>
    %c3_410 = arith.constant 3 : index
    %c0_411 = arith.constant 0 : index
    %c68_412 = arith.constant 68 : index
    %354 = vector.load %arg6[%c3_410, %c0_411, %c68_412] : memref<7x8x128xf32, #tpu.memory_space<vmem>>, vector<1x8x4xf32>
    %355 = vector.shape_cast %354 : vector<1x8x4xf32> to vector<8x4xf32>
    %c4_413 = arith.constant 4 : index
    %c0_414 = arith.constant 0 : index
    %c68_415 = arith.constant 68 : index
    %356 = vector.load %arg6[%c4_413, %c0_414, %c68_415] : memref<7x8x128xf32, #tpu.memory_space<vmem>>, vector<1x8x4xf32>
    %357 = vector.shape_cast %356 : vector<1x8x4xf32> to vector<8x4xf32>
    %c5_416 = arith.constant 5 : index
    %c0_417 = arith.constant 0 : index
    %c68_418 = arith.constant 68 : index
    %358 = vector.load %arg6[%c5_416, %c0_417, %c68_418] : memref<7x8x128xf32, #tpu.memory_space<vmem>>, vector<1x8x4xf32>
    %359 = vector.shape_cast %358 : vector<1x8x4xf32> to vector<8x4xf32>
    %c6_419 = arith.constant 6 : index
    %c0_420 = arith.constant 0 : index
    %c68_421 = arith.constant 68 : index
    %360 = vector.load %arg6[%c6_419, %c0_420, %c68_421] : memref<7x8x128xf32, #tpu.memory_space<vmem>>, vector<1x8x4xf32>
    %361 = vector.shape_cast %360 : vector<1x8x4xf32> to vector<8x4xf32>
    %362 = tpu.concatenate %349, %351, %353, %355, %357, %359, %361 in 1 : vector<8x4xf32>, vector<8x4xf32>, vector<8x4xf32>, vector<8x4xf32>, vector<8x4xf32>, vector<8x4xf32>, vector<8x4xf32> -> vector<8x28xf32>
    %cst_422 = arith.constant dense<0.000000e+00> : vector<8x8xf32>
    %363 = tpu.matmul %362, %40, %cst_422 {dimension_numbers = #tpu.dot_dimension_numbers<[1], [0], [0], [1], [0, 0, 1, 1], [], []>} : vector<8x28xf32>, vector<28x8xf32>, vector<8x8xf32> -> vector<8x8xf32>
    %364 = vector.broadcast %41 : vector<1x8xf32> to vector<8x8xf32>
    %365 = arith.addf %363, %364 : vector<8x8xf32>
    %c0_423 = arith.constant 0 : index
    %c0_424 = arith.constant 0 : index
    %c72 = arith.constant 72 : index
    %366 = vector.load %arg6[%c0_423, %c0_424, %c72] : memref<7x8x128xf32, #tpu.memory_space<vmem>>, vector<1x8x4xf32>
    %367 = vector.shape_cast %366 : vector<1x8x4xf32> to vector<8x4xf32>
    %c1_425 = arith.constant 1 : index
    %c0_426 = arith.constant 0 : index
    %c72_427 = arith.constant 72 : index
    %368 = vector.load %arg6[%c1_425, %c0_426, %c72_427] : memref<7x8x128xf32, #tpu.memory_space<vmem>>, vector<1x8x4xf32>
    %369 = vector.shape_cast %368 : vector<1x8x4xf32> to vector<8x4xf32>
    %c2_428 = arith.constant 2 : index
    %c0_429 = arith.constant 0 : index
    %c72_430 = arith.constant 72 : index
    %370 = vector.load %arg6[%c2_428, %c0_429, %c72_430] : memref<7x8x128xf32, #tpu.memory_space<vmem>>, vector<1x8x4xf32>
    %371 = vector.shape_cast %370 : vector<1x8x4xf32> to vector<8x4xf32>
    %c3_431 = arith.constant 3 : index
    %c0_432 = arith.constant 0 : index
    %c72_433 = arith.constant 72 : index
    %372 = vector.load %arg6[%c3_431, %c0_432, %c72_433] : memref<7x8x128xf32, #tpu.memory_space<vmem>>, vector<1x8x4xf32>
    %373 = vector.shape_cast %372 : vector<1x8x4xf32> to vector<8x4xf32>
    %c4_434 = arith.constant 4 : index
    %c0_435 = arith.constant 0 : index
    %c72_436 = arith.constant 72 : index
    %374 = vector.load %arg6[%c4_434, %c0_435, %c72_436] : memref<7x8x128xf32, #tpu.memory_space<vmem>>, vector<1x8x4xf32>
    %375 = vector.shape_cast %374 : vector<1x8x4xf32> to vector<8x4xf32>
    %c5_437 = arith.constant 5 : index
    %c0_438 = arith.constant 0 : index
    %c72_439 = arith.constant 72 : index
    %376 = vector.load %arg6[%c5_437, %c0_438, %c72_439] : memref<7x8x128xf32, #tpu.memory_space<vmem>>, vector<1x8x4xf32>
    %377 = vector.shape_cast %376 : vector<1x8x4xf32> to vector<8x4xf32>
    %c6_440 = arith.constant 6 : index
    %c0_441 = arith.constant 0 : index
    %c72_442 = arith.constant 72 : index
    %378 = vector.load %arg6[%c6_440, %c0_441, %c72_442] : memref<7x8x128xf32, #tpu.memory_space<vmem>>, vector<1x8x4xf32>
    %379 = vector.shape_cast %378 : vector<1x8x4xf32> to vector<8x4xf32>
    %380 = tpu.concatenate %367, %369, %371, %373, %375, %377, %379 in 1 : vector<8x4xf32>, vector<8x4xf32>, vector<8x4xf32>, vector<8x4xf32>, vector<8x4xf32>, vector<8x4xf32>, vector<8x4xf32> -> vector<8x28xf32>
    %cst_443 = arith.constant dense<0.000000e+00> : vector<8x8xf32>
    %381 = tpu.matmul %380, %40, %cst_443 {dimension_numbers = #tpu.dot_dimension_numbers<[1], [0], [0], [1], [0, 0, 1, 1], [], []>} : vector<8x28xf32>, vector<28x8xf32>, vector<8x8xf32> -> vector<8x8xf32>
    %382 = vector.broadcast %41 : vector<1x8xf32> to vector<8x8xf32>
    %383 = arith.addf %381, %382 : vector<8x8xf32>
    %c0_444 = arith.constant 0 : index
    %c0_445 = arith.constant 0 : index
    %c76 = arith.constant 76 : index
    %384 = vector.load %arg6[%c0_444, %c0_445, %c76] : memref<7x8x128xf32, #tpu.memory_space<vmem>>, vector<1x8x4xf32>
    %385 = vector.shape_cast %384 : vector<1x8x4xf32> to vector<8x4xf32>
    %c1_446 = arith.constant 1 : index
    %c0_447 = arith.constant 0 : index
    %c76_448 = arith.constant 76 : index
    %386 = vector.load %arg6[%c1_446, %c0_447, %c76_448] : memref<7x8x128xf32, #tpu.memory_space<vmem>>, vector<1x8x4xf32>
    %387 = vector.shape_cast %386 : vector<1x8x4xf32> to vector<8x4xf32>
    %c2_449 = arith.constant 2 : index
    %c0_450 = arith.constant 0 : index
    %c76_451 = arith.constant 76 : index
    %388 = vector.load %arg6[%c2_449, %c0_450, %c76_451] : memref<7x8x128xf32, #tpu.memory_space<vmem>>, vector<1x8x4xf32>
    %389 = vector.shape_cast %388 : vector<1x8x4xf32> to vector<8x4xf32>
    %c3_452 = arith.constant 3 : index
    %c0_453 = arith.constant 0 : index
    %c76_454 = arith.constant 76 : index
    %390 = vector.load %arg6[%c3_452, %c0_453, %c76_454] : memref<7x8x128xf32, #tpu.memory_space<vmem>>, vector<1x8x4xf32>
    %391 = vector.shape_cast %390 : vector<1x8x4xf32> to vector<8x4xf32>
    %c4_455 = arith.constant 4 : index
    %c0_456 = arith.constant 0 : index
    %c76_457 = arith.constant 76 : index
    %392 = vector.load %arg6[%c4_455, %c0_456, %c76_457] : memref<7x8x128xf32, #tpu.memory_space<vmem>>, vector<1x8x4xf32>
    %393 = vector.shape_cast %392 : vector<1x8x4xf32> to vector<8x4xf32>
    %c5_458 = arith.constant 5 : index
    %c0_459 = arith.constant 0 : index
    %c76_460 = arith.constant 76 : index
    %394 = vector.load %arg6[%c5_458, %c0_459, %c76_460] : memref<7x8x128xf32, #tpu.memory_space<vmem>>, vector<1x8x4xf32>
    %395 = vector.shape_cast %394 : vector<1x8x4xf32> to vector<8x4xf32>
    %c6_461 = arith.constant 6 : index
    %c0_462 = arith.constant 0 : index
    %c76_463 = arith.constant 76 : index
    %396 = vector.load %arg6[%c6_461, %c0_462, %c76_463] : memref<7x8x128xf32, #tpu.memory_space<vmem>>, vector<1x8x4xf32>
    %397 = vector.shape_cast %396 : vector<1x8x4xf32> to vector<8x4xf32>
    %398 = tpu.concatenate %385, %387, %389, %391, %393, %395, %397 in 1 : vector<8x4xf32>, vector<8x4xf32>, vector<8x4xf32>, vector<8x4xf32>, vector<8x4xf32>, vector<8x4xf32>, vector<8x4xf32> -> vector<8x28xf32>
    %cst_464 = arith.constant dense<0.000000e+00> : vector<8x8xf32>
    %399 = tpu.matmul %398, %40, %cst_464 {dimension_numbers = #tpu.dot_dimension_numbers<[1], [0], [0], [1], [0, 0, 1, 1], [], []>} : vector<8x28xf32>, vector<28x8xf32>, vector<8x8xf32> -> vector<8x8xf32>
    %400 = vector.broadcast %41 : vector<1x8xf32> to vector<8x8xf32>
    %401 = arith.addf %399, %400 : vector<8x8xf32>
    %c0_465 = arith.constant 0 : index
    %c0_466 = arith.constant 0 : index
    %c80 = arith.constant 80 : index
    %402 = vector.load %arg6[%c0_465, %c0_466, %c80] : memref<7x8x128xf32, #tpu.memory_space<vmem>>, vector<1x8x4xf32>
    %403 = vector.shape_cast %402 : vector<1x8x4xf32> to vector<8x4xf32>
    %c1_467 = arith.constant 1 : index
    %c0_468 = arith.constant 0 : index
    %c80_469 = arith.constant 80 : index
    %404 = vector.load %arg6[%c1_467, %c0_468, %c80_469] : memref<7x8x128xf32, #tpu.memory_space<vmem>>, vector<1x8x4xf32>
    %405 = vector.shape_cast %404 : vector<1x8x4xf32> to vector<8x4xf32>
    %c2_470 = arith.constant 2 : index
    %c0_471 = arith.constant 0 : index
    %c80_472 = arith.constant 80 : index
    %406 = vector.load %arg6[%c2_470, %c0_471, %c80_472] : memref<7x8x128xf32, #tpu.memory_space<vmem>>, vector<1x8x4xf32>
    %407 = vector.shape_cast %406 : vector<1x8x4xf32> to vector<8x4xf32>
    %c3_473 = arith.constant 3 : index
    %c0_474 = arith.constant 0 : index
    %c80_475 = arith.constant 80 : index
    %408 = vector.load %arg6[%c3_473, %c0_474, %c80_475] : memref<7x8x128xf32, #tpu.memory_space<vmem>>, vector<1x8x4xf32>
    %409 = vector.shape_cast %408 : vector<1x8x4xf32> to vector<8x4xf32>
    %c4_476 = arith.constant 4 : index
    %c0_477 = arith.constant 0 : index
    %c80_478 = arith.constant 80 : index
    %410 = vector.load %arg6[%c4_476, %c0_477, %c80_478] : memref<7x8x128xf32, #tpu.memory_space<vmem>>, vector<1x8x4xf32>
    %411 = vector.shape_cast %410 : vector<1x8x4xf32> to vector<8x4xf32>
    %c5_479 = arith.constant 5 : index
    %c0_480 = arith.constant 0 : index
    %c80_481 = arith.constant 80 : index
    %412 = vector.load %arg6[%c5_479, %c0_480, %c80_481] : memref<7x8x128xf32, #tpu.memory_space<vmem>>, vector<1x8x4xf32>
    %413 = vector.shape_cast %412 : vector<1x8x4xf32> to vector<8x4xf32>
    %c6_482 = arith.constant 6 : index
    %c0_483 = arith.constant 0 : index
    %c80_484 = arith.constant 80 : index
    %414 = vector.load %arg6[%c6_482, %c0_483, %c80_484] : memref<7x8x128xf32, #tpu.memory_space<vmem>>, vector<1x8x4xf32>
    %415 = vector.shape_cast %414 : vector<1x8x4xf32> to vector<8x4xf32>
    %416 = tpu.concatenate %403, %405, %407, %409, %411, %413, %415 in 1 : vector<8x4xf32>, vector<8x4xf32>, vector<8x4xf32>, vector<8x4xf32>, vector<8x4xf32>, vector<8x4xf32>, vector<8x4xf32> -> vector<8x28xf32>
    %cst_485 = arith.constant dense<0.000000e+00> : vector<8x8xf32>
    %417 = tpu.matmul %416, %40, %cst_485 {dimension_numbers = #tpu.dot_dimension_numbers<[1], [0], [0], [1], [0, 0, 1, 1], [], []>} : vector<8x28xf32>, vector<28x8xf32>, vector<8x8xf32> -> vector<8x8xf32>
    %418 = vector.broadcast %41 : vector<1x8xf32> to vector<8x8xf32>
    %419 = arith.addf %417, %418 : vector<8x8xf32>
    %c0_486 = arith.constant 0 : index
    %c0_487 = arith.constant 0 : index
    %c84 = arith.constant 84 : index
    %420 = vector.load %arg6[%c0_486, %c0_487, %c84] : memref<7x8x128xf32, #tpu.memory_space<vmem>>, vector<1x8x4xf32>
    %421 = vector.shape_cast %420 : vector<1x8x4xf32> to vector<8x4xf32>
    %c1_488 = arith.constant 1 : index
    %c0_489 = arith.constant 0 : index
    %c84_490 = arith.constant 84 : index
    %422 = vector.load %arg6[%c1_488, %c0_489, %c84_490] : memref<7x8x128xf32, #tpu.memory_space<vmem>>, vector<1x8x4xf32>
    %423 = vector.shape_cast %422 : vector<1x8x4xf32> to vector<8x4xf32>
    %c2_491 = arith.constant 2 : index
    %c0_492 = arith.constant 0 : index
    %c84_493 = arith.constant 84 : index
    %424 = vector.load %arg6[%c2_491, %c0_492, %c84_493] : memref<7x8x128xf32, #tpu.memory_space<vmem>>, vector<1x8x4xf32>
    %425 = vector.shape_cast %424 : vector<1x8x4xf32> to vector<8x4xf32>
    %c3_494 = arith.constant 3 : index
    %c0_495 = arith.constant 0 : index
    %c84_496 = arith.constant 84 : index
    %426 = vector.load %arg6[%c3_494, %c0_495, %c84_496] : memref<7x8x128xf32, #tpu.memory_space<vmem>>, vector<1x8x4xf32>
    %427 = vector.shape_cast %426 : vector<1x8x4xf32> to vector<8x4xf32>
    %c4_497 = arith.constant 4 : index
    %c0_498 = arith.constant 0 : index
    %c84_499 = arith.constant 84 : index
    %428 = vector.load %arg6[%c4_497, %c0_498, %c84_499] : memref<7x8x128xf32, #tpu.memory_space<vmem>>, vector<1x8x4xf32>
    %429 = vector.shape_cast %428 : vector<1x8x4xf32> to vector<8x4xf32>
    %c5_500 = arith.constant 5 : index
    %c0_501 = arith.constant 0 : index
    %c84_502 = arith.constant 84 : index
    %430 = vector.load %arg6[%c5_500, %c0_501, %c84_502] : memref<7x8x128xf32, #tpu.memory_space<vmem>>, vector<1x8x4xf32>
    %431 = vector.shape_cast %430 : vector<1x8x4xf32> to vector<8x4xf32>
    %c6_503 = arith.constant 6 : index
    %c0_504 = arith.constant 0 : index
    %c84_505 = arith.constant 84 : index
    %432 = vector.load %arg6[%c6_503, %c0_504, %c84_505] : memref<7x8x128xf32, #tpu.memory_space<vmem>>, vector<1x8x4xf32>
    %433 = vector.shape_cast %432 : vector<1x8x4xf32> to vector<8x4xf32>
    %434 = tpu.concatenate %421, %423, %425, %427, %429, %431, %433 in 1 : vector<8x4xf32>, vector<8x4xf32>, vector<8x4xf32>, vector<8x4xf32>, vector<8x4xf32>, vector<8x4xf32>, vector<8x4xf32> -> vector<8x28xf32>
    %cst_506 = arith.constant dense<0.000000e+00> : vector<8x8xf32>
    %435 = tpu.matmul %434, %40, %cst_506 {dimension_numbers = #tpu.dot_dimension_numbers<[1], [0], [0], [1], [0, 0, 1, 1], [], []>} : vector<8x28xf32>, vector<28x8xf32>, vector<8x8xf32> -> vector<8x8xf32>
    %436 = vector.broadcast %41 : vector<1x8xf32> to vector<8x8xf32>
    %437 = arith.addf %435, %436 : vector<8x8xf32>
    %c0_507 = arith.constant 0 : index
    %c0_508 = arith.constant 0 : index
    %c88 = arith.constant 88 : index
    %438 = vector.load %arg6[%c0_507, %c0_508, %c88] : memref<7x8x128xf32, #tpu.memory_space<vmem>>, vector<1x8x4xf32>
    %439 = vector.shape_cast %438 : vector<1x8x4xf32> to vector<8x4xf32>
    %c1_509 = arith.constant 1 : index
    %c0_510 = arith.constant 0 : index
    %c88_511 = arith.constant 88 : index
    %440 = vector.load %arg6[%c1_509, %c0_510, %c88_511] : memref<7x8x128xf32, #tpu.memory_space<vmem>>, vector<1x8x4xf32>
    %441 = vector.shape_cast %440 : vector<1x8x4xf32> to vector<8x4xf32>
    %c2_512 = arith.constant 2 : index
    %c0_513 = arith.constant 0 : index
    %c88_514 = arith.constant 88 : index
    %442 = vector.load %arg6[%c2_512, %c0_513, %c88_514] : memref<7x8x128xf32, #tpu.memory_space<vmem>>, vector<1x8x4xf32>
    %443 = vector.shape_cast %442 : vector<1x8x4xf32> to vector<8x4xf32>
    %c3_515 = arith.constant 3 : index
    %c0_516 = arith.constant 0 : index
    %c88_517 = arith.constant 88 : index
    %444 = vector.load %arg6[%c3_515, %c0_516, %c88_517] : memref<7x8x128xf32, #tpu.memory_space<vmem>>, vector<1x8x4xf32>
    %445 = vector.shape_cast %444 : vector<1x8x4xf32> to vector<8x4xf32>
    %c4_518 = arith.constant 4 : index
    %c0_519 = arith.constant 0 : index
    %c88_520 = arith.constant 88 : index
    %446 = vector.load %arg6[%c4_518, %c0_519, %c88_520] : memref<7x8x128xf32, #tpu.memory_space<vmem>>, vector<1x8x4xf32>
    %447 = vector.shape_cast %446 : vector<1x8x4xf32> to vector<8x4xf32>
    %c5_521 = arith.constant 5 : index
    %c0_522 = arith.constant 0 : index
    %c88_523 = arith.constant 88 : index
    %448 = vector.load %arg6[%c5_521, %c0_522, %c88_523] : memref<7x8x128xf32, #tpu.memory_space<vmem>>, vector<1x8x4xf32>
    %449 = vector.shape_cast %448 : vector<1x8x4xf32> to vector<8x4xf32>
    %c6_524 = arith.constant 6 : index
    %c0_525 = arith.constant 0 : index
    %c88_526 = arith.constant 88 : index
    %450 = vector.load %arg6[%c6_524, %c0_525, %c88_526] : memref<7x8x128xf32, #tpu.memory_space<vmem>>, vector<1x8x4xf32>
    %451 = vector.shape_cast %450 : vector<1x8x4xf32> to vector<8x4xf32>
    %452 = tpu.concatenate %439, %441, %443, %445, %447, %449, %451 in 1 : vector<8x4xf32>, vector<8x4xf32>, vector<8x4xf32>, vector<8x4xf32>, vector<8x4xf32>, vector<8x4xf32>, vector<8x4xf32> -> vector<8x28xf32>
    %cst_527 = arith.constant dense<0.000000e+00> : vector<8x8xf32>
    %453 = tpu.matmul %452, %40, %cst_527 {dimension_numbers = #tpu.dot_dimension_numbers<[1], [0], [0], [1], [0, 0, 1, 1], [], []>} : vector<8x28xf32>, vector<28x8xf32>, vector<8x8xf32> -> vector<8x8xf32>
    %454 = vector.broadcast %41 : vector<1x8xf32> to vector<8x8xf32>
    %455 = arith.addf %453, %454 : vector<8x8xf32>
    %c0_528 = arith.constant 0 : index
    %c0_529 = arith.constant 0 : index
    %c92 = arith.constant 92 : index
    %456 = vector.load %arg6[%c0_528, %c0_529, %c92] : memref<7x8x128xf32, #tpu.memory_space<vmem>>, vector<1x8x4xf32>
    %457 = vector.shape_cast %456 : vector<1x8x4xf32> to vector<8x4xf32>
    %c1_530 = arith.constant 1 : index
    %c0_531 = arith.constant 0 : index
    %c92_532 = arith.constant 92 : index
    %458 = vector.load %arg6[%c1_530, %c0_531, %c92_532] : memref<7x8x128xf32, #tpu.memory_space<vmem>>, vector<1x8x4xf32>
    %459 = vector.shape_cast %458 : vector<1x8x4xf32> to vector<8x4xf32>
    %c2_533 = arith.constant 2 : index
    %c0_534 = arith.constant 0 : index
    %c92_535 = arith.constant 92 : index
    %460 = vector.load %arg6[%c2_533, %c0_534, %c92_535] : memref<7x8x128xf32, #tpu.memory_space<vmem>>, vector<1x8x4xf32>
    %461 = vector.shape_cast %460 : vector<1x8x4xf32> to vector<8x4xf32>
    %c3_536 = arith.constant 3 : index
    %c0_537 = arith.constant 0 : index
    %c92_538 = arith.constant 92 : index
    %462 = vector.load %arg6[%c3_536, %c0_537, %c92_538] : memref<7x8x128xf32, #tpu.memory_space<vmem>>, vector<1x8x4xf32>
    %463 = vector.shape_cast %462 : vector<1x8x4xf32> to vector<8x4xf32>
    %c4_539 = arith.constant 4 : index
    %c0_540 = arith.constant 0 : index
    %c92_541 = arith.constant 92 : index
    %464 = vector.load %arg6[%c4_539, %c0_540, %c92_541] : memref<7x8x128xf32, #tpu.memory_space<vmem>>, vector<1x8x4xf32>
    %465 = vector.shape_cast %464 : vector<1x8x4xf32> to vector<8x4xf32>
    %c5_542 = arith.constant 5 : index
    %c0_543 = arith.constant 0 : index
    %c92_544 = arith.constant 92 : index
    %466 = vector.load %arg6[%c5_542, %c0_543, %c92_544] : memref<7x8x128xf32, #tpu.memory_space<vmem>>, vector<1x8x4xf32>
    %467 = vector.shape_cast %466 : vector<1x8x4xf32> to vector<8x4xf32>
    %c6_545 = arith.constant 6 : index
    %c0_546 = arith.constant 0 : index
    %c92_547 = arith.constant 92 : index
    %468 = vector.load %arg6[%c6_545, %c0_546, %c92_547] : memref<7x8x128xf32, #tpu.memory_space<vmem>>, vector<1x8x4xf32>
    %469 = vector.shape_cast %468 : vector<1x8x4xf32> to vector<8x4xf32>
    %470 = tpu.concatenate %457, %459, %461, %463, %465, %467, %469 in 1 : vector<8x4xf32>, vector<8x4xf32>, vector<8x4xf32>, vector<8x4xf32>, vector<8x4xf32>, vector<8x4xf32>, vector<8x4xf32> -> vector<8x28xf32>
    %cst_548 = arith.constant dense<0.000000e+00> : vector<8x8xf32>
    %471 = tpu.matmul %470, %40, %cst_548 {dimension_numbers = #tpu.dot_dimension_numbers<[1], [0], [0], [1], [0, 0, 1, 1], [], []>} : vector<8x28xf32>, vector<28x8xf32>, vector<8x8xf32> -> vector<8x8xf32>
    %472 = vector.broadcast %41 : vector<1x8xf32> to vector<8x8xf32>
    %473 = arith.addf %471, %472 : vector<8x8xf32>
    %c0_549 = arith.constant 0 : index
    %c0_550 = arith.constant 0 : index
    %c96 = arith.constant 96 : index
    %474 = vector.load %arg6[%c0_549, %c0_550, %c96] : memref<7x8x128xf32, #tpu.memory_space<vmem>>, vector<1x8x4xf32>
    %475 = vector.shape_cast %474 : vector<1x8x4xf32> to vector<8x4xf32>
    %c1_551 = arith.constant 1 : index
    %c0_552 = arith.constant 0 : index
    %c96_553 = arith.constant 96 : index
    %476 = vector.load %arg6[%c1_551, %c0_552, %c96_553] : memref<7x8x128xf32, #tpu.memory_space<vmem>>, vector<1x8x4xf32>
    %477 = vector.shape_cast %476 : vector<1x8x4xf32> to vector<8x4xf32>
    %c2_554 = arith.constant 2 : index
    %c0_555 = arith.constant 0 : index
    %c96_556 = arith.constant 96 : index
    %478 = vector.load %arg6[%c2_554, %c0_555, %c96_556] : memref<7x8x128xf32, #tpu.memory_space<vmem>>, vector<1x8x4xf32>
    %479 = vector.shape_cast %478 : vector<1x8x4xf32> to vector<8x4xf32>
    %c3_557 = arith.constant 3 : index
    %c0_558 = arith.constant 0 : index
    %c96_559 = arith.constant 96 : index
    %480 = vector.load %arg6[%c3_557, %c0_558, %c96_559] : memref<7x8x128xf32, #tpu.memory_space<vmem>>, vector<1x8x4xf32>
    %481 = vector.shape_cast %480 : vector<1x8x4xf32> to vector<8x4xf32>
    %c4_560 = arith.constant 4 : index
    %c0_561 = arith.constant 0 : index
    %c96_562 = arith.constant 96 : index
    %482 = vector.load %arg6[%c4_560, %c0_561, %c96_562] : memref<7x8x128xf32, #tpu.memory_space<vmem>>, vector<1x8x4xf32>
    %483 = vector.shape_cast %482 : vector<1x8x4xf32> to vector<8x4xf32>
    %c5_563 = arith.constant 5 : index
    %c0_564 = arith.constant 0 : index
    %c96_565 = arith.constant 96 : index
    %484 = vector.load %arg6[%c5_563, %c0_564, %c96_565] : memref<7x8x128xf32, #tpu.memory_space<vmem>>, vector<1x8x4xf32>
    %485 = vector.shape_cast %484 : vector<1x8x4xf32> to vector<8x4xf32>
    %c6_566 = arith.constant 6 : index
    %c0_567 = arith.constant 0 : index
    %c96_568 = arith.constant 96 : index
    %486 = vector.load %arg6[%c6_566, %c0_567, %c96_568] : memref<7x8x128xf32, #tpu.memory_space<vmem>>, vector<1x8x4xf32>
    %487 = vector.shape_cast %486 : vector<1x8x4xf32> to vector<8x4xf32>
    %488 = tpu.concatenate %475, %477, %479, %481, %483, %485, %487 in 1 : vector<8x4xf32>, vector<8x4xf32>, vector<8x4xf32>, vector<8x4xf32>, vector<8x4xf32>, vector<8x4xf32>, vector<8x4xf32> -> vector<8x28xf32>
    %cst_569 = arith.constant dense<0.000000e+00> : vector<8x8xf32>
    %489 = tpu.matmul %488, %40, %cst_569 {dimension_numbers = #tpu.dot_dimension_numbers<[1], [0], [0], [1], [0, 0, 1, 1], [], []>} : vector<8x28xf32>, vector<28x8xf32>, vector<8x8xf32> -> vector<8x8xf32>
    %490 = vector.broadcast %41 : vector<1x8xf32> to vector<8x8xf32>
    %491 = arith.addf %489, %490 : vector<8x8xf32>
    %c0_570 = arith.constant 0 : index
    %c0_571 = arith.constant 0 : index
    %c100 = arith.constant 100 : index
    %492 = vector.load %arg6[%c0_570, %c0_571, %c100] : memref<7x8x128xf32, #tpu.memory_space<vmem>>, vector<1x8x4xf32>
    %493 = vector.shape_cast %492 : vector<1x8x4xf32> to vector<8x4xf32>
    %c1_572 = arith.constant 1 : index
    %c0_573 = arith.constant 0 : index
    %c100_574 = arith.constant 100 : index
    %494 = vector.load %arg6[%c1_572, %c0_573, %c100_574] : memref<7x8x128xf32, #tpu.memory_space<vmem>>, vector<1x8x4xf32>
    %495 = vector.shape_cast %494 : vector<1x8x4xf32> to vector<8x4xf32>
    %c2_575 = arith.constant 2 : index
    %c0_576 = arith.constant 0 : index
    %c100_577 = arith.constant 100 : index
    %496 = vector.load %arg6[%c2_575, %c0_576, %c100_577] : memref<7x8x128xf32, #tpu.memory_space<vmem>>, vector<1x8x4xf32>
    %497 = vector.shape_cast %496 : vector<1x8x4xf32> to vector<8x4xf32>
    %c3_578 = arith.constant 3 : index
    %c0_579 = arith.constant 0 : index
    %c100_580 = arith.constant 100 : index
    %498 = vector.load %arg6[%c3_578, %c0_579, %c100_580] : memref<7x8x128xf32, #tpu.memory_space<vmem>>, vector<1x8x4xf32>
    %499 = vector.shape_cast %498 : vector<1x8x4xf32> to vector<8x4xf32>
    %c4_581 = arith.constant 4 : index
    %c0_582 = arith.constant 0 : index
    %c100_583 = arith.constant 100 : index
    %500 = vector.load %arg6[%c4_581, %c0_582, %c100_583] : memref<7x8x128xf32, #tpu.memory_space<vmem>>, vector<1x8x4xf32>
    %501 = vector.shape_cast %500 : vector<1x8x4xf32> to vector<8x4xf32>
    %c5_584 = arith.constant 5 : index
    %c0_585 = arith.constant 0 : index
    %c100_586 = arith.constant 100 : index
    %502 = vector.load %arg6[%c5_584, %c0_585, %c100_586] : memref<7x8x128xf32, #tpu.memory_space<vmem>>, vector<1x8x4xf32>
    %503 = vector.shape_cast %502 : vector<1x8x4xf32> to vector<8x4xf32>
    %c6_587 = arith.constant 6 : index
    %c0_588 = arith.constant 0 : index
    %c100_589 = arith.constant 100 : index
    %504 = vector.load %arg6[%c6_587, %c0_588, %c100_589] : memref<7x8x128xf32, #tpu.memory_space<vmem>>, vector<1x8x4xf32>
    %505 = vector.shape_cast %504 : vector<1x8x4xf32> to vector<8x4xf32>
    %506 = tpu.concatenate %493, %495, %497, %499, %501, %503, %505 in 1 : vector<8x4xf32>, vector<8x4xf32>, vector<8x4xf32>, vector<8x4xf32>, vector<8x4xf32>, vector<8x4xf32>, vector<8x4xf32> -> vector<8x28xf32>
    %cst_590 = arith.constant dense<0.000000e+00> : vector<8x8xf32>
    %507 = tpu.matmul %506, %40, %cst_590 {dimension_numbers = #tpu.dot_dimension_numbers<[1], [0], [0], [1], [0, 0, 1, 1], [], []>} : vector<8x28xf32>, vector<28x8xf32>, vector<8x8xf32> -> vector<8x8xf32>
    %508 = vector.broadcast %41 : vector<1x8xf32> to vector<8x8xf32>
    %509 = arith.addf %507, %508 : vector<8x8xf32>
    %c0_591 = arith.constant 0 : index
    %c0_592 = arith.constant 0 : index
    %c104 = arith.constant 104 : index
    %510 = vector.load %arg6[%c0_591, %c0_592, %c104] : memref<7x8x128xf32, #tpu.memory_space<vmem>>, vector<1x8x4xf32>
    %511 = vector.shape_cast %510 : vector<1x8x4xf32> to vector<8x4xf32>
    %c1_593 = arith.constant 1 : index
    %c0_594 = arith.constant 0 : index
    %c104_595 = arith.constant 104 : index
    %512 = vector.load %arg6[%c1_593, %c0_594, %c104_595] : memref<7x8x128xf32, #tpu.memory_space<vmem>>, vector<1x8x4xf32>
    %513 = vector.shape_cast %512 : vector<1x8x4xf32> to vector<8x4xf32>
    %c2_596 = arith.constant 2 : index
    %c0_597 = arith.constant 0 : index
    %c104_598 = arith.constant 104 : index
    %514 = vector.load %arg6[%c2_596, %c0_597, %c104_598] : memref<7x8x128xf32, #tpu.memory_space<vmem>>, vector<1x8x4xf32>
    %515 = vector.shape_cast %514 : vector<1x8x4xf32> to vector<8x4xf32>
    %c3_599 = arith.constant 3 : index
    %c0_600 = arith.constant 0 : index
    %c104_601 = arith.constant 104 : index
    %516 = vector.load %arg6[%c3_599, %c0_600, %c104_601] : memref<7x8x128xf32, #tpu.memory_space<vmem>>, vector<1x8x4xf32>
    %517 = vector.shape_cast %516 : vector<1x8x4xf32> to vector<8x4xf32>
    %c4_602 = arith.constant 4 : index
    %c0_603 = arith.constant 0 : index
    %c104_604 = arith.constant 104 : index
    %518 = vector.load %arg6[%c4_602, %c0_603, %c104_604] : memref<7x8x128xf32, #tpu.memory_space<vmem>>, vector<1x8x4xf32>
    %519 = vector.shape_cast %518 : vector<1x8x4xf32> to vector<8x4xf32>
    %c5_605 = arith.constant 5 : index
    %c0_606 = arith.constant 0 : index
    %c104_607 = arith.constant 104 : index
    %520 = vector.load %arg6[%c5_605, %c0_606, %c104_607] : memref<7x8x128xf32, #tpu.memory_space<vmem>>, vector<1x8x4xf32>
    %521 = vector.shape_cast %520 : vector<1x8x4xf32> to vector<8x4xf32>
    %c6_608 = arith.constant 6 : index
    %c0_609 = arith.constant 0 : index
    %c104_610 = arith.constant 104 : index
    %522 = vector.load %arg6[%c6_608, %c0_609, %c104_610] : memref<7x8x128xf32, #tpu.memory_space<vmem>>, vector<1x8x4xf32>
    %523 = vector.shape_cast %522 : vector<1x8x4xf32> to vector<8x4xf32>
    %524 = tpu.concatenate %511, %513, %515, %517, %519, %521, %523 in 1 : vector<8x4xf32>, vector<8x4xf32>, vector<8x4xf32>, vector<8x4xf32>, vector<8x4xf32>, vector<8x4xf32>, vector<8x4xf32> -> vector<8x28xf32>
    %cst_611 = arith.constant dense<0.000000e+00> : vector<8x8xf32>
    %525 = tpu.matmul %524, %40, %cst_611 {dimension_numbers = #tpu.dot_dimension_numbers<[1], [0], [0], [1], [0, 0, 1, 1], [], []>} : vector<8x28xf32>, vector<28x8xf32>, vector<8x8xf32> -> vector<8x8xf32>
    %526 = vector.broadcast %41 : vector<1x8xf32> to vector<8x8xf32>
    %527 = arith.addf %525, %526 : vector<8x8xf32>
    %c0_612 = arith.constant 0 : index
    %c0_613 = arith.constant 0 : index
    %c108 = arith.constant 108 : index
    %528 = vector.load %arg6[%c0_612, %c0_613, %c108] : memref<7x8x128xf32, #tpu.memory_space<vmem>>, vector<1x8x4xf32>
    %529 = vector.shape_cast %528 : vector<1x8x4xf32> to vector<8x4xf32>
    %c1_614 = arith.constant 1 : index
    %c0_615 = arith.constant 0 : index
    %c108_616 = arith.constant 108 : index
    %530 = vector.load %arg6[%c1_614, %c0_615, %c108_616] : memref<7x8x128xf32, #tpu.memory_space<vmem>>, vector<1x8x4xf32>
    %531 = vector.shape_cast %530 : vector<1x8x4xf32> to vector<8x4xf32>
    %c2_617 = arith.constant 2 : index
    %c0_618 = arith.constant 0 : index
    %c108_619 = arith.constant 108 : index
    %532 = vector.load %arg6[%c2_617, %c0_618, %c108_619] : memref<7x8x128xf32, #tpu.memory_space<vmem>>, vector<1x8x4xf32>
    %533 = vector.shape_cast %532 : vector<1x8x4xf32> to vector<8x4xf32>
    %c3_620 = arith.constant 3 : index
    %c0_621 = arith.constant 0 : index
    %c108_622 = arith.constant 108 : index
    %534 = vector.load %arg6[%c3_620, %c0_621, %c108_622] : memref<7x8x128xf32, #tpu.memory_space<vmem>>, vector<1x8x4xf32>
    %535 = vector.shape_cast %534 : vector<1x8x4xf32> to vector<8x4xf32>
    %c4_623 = arith.constant 4 : index
    %c0_624 = arith.constant 0 : index
    %c108_625 = arith.constant 108 : index
    %536 = vector.load %arg6[%c4_623, %c0_624, %c108_625] : memref<7x8x128xf32, #tpu.memory_space<vmem>>, vector<1x8x4xf32>
    %537 = vector.shape_cast %536 : vector<1x8x4xf32> to vector<8x4xf32>
    %c5_626 = arith.constant 5 : index
    %c0_627 = arith.constant 0 : index
    %c108_628 = arith.constant 108 : index
    %538 = vector.load %arg6[%c5_626, %c0_627, %c108_628] : memref<7x8x128xf32, #tpu.memory_space<vmem>>, vector<1x8x4xf32>
    %539 = vector.shape_cast %538 : vector<1x8x4xf32> to vector<8x4xf32>
    %c6_629 = arith.constant 6 : index
    %c0_630 = arith.constant 0 : index
    %c108_631 = arith.constant 108 : index
    %540 = vector.load %arg6[%c6_629, %c0_630, %c108_631] : memref<7x8x128xf32, #tpu.memory_space<vmem>>, vector<1x8x4xf32>
    %541 = vector.shape_cast %540 : vector<1x8x4xf32> to vector<8x4xf32>
    %542 = tpu.concatenate %529, %531, %533, %535, %537, %539, %541 in 1 : vector<8x4xf32>, vector<8x4xf32>, vector<8x4xf32>, vector<8x4xf32>, vector<8x4xf32>, vector<8x4xf32>, vector<8x4xf32> -> vector<8x28xf32>
    %cst_632 = arith.constant dense<0.000000e+00> : vector<8x8xf32>
    %543 = tpu.matmul %542, %40, %cst_632 {dimension_numbers = #tpu.dot_dimension_numbers<[1], [0], [0], [1], [0, 0, 1, 1], [], []>} : vector<8x28xf32>, vector<28x8xf32>, vector<8x8xf32> -> vector<8x8xf32>
    %544 = vector.broadcast %41 : vector<1x8xf32> to vector<8x8xf32>
    %545 = arith.addf %543, %544 : vector<8x8xf32>
    %c0_633 = arith.constant 0 : index
    %c0_634 = arith.constant 0 : index
    %c112 = arith.constant 112 : index
    %546 = vector.load %arg6[%c0_633, %c0_634, %c112] : memref<7x8x128xf32, #tpu.memory_space<vmem>>, vector<1x8x4xf32>
    %547 = vector.shape_cast %546 : vector<1x8x4xf32> to vector<8x4xf32>
    %c1_635 = arith.constant 1 : index
    %c0_636 = arith.constant 0 : index
    %c112_637 = arith.constant 112 : index
    %548 = vector.load %arg6[%c1_635, %c0_636, %c112_637] : memref<7x8x128xf32, #tpu.memory_space<vmem>>, vector<1x8x4xf32>
    %549 = vector.shape_cast %548 : vector<1x8x4xf32> to vector<8x4xf32>
    %c2_638 = arith.constant 2 : index
    %c0_639 = arith.constant 0 : index
    %c112_640 = arith.constant 112 : index
    %550 = vector.load %arg6[%c2_638, %c0_639, %c112_640] : memref<7x8x128xf32, #tpu.memory_space<vmem>>, vector<1x8x4xf32>
    %551 = vector.shape_cast %550 : vector<1x8x4xf32> to vector<8x4xf32>
    %c3_641 = arith.constant 3 : index
    %c0_642 = arith.constant 0 : index
    %c112_643 = arith.constant 112 : index
    %552 = vector.load %arg6[%c3_641, %c0_642, %c112_643] : memref<7x8x128xf32, #tpu.memory_space<vmem>>, vector<1x8x4xf32>
    %553 = vector.shape_cast %552 : vector<1x8x4xf32> to vector<8x4xf32>
    %c4_644 = arith.constant 4 : index
    %c0_645 = arith.constant 0 : index
    %c112_646 = arith.constant 112 : index
    %554 = vector.load %arg6[%c4_644, %c0_645, %c112_646] : memref<7x8x128xf32, #tpu.memory_space<vmem>>, vector<1x8x4xf32>
    %555 = vector.shape_cast %554 : vector<1x8x4xf32> to vector<8x4xf32>
    %c5_647 = arith.constant 5 : index
    %c0_648 = arith.constant 0 : index
    %c112_649 = arith.constant 112 : index
    %556 = vector.load %arg6[%c5_647, %c0_648, %c112_649] : memref<7x8x128xf32, #tpu.memory_space<vmem>>, vector<1x8x4xf32>
    %557 = vector.shape_cast %556 : vector<1x8x4xf32> to vector<8x4xf32>
    %c6_650 = arith.constant 6 : index
    %c0_651 = arith.constant 0 : index
    %c112_652 = arith.constant 112 : index
    %558 = vector.load %arg6[%c6_650, %c0_651, %c112_652] : memref<7x8x128xf32, #tpu.memory_space<vmem>>, vector<1x8x4xf32>
    %559 = vector.shape_cast %558 : vector<1x8x4xf32> to vector<8x4xf32>
    %560 = tpu.concatenate %547, %549, %551, %553, %555, %557, %559 in 1 : vector<8x4xf32>, vector<8x4xf32>, vector<8x4xf32>, vector<8x4xf32>, vector<8x4xf32>, vector<8x4xf32>, vector<8x4xf32> -> vector<8x28xf32>
    %cst_653 = arith.constant dense<0.000000e+00> : vector<8x8xf32>
    %561 = tpu.matmul %560, %40, %cst_653 {dimension_numbers = #tpu.dot_dimension_numbers<[1], [0], [0], [1], [0, 0, 1, 1], [], []>} : vector<8x28xf32>, vector<28x8xf32>, vector<8x8xf32> -> vector<8x8xf32>
    %562 = vector.broadcast %41 : vector<1x8xf32> to vector<8x8xf32>
    %563 = arith.addf %561, %562 : vector<8x8xf32>
    %c0_654 = arith.constant 0 : index
    %c0_655 = arith.constant 0 : index
    %c116 = arith.constant 116 : index
    %564 = vector.load %arg6[%c0_654, %c0_655, %c116] : memref<7x8x128xf32, #tpu.memory_space<vmem>>, vector<1x8x4xf32>
    %565 = vector.shape_cast %564 : vector<1x8x4xf32> to vector<8x4xf32>
    %c1_656 = arith.constant 1 : index
    %c0_657 = arith.constant 0 : index
    %c116_658 = arith.constant 116 : index
    %566 = vector.load %arg6[%c1_656, %c0_657, %c116_658] : memref<7x8x128xf32, #tpu.memory_space<vmem>>, vector<1x8x4xf32>
    %567 = vector.shape_cast %566 : vector<1x8x4xf32> to vector<8x4xf32>
    %c2_659 = arith.constant 2 : index
    %c0_660 = arith.constant 0 : index
    %c116_661 = arith.constant 116 : index
    %568 = vector.load %arg6[%c2_659, %c0_660, %c116_661] : memref<7x8x128xf32, #tpu.memory_space<vmem>>, vector<1x8x4xf32>
    %569 = vector.shape_cast %568 : vector<1x8x4xf32> to vector<8x4xf32>
    %c3_662 = arith.constant 3 : index
    %c0_663 = arith.constant 0 : index
    %c116_664 = arith.constant 116 : index
    %570 = vector.load %arg6[%c3_662, %c0_663, %c116_664] : memref<7x8x128xf32, #tpu.memory_space<vmem>>, vector<1x8x4xf32>
    %571 = vector.shape_cast %570 : vector<1x8x4xf32> to vector<8x4xf32>
    %c4_665 = arith.constant 4 : index
    %c0_666 = arith.constant 0 : index
    %c116_667 = arith.constant 116 : index
    %572 = vector.load %arg6[%c4_665, %c0_666, %c116_667] : memref<7x8x128xf32, #tpu.memory_space<vmem>>, vector<1x8x4xf32>
    %573 = vector.shape_cast %572 : vector<1x8x4xf32> to vector<8x4xf32>
    %c5_668 = arith.constant 5 : index
    %c0_669 = arith.constant 0 : index
    %c116_670 = arith.constant 116 : index
    %574 = vector.load %arg6[%c5_668, %c0_669, %c116_670] : memref<7x8x128xf32, #tpu.memory_space<vmem>>, vector<1x8x4xf32>
    %575 = vector.shape_cast %574 : vector<1x8x4xf32> to vector<8x4xf32>
    %c6_671 = arith.constant 6 : index
    %c0_672 = arith.constant 0 : index
    %c116_673 = arith.constant 116 : index
    %576 = vector.load %arg6[%c6_671, %c0_672, %c116_673] : memref<7x8x128xf32, #tpu.memory_space<vmem>>, vector<1x8x4xf32>
    %577 = vector.shape_cast %576 : vector<1x8x4xf32> to vector<8x4xf32>
    %578 = tpu.concatenate %565, %567, %569, %571, %573, %575, %577 in 1 : vector<8x4xf32>, vector<8x4xf32>, vector<8x4xf32>, vector<8x4xf32>, vector<8x4xf32>, vector<8x4xf32>, vector<8x4xf32> -> vector<8x28xf32>
    %cst_674 = arith.constant dense<0.000000e+00> : vector<8x8xf32>
    %579 = tpu.matmul %578, %40, %cst_674 {dimension_numbers = #tpu.dot_dimension_numbers<[1], [0], [0], [1], [0, 0, 1, 1], [], []>} : vector<8x28xf32>, vector<28x8xf32>, vector<8x8xf32> -> vector<8x8xf32>
    %580 = vector.broadcast %41 : vector<1x8xf32> to vector<8x8xf32>
    %581 = arith.addf %579, %580 : vector<8x8xf32>
    %c0_675 = arith.constant 0 : index
    %c0_676 = arith.constant 0 : index
    %c120 = arith.constant 120 : index
    %582 = vector.load %arg6[%c0_675, %c0_676, %c120] : memref<7x8x128xf32, #tpu.memory_space<vmem>>, vector<1x8x4xf32>
    %583 = vector.shape_cast %582 : vector<1x8x4xf32> to vector<8x4xf32>
    %c1_677 = arith.constant 1 : index
    %c0_678 = arith.constant 0 : index
    %c120_679 = arith.constant 120 : index
    %584 = vector.load %arg6[%c1_677, %c0_678, %c120_679] : memref<7x8x128xf32, #tpu.memory_space<vmem>>, vector<1x8x4xf32>
    %585 = vector.shape_cast %584 : vector<1x8x4xf32> to vector<8x4xf32>
    %c2_680 = arith.constant 2 : index
    %c0_681 = arith.constant 0 : index
    %c120_682 = arith.constant 120 : index
    %586 = vector.load %arg6[%c2_680, %c0_681, %c120_682] : memref<7x8x128xf32, #tpu.memory_space<vmem>>, vector<1x8x4xf32>
    %587 = vector.shape_cast %586 : vector<1x8x4xf32> to vector<8x4xf32>
    %c3_683 = arith.constant 3 : index
    %c0_684 = arith.constant 0 : index
    %c120_685 = arith.constant 120 : index
    %588 = vector.load %arg6[%c3_683, %c0_684, %c120_685] : memref<7x8x128xf32, #tpu.memory_space<vmem>>, vector<1x8x4xf32>
    %589 = vector.shape_cast %588 : vector<1x8x4xf32> to vector<8x4xf32>
    %c4_686 = arith.constant 4 : index
    %c0_687 = arith.constant 0 : index
    %c120_688 = arith.constant 120 : index
    %590 = vector.load %arg6[%c4_686, %c0_687, %c120_688] : memref<7x8x128xf32, #tpu.memory_space<vmem>>, vector<1x8x4xf32>
    %591 = vector.shape_cast %590 : vector<1x8x4xf32> to vector<8x4xf32>
    %c5_689 = arith.constant 5 : index
    %c0_690 = arith.constant 0 : index
    %c120_691 = arith.constant 120 : index
    %592 = vector.load %arg6[%c5_689, %c0_690, %c120_691] : memref<7x8x128xf32, #tpu.memory_space<vmem>>, vector<1x8x4xf32>
    %593 = vector.shape_cast %592 : vector<1x8x4xf32> to vector<8x4xf32>
    %c6_692 = arith.constant 6 : index
    %c0_693 = arith.constant 0 : index
    %c120_694 = arith.constant 120 : index
    %594 = vector.load %arg6[%c6_692, %c0_693, %c120_694] : memref<7x8x128xf32, #tpu.memory_space<vmem>>, vector<1x8x4xf32>
    %595 = vector.shape_cast %594 : vector<1x8x4xf32> to vector<8x4xf32>
    %596 = tpu.concatenate %583, %585, %587, %589, %591, %593, %595 in 1 : vector<8x4xf32>, vector<8x4xf32>, vector<8x4xf32>, vector<8x4xf32>, vector<8x4xf32>, vector<8x4xf32>, vector<8x4xf32> -> vector<8x28xf32>
    %cst_695 = arith.constant dense<0.000000e+00> : vector<8x8xf32>
    %597 = tpu.matmul %596, %40, %cst_695 {dimension_numbers = #tpu.dot_dimension_numbers<[1], [0], [0], [1], [0, 0, 1, 1], [], []>} : vector<8x28xf32>, vector<28x8xf32>, vector<8x8xf32> -> vector<8x8xf32>
    %598 = vector.broadcast %41 : vector<1x8xf32> to vector<8x8xf32>
    %599 = arith.addf %597, %598 : vector<8x8xf32>
    %c0_696 = arith.constant 0 : index
    %c0_697 = arith.constant 0 : index
    %c124 = arith.constant 124 : index
    %600 = vector.load %arg6[%c0_696, %c0_697, %c124] : memref<7x8x128xf32, #tpu.memory_space<vmem>>, vector<1x8x4xf32>
    %601 = vector.shape_cast %600 : vector<1x8x4xf32> to vector<8x4xf32>
    %c1_698 = arith.constant 1 : index
    %c0_699 = arith.constant 0 : index
    %c124_700 = arith.constant 124 : index
    %602 = vector.load %arg6[%c1_698, %c0_699, %c124_700] : memref<7x8x128xf32, #tpu.memory_space<vmem>>, vector<1x8x4xf32>
    %603 = vector.shape_cast %602 : vector<1x8x4xf32> to vector<8x4xf32>
    %c2_701 = arith.constant 2 : index
    %c0_702 = arith.constant 0 : index
    %c124_703 = arith.constant 124 : index
    %604 = vector.load %arg6[%c2_701, %c0_702, %c124_703] : memref<7x8x128xf32, #tpu.memory_space<vmem>>, vector<1x8x4xf32>
    %605 = vector.shape_cast %604 : vector<1x8x4xf32> to vector<8x4xf32>
    %c3_704 = arith.constant 3 : index
    %c0_705 = arith.constant 0 : index
    %c124_706 = arith.constant 124 : index
    %606 = vector.load %arg6[%c3_704, %c0_705, %c124_706] : memref<7x8x128xf32, #tpu.memory_space<vmem>>, vector<1x8x4xf32>
    %607 = vector.shape_cast %606 : vector<1x8x4xf32> to vector<8x4xf32>
    %c4_707 = arith.constant 4 : index
    %c0_708 = arith.constant 0 : index
    %c124_709 = arith.constant 124 : index
    %608 = vector.load %arg6[%c4_707, %c0_708, %c124_709] : memref<7x8x128xf32, #tpu.memory_space<vmem>>, vector<1x8x4xf32>
    %609 = vector.shape_cast %608 : vector<1x8x4xf32> to vector<8x4xf32>
    %c5_710 = arith.constant 5 : index
    %c0_711 = arith.constant 0 : index
    %c124_712 = arith.constant 124 : index
    %610 = vector.load %arg6[%c5_710, %c0_711, %c124_712] : memref<7x8x128xf32, #tpu.memory_space<vmem>>, vector<1x8x4xf32>
    %611 = vector.shape_cast %610 : vector<1x8x4xf32> to vector<8x4xf32>
    %c6_713 = arith.constant 6 : index
    %c0_714 = arith.constant 0 : index
    %c124_715 = arith.constant 124 : index
    %612 = vector.load %arg6[%c6_713, %c0_714, %c124_715] : memref<7x8x128xf32, #tpu.memory_space<vmem>>, vector<1x8x4xf32>
    %613 = vector.shape_cast %612 : vector<1x8x4xf32> to vector<8x4xf32>
    %614 = tpu.concatenate %601, %603, %605, %607, %609, %611, %613 in 1 : vector<8x4xf32>, vector<8x4xf32>, vector<8x4xf32>, vector<8x4xf32>, vector<8x4xf32>, vector<8x4xf32>, vector<8x4xf32> -> vector<8x28xf32>
    %cst_716 = arith.constant dense<0.000000e+00> : vector<8x8xf32>
    %615 = tpu.matmul %614, %40, %cst_716 {dimension_numbers = #tpu.dot_dimension_numbers<[1], [0], [0], [1], [0, 0, 1, 1], [], []>} : vector<8x28xf32>, vector<28x8xf32>, vector<8x8xf32> -> vector<8x8xf32>
    %616 = vector.broadcast %41 : vector<1x8xf32> to vector<8x8xf32>
    %617 = arith.addf %615, %616 : vector<8x8xf32>
    %618 = tpu.concatenate %59, %77, %95, %113, %131, %149, %167, %185, %203, %221, %239, %257, %275, %293, %311, %329 in 1 : vector<8x8xf32>, vector<8x8xf32>, vector<8x8xf32>, vector<8x8xf32>, vector<8x8xf32>, vector<8x8xf32>, vector<8x8xf32>, vector<8x8xf32>, vector<8x8xf32>, vector<8x8xf32>, vector<8x8xf32>, vector<8x8xf32>, vector<8x8xf32>, vector<8x8xf32>, vector<8x8xf32>, vector<8x8xf32> -> vector<8x128xf32>
    %619 = tpu.concatenate %347, %365, %383, %401, %419, %437, %455, %473, %491, %509, %527, %545, %563, %581, %599, %617 in 1 : vector<8x8xf32>, vector<8x8xf32>, vector<8x8xf32>, vector<8x8xf32>, vector<8x8xf32>, vector<8x8xf32>, vector<8x8xf32>, vector<8x8xf32>, vector<8x8xf32>, vector<8x8xf32>, vector<8x8xf32>, vector<8x8xf32>, vector<8x8xf32>, vector<8x8xf32>, vector<8x8xf32>, vector<8x8xf32> -> vector<8x128xf32>
    %620 = tpu.concatenate %618, %619 in 1 : vector<8x128xf32>, vector<8x128xf32> -> vector<8x256xf32>
    %c0_717 = arith.constant 0 : index
    %c0_718 = arith.constant 0 : index
    %621 = vector.load %arg5[%c0_717, %c0_718] : memref<8x256xf32, #tpu.memory_space<vmem>>, vector<8x256xf32>
    tpu.vector_store %arg5[%c0_717, %c0_718], %620 {strides = array<i32>} : memref<8x256xf32, #tpu.memory_space<vmem>>, vector<8x256xf32>,
    return
  }
  func.func @transform_0(%arg0: i32) -> (i32, i32) {
    %c0_i32 = arith.constant 0 : i32
    %c0_i32_0 = arith.constant 0 : i32
    return %c0_i32, %arg0 : i32, i32
  }
  func.func @transform_1(%arg0: i32) -> (i32, i32, i32) {
    %c0_i32 = arith.constant 0 : i32
    %c0_i32_0 = arith.constant 0 : i32
    %c0_i32_1 = arith.constant 0 : i32
    %c0_i32_2 = arith.constant 0 : i32
    return %c0_i32, %c0_i32_0, %c0_i32_1 : i32, i32, i32
  }
  func.func @transform_2(%arg0: i32) -> (i32, i32) {
    %c0_i32 = arith.constant 0 : i32
    %c0_i32_0 = arith.constant 0 : i32
    %c0_i32_1 = arith.constant 0 : i32
    return %c0_i32, %c0_i32_0 : i32, i32
  }
  func.func @transform_3(%arg0: i32) -> (i32, i32) {
    %c0_i32 = arith.constant 0 : i32
    %c0_i32_0 = arith.constant 0 : i32
    %c0_i32_1 = arith.constant 0 : i32
    return %c0_i32, %c0_i32_0 : i32, i32
  }
  func.func @transform_4(%arg0: i32) -> (i32, i32) {
    %c0_i32 = arith.constant 0 : i32
    %c0_i32_0 = arith.constant 0 : i32
    return %c0_i32, %arg0 : i32, i32
  }
}

</mosaic_0001>

<bundles_post_ra>
// kernel: gcn_forward.1
= control target key start
LH: loop header
LB: loop body
LE: loop exit
PB: predicated region body
PF: predicated region fallthrough
CT: control target
= control target key end

     0   :  { %vm20_vm0 = vcmask 64512   ;;  %v6430_v0 = vmov 0.0   ;;  %vm4527_vm1 = vmmov 0   ;;  %s4528_s19 = smov 124   ;;  %s4529_s21 = smov 100   ;;  %vm535_vm2 = vcmask 1043456   ;;  %s6421_s0 = inlined_call_operand.vmem [shape: f32[8,128], index: 0, kind: input, shape index: {}]   ;;  %s6422_s1 = inlined_call_operand.vmem [shape: f32[3,8,8], index: 1, kind: input, shape index: {}]   ;;  %s6423_s2 = inlined_call_operand.vmem [shape: f32[28,8], index: 2, kind: input, shape index: {}]   ;;  %s6424_s3 = inlined_call_operand.vmem [shape: f32[1,8], index: 3, kind: input, shape index: {}]   ;;  %s6425_s4 = inlined_call_operand.vmem [shape: f32[8,256], index: 4, kind: output, shape index: {}]  }
   0x1   :  { %4107 = vmatprep.subr.mxu0 %v6430_v0  ;;  %v4588_v1 = vld [vmem:[%s6421_s0] sm:$0xff]  ;;  %4109 = vmatprep.mubr.msk.f32.mxu0 %vm4527_vm1, %v6430_v0  ;;  %v4609_v3 = vld [vmem:[%s6422_s1 + $0x8] sm:$0xff]  ;;  %s4530_s22 = smov 120   ;;  %v4627_v4 = vld [vmem:[%s6422_s1 + $0x10] sm:$0xff]  ;;  %s4531_s25 = smov 96   ;;  %vm514_vm3 = vcmask 31744  }
   0x2   :  { %v4595_v2 = vld [vmem:[%s6422_s1] sm:$0xff]  ;;  %4108 = vmatpush3.msra.mxu0 %v4588_v1  ;;  %610 = vrot.lane.b32.xlu0 %v4588_v1, %s4528_s19  ;;  %s4532_s26 = smov 116   ;;  %s4533_s27 = smov 88   ;;  %vm517_vm4 = vcmask 97280   ;;  %vm519_vm5 = vcmask 130048   ;;  %vm521_vm6 = vcmask 162816  }
   0x3   :  { %4110 = vmatmul.mubr.msk.f32.vlgmr.msra.gmra.mxu0 %vm20_vm0, %v4595_v2  ;;  %4117 = vmatprep.subr.mxu0 %v6430_v0  ;;  %s4534_s1 = smov 112   ;;  %s4535_s28 = smov 80   ;;  %vm531_vm7 = vcmask 228352   ;;  %vm523_vm8 = vcmask 195584   ;;  %vm3755_vm9 = vcmask 261120   ;;  %vm3757_vm10 = vcmask 326656  }
   0x4   :  { %4118 = vmatpush3.msra.mxu0 %v4588_v1  ;;  %4119 = vmatprep.mubr.msk.f32.mxu0 %vm4527_vm1, %v6430_v0  ;;  %s4536_s29 = smov 108   ;;  %s6436_s30 = smov 72   ;;  %vm3759_vm11 = vcmask 392192   ;;  %vm3761_vm12 = vcmask 457728   ;;  %vm3763_vm13 = vcmask 523264   ;;  %vm3765_vm14 = vcmask 588800  }
   0x5   :  { %4127 = vmatprep.subr.mxu0 %v6430_v0  ;;  %1192 = vrot.lane.b32.xlu1 %v4588_v1, %s4529_s21  ;;  %s4538_s5 = smov 104   ;;  %s6434_s6 = smov 64   ;;  %vm3767_vm15 = vcmask 654336  }
   0x6   :  { %707 = vrot.lane.b32.xlu0 %v4588_v1, %s4530_s22  ;;  %4112 = vmatprep.subr.mxu1 %v6430_v0  ;;  %s4540_s7 = smov 92   ;;  %s6432_s8 = smov 56  }
   0x7   :  { %4120 = vmatmul.mubr.msk.f32.vlgmr.msra.gmra.mxu0 %vm20_vm0, %v4609_v3  ;;  %4114 = vmatprep.mubr.msk.f32.mxu1 %vm4527_vm1, %v6430_v0  ;;  %s4542_s9 = smov 84   ;;  %s6438_s10 = smov 48  }
   0x8   :  { %4128 = vmatpush3.msra.mxu0 %v4588_v1  ;;  %4129 = vmatprep.mubr.msk.f32.mxu0 %vm4527_vm1, %v6430_v0  ;;  %s4544_s11 = smov 76   ;;  %s4545_s12 = smov 40  }
   0x9   :  { %1292 = vrot.lane.b32.xlu1 %v4588_v1, %s4531_s25  ;;  %4137 = vmatprep.subr.mxu0 %v6430_v0  ;;  %s4546_s13 = smov 68   ;;  %s6426_s14 = smov 32  }
   0xa   :  { %804 = vrot.lane.b32.xlu0 %v4588_v1, %s4532_s26  ;;  %s4548_s15 = smov 60   ;;  %s4549_s16 = smov 52  }
   0xb   :  { %4130 = vmatmul.mubr.msk.f32.vlgmr.msra.gmra.mxu0 %vm20_vm0, %v4627_v4  ;;  %s6440_s17 = smov 44   ;;  %s6428_s18 = smov 36  }
   0xc   :  { %4145 = vmatprep.mubr.msk.f32.mxu0 %vm4527_vm1, %v6430_v0  ;;  %s4552_s0 = smov 28   ;;  %s4553_s20 = smov 4  }
   0xd   :  { %1492 = vrot.lane.b32.xlu1 %v4588_v1, %s4533_s27  ;;  %s4554_s23 = smov 8   ;;  %s4555_s24 = smov 12  }
   0xe   :  { %901 = vrot.lane.b32.xlu0 %v4588_v1, %s4534_s1 }
  0x11   :  { %1692 = vrot.lane.b32.xlu1 %v4588_v1, %s4535_s28 }
  0x12   :  { %998 = vrot.lane.b32.xlu0 %v4588_v1, %s4536_s29 }
  0x15   :  { %1892 = vrot.lane.b32.xlu1 %v4588_v1, %s6436_s30 }
  0x16   :  { %1095 = vrot.lane.b32.xlu0 %v4588_v1, %s4538_s5 }
  0x19   :  { %2092 = vrot.lane.b32.xlu1 %v4588_v1, %s6434_s6 }
  0x1a   :  { %1392 = vrot.lane.b32.xlu0 %v4588_v1, %s4540_s7 }
  0x1d   :  { %2292 = vrot.lane.b32.xlu1 %v4588_v1, %s6432_s8 }
  0x1e   :  { %1592 = vrot.lane.b32.xlu0 %v4588_v1, %s4542_s9 }
  0x21   :  { %2492 = vrot.lane.b32.xlu1 %v4588_v1, %s6438_s10 }
  0x22   :  { %1792 = vrot.lane.b32.xlu0 %v4588_v1, %s4544_s11 }
  0x25   :  { %2692 = vrot.lane.b32.xlu1 %v4588_v1, %s4545_s12 }
  0x26   :  { %1992 = vrot.lane.b32.xlu0 %v4588_v1, %s4546_s13 }
  0x29   :  { %2892 = vrot.lane.b32.xlu1 %v4588_v1, %s6426_s14  ;;  %s4556_s14 = smov 20  }
  0x2a   :  { %2192 = vrot.lane.b32.xlu0 %v4588_v1, %s4548_s15 }
  0x2e   :  { %2392 = vrot.lane.b32.xlu0 %v4588_v1, %s4549_s16 }
  0x32   :  { %2592 = vrot.lane.b32.xlu0 %v4588_v1, %s6440_s17 }
  0x36   :  { %2792 = vrot.lane.b32.xlu0 %v4588_v1, %s6428_s18 }
  0x3a   :  { %2992 = vrot.lane.b32.xlu0 %v4588_v1, %s4552_s0 }
  0x74   :  { %v4730_v11 = vpop.permute.xlu0 %610 }
  0x77   :  { %v4768_v16 = vpop.permute.xlu1 %1192 }
  0x78   :  { %v4736_v12 = vpop.permute.xlu0 %707 }
  0x7b   :  { %v4780_v18 = vpop.permute.xlu1 %1292 }
  0x7c   :  { %v4746_v13 = vpop.permute.xlu0 %804 }
  0x7f   :  { %v4788_v20 = vpop.permute.xlu1 %1492 }
  0x80   :  { %v4752_v14 = vpop.permute.xlu0 %901  ;;  %6443 = vst [vmem:[#allocation4_spill] sm:$0xff] %v4788_v20 }
  0x83   :  { %v4800_v22 = vpop.permute.xlu1 %1692 }
  0x84   :  { %v4762_v15 = vpop.permute.xlu0 %998  ;;  %6445 = vst [vmem:[#allocation6_spill] sm:$0xff] %v4800_v22 }
  0x87   :  { %v4808_v24 = vpop.permute.xlu1 %1892 }
  0x88   :  { %v4770_v17 = vpop.permute.xlu0 %1095  ;;  %6447 = vst [vmem:[#allocation8_spill] sm:$0xff] %v4808_v24 }
  0x8b   :  { %v4820_v26 = vpop.permute.xlu1 %2092 }
  0x8c   :  { %v4782_v19 = vpop.permute.xlu0 %1392  ;;  %6449 = vst [vmem:[#allocation10_spill] sm:$0xff] %v4820_v26 }
  0x8d   :  { %6442 = vst [vmem:[#allocation3_spill] sm:$0xff] %v4782_v19 }
  0x8f   :  { %v4828_v28 = vpop.permute.xlu1 %2292 }
  0x90   :  { %v4790_v21 = vpop.permute.xlu0 %1592  ;;  %6451 = vst [vmem:[#allocation12_spill] sm:$0xff] %v4828_v28 }
  0x91   :  { %6444 = vst [vmem:[#allocation5_spill] sm:$0xff] %v4790_v21 }
  0x93   :  { %v4840_v30 = vpop.permute.xlu1 %2492 }
  0x94   :  { %v4802_v23 = vpop.permute.xlu0 %1792  ;;  %6453 = vst [vmem:[#allocation14_spill] sm:$0xff] %v4840_v30 }
  0x95   :  { %6446 = vst [vmem:[#allocation7_spill] sm:$0xff] %v4802_v23 }
  0x97   :  { %v4848_v32 = vpop.permute.xlu1 %2692 }
  0x98   :  { %v4810_v25 = vpop.permute.xlu0 %1992  ;;  %6455 = vst [vmem:[#allocation16_spill] sm:$0xff] %v4848_v32 }
  0x99   :  { %6448 = vst [vmem:[#allocation9_spill] sm:$0xff] %v4810_v25 }
  0x9b   :  { %v4860_v34 = vpop.permute.xlu1 %2892 }
  0x9c   :  { %v4822_v27 = vpop.permute.xlu0 %2192  ;;  %6457 = vst [vmem:[#allocation18_spill] sm:$0xff] %v4860_v34 }
  0x9d   :  { %6450 = vst [vmem:[#allocation11_spill] sm:$0xff] %v4822_v27 }
  0xa0   :  { %v4830_v29 = vpop.permute.xlu0 %2392 }
  0xa1   :  { %6452 = vst [vmem:[#allocation13_spill] sm:$0xff] %v4830_v29 }
  0xa4   :  { %v4842_v31 = vpop.permute.xlu0 %2592 }
  0xa5   :  { %6454 = vst [vmem:[#allocation15_spill] sm:$0xff] %v4842_v31 }
  0xa8   :  { %v4850_v33 = vpop.permute.xlu0 %2792 }
  0xa9   :  { %6456 = vst [vmem:[#allocation17_spill] sm:$0xff] %v4850_v33 }
  0xac   :  { %v4862_v35 = vpop.permute.xlu0 %2992 }
  0xad   :  { %6458 = vst [vmem:[#allocation19_spill] sm:$0xff] %v4862_v35 }
  0xc3   :  { %v4678_v5 = vpop.f32.mrf.mxu0 }
  0xc4   :  { %710 = vrot.lane.b32.xlu1 %v4678_v5, %s4528_s19  ;;  %491 = vrot.lane.b32.xlu0 %v4678_v5, %s4553_s20 }
  0xc5   :  { %4113 = vmatpush3.msra.mxu1 %v4678_v5  ;;  %v4111_v6 = vpop.f32.mrf.mxu0 }
  0xc6   :  { %4115 = vmatmul.mubr.msk.f32.vlgmr.msra.gmra.mxu1 %vm20_vm0, %v4595_v2  ;;  %4122 = vmatprep.subr.mxu1 %v6430_v0 }
  0xc7   :  { %v4688_v7 = vpop.f32.mrf.mxu0  ;;  %4124 = vmatprep.mubr.msk.f32.mxu1 %vm4527_vm1, %v6430_v0 }
  0xc8   :  { %807 = vrot.lane.b32.xlu1 %v4678_v5, %s4530_s22  ;;  %1195 = vrot.lane.b32.xlu0 %v4678_v5, %s4538_s5 }
  0xc9   :  { %4123 = vmatpush3.msra.mxu1 %v4688_v7  ;;  %v4121_v8 = vpop.f32.mrf.mxu0 }
  0xca   :  { %4125 = vmatmul.mubr.msk.f32.vlgmr.msra.gmra.mxu1 %vm20_vm0, %v4609_v3  ;;  %4132 = vmatprep.subr.mxu1 %v6430_v0 }
  0xcb   :  { %v4700_v9 = vpop.f32.mrf.mxu0  ;;  %4134 = vmatprep.mubr.msk.f32.mxu1 %vm4527_vm1, %v6430_v0 }
  0xcc   :  { %904 = vrot.lane.b32.xlu1 %v4678_v5, %s4532_s26  ;;  %1295 = vrot.lane.b32.xlu0 %v4678_v5, %s4529_s21 }
  0xcd   :  { %4133 = vmatpush3.msra.mxu1 %v4700_v9  ;;  %v4131_v10 = vpop.f32.mrf.mxu0 }
  0xce   :  { %4135 = vmatmul.mubr.msk.f32.vlgmr.msra.gmra.mxu1 %vm20_vm0, %v4627_v4  ;;  %4148 = vmatprep.subr.mxu1 %v6430_v0 }
  0xcf   :  { %4156 = vmatprep.mubr.msk.f32.mxu1 %vm4527_vm1, %v6430_v0 }
  0xd0   :  { %1001 = vrot.lane.b32.xlu1 %v4678_v5, %s4534_s1  ;;  %1495 = vrot.lane.b32.xlu0 %v4678_v5, %s4540_s7 }
  0xd4   :  { %1098 = vrot.lane.b32.xlu1 %v4678_v5, %s4536_s29  ;;  %1695 = vrot.lane.b32.xlu0 %v4678_v5, %s4542_s9 }
  0xd8   :  { %1395 = vrot.lane.b32.xlu1 %v4678_v5, %s4531_s25  ;;  %1895 = vrot.lane.b32.xlu0 %v4678_v5, %s4544_s11 }
  0xdc   :  { %1595 = vrot.lane.b32.xlu1 %v4678_v5, %s4533_s27  ;;  %2095 = vrot.lane.b32.xlu0 %v4678_v5, %s4546_s13 }
  0xe0   :  { %1795 = vrot.lane.b32.xlu1 %v4678_v5, %s4535_s28  ;;  %2295 = vrot.lane.b32.xlu0 %v4678_v5, %s4548_s15 }
  0xe4   :  { %1995 = vrot.lane.b32.xlu1 %v4678_v5, %s6436_s30  ;;  %2495 = vrot.lane.b32.xlu0 %v4678_v5, %s4549_s16 }
  0xe8   :  { %2195 = vrot.lane.b32.xlu1 %v4678_v5, %s6434_s6  ;;  %2695 = vrot.lane.b32.xlu0 %v4678_v5, %s6440_s17 }
  0xec   :  { %2395 = vrot.lane.b32.xlu1 %v4678_v5, %s6432_s8  ;;  %2895 = vrot.lane.b32.xlu0 %v4678_v5, %s6428_s18  ;;  %s4557_s18 = smov 16  }
  0xf0   :  { %2595 = vrot.lane.b32.xlu1 %v4678_v5, %s6438_s10  ;;  %616 = vrot.lane.b32.xlu0 %v4688_v7, %s4554_s23 }
  0xf4   :  { %2795 = vrot.lane.b32.xlu1 %v4678_v5, %s4545_s12  ;;  %713 = vrot.lane.b32.xlu0 %v4688_v7, %s4553_s20 }
  0xf8   :  { %1201 = vrot.lane.b32.xlu0 %v4688_v7, %s4534_s1  ;;  %499 = vrot.lane.b32.xlu1 %v4688_v7, %s4555_s24 }
  0xfc   :  { %1301 = vrot.lane.b32.xlu0 %v4688_v7, %s4536_s29  ;;  %910 = vrot.lane.b32.xlu1 %v4688_v7, %s4528_s19 }
 0x100   :  { %1501 = vrot.lane.b32.xlu0 %v4688_v7, %s4529_s21  ;;  %1007 = vrot.lane.b32.xlu1 %v4688_v7, %s4530_s22 }
 0x104   :  { %1701 = vrot.lane.b32.xlu0 %v4688_v7, %s4540_s7  ;;  %1104 = vrot.lane.b32.xlu1 %v4688_v7, %s4532_s26 }
 0x108   :  { %1901 = vrot.lane.b32.xlu0 %v4688_v7, %s4542_s9  ;;  %1401 = vrot.lane.b32.xlu1 %v4688_v7, %s4538_s5 }
 0x10c   :  { %2101 = vrot.lane.b32.xlu0 %v4688_v7, %s4544_s11  ;;  %1601 = vrot.lane.b32.xlu1 %v4688_v7, %s4531_s25 }
 0x110   :  { %2301 = vrot.lane.b32.xlu0 %v4688_v7, %s4546_s13  ;;  %1801 = vrot.lane.b32.xlu1 %v4688_v7, %s4533_s27 }
 0x114   :  { %2501 = vrot.lane.b32.xlu0 %v4688_v7, %s4548_s15  ;;  %2001 = vrot.lane.b32.xlu1 %v4688_v7, %s4535_s28 }
 0x118   :  { %2701 = vrot.lane.b32.xlu0 %v4688_v7, %s4549_s16  ;;  %2201 = vrot.lane.b32.xlu1 %v4688_v7, %s6436_s30 }
 0x11c   :  { %2401 = vrot.lane.b32.xlu1 %v4688_v7, %s6434_s6  ;;  %507 = vrot.lane.b32.xlu0 %v4700_v9, %s4556_s14 }
 0x120   :  { %2601 = vrot.lane.b32.xlu1 %v4688_v7, %s6432_s8  ;;  %622 = vrot.lane.b32.xlu0 %v4700_v9, %s4557_s18 }
 0x124   :  { %2801 = vrot.lane.b32.xlu1 %v4688_v7, %s6438_s10  ;;  %719 = vrot.lane.b32.xlu0 %v4700_v9, %s4555_s24 }
 0x128   :  { %1110 = vrot.lane.b32.xlu1 %v4700_v9, %s4528_s19  ;;  %816 = vrot.lane.b32.xlu0 %v4700_v9, %s4554_s23 }
 0x12c   :  { %1207 = vrot.lane.b32.xlu1 %v4700_v9, %s4530_s22  ;;  %913 = vrot.lane.b32.xlu0 %v4700_v9, %s4553_s20 }
 0x130   :  { %1407 = vrot.lane.b32.xlu1 %v4700_v9, %s4534_s1  ;;  %1307 = vrot.lane.b32.xlu0 %v4700_v9, %s4532_s26 }
 0x134   :  { %1607 = vrot.lane.b32.xlu1 %v4700_v9, %s4538_s5  ;;  %1507 = vrot.lane.b32.xlu0 %v4700_v9, %s4536_s29 }
 0x136   :  { %v4868_v36 = vpop.permute.xlu1 %710  ;;  %v4870_v37 = vpop.permute.xlu0 %491 }
 0x138   :  { %1807 = vrot.lane.b32.xlu1 %v4700_v9, %s4531_s25  ;;  %1707 = vrot.lane.b32.xlu0 %v4700_v9, %s4529_s21 }
 0x13a   :  { %v4876_v38 = vpop.permute.xlu1 %807  ;;  %v4878_v39 = vpop.permute.xlu0 %1195 }
 0x13c   :  { %2007 = vrot.lane.b32.xlu1 %v4700_v9, %s4533_s27  ;;  %1907 = vrot.lane.b32.xlu0 %v4700_v9, %s4540_s7 }
 0x13e   :  { %v4884_v40 = vpop.permute.xlu1 %904  ;;  %v4886_v41 = vpop.permute.xlu0 %1295 }
 0x140   :  { %2207 = vrot.lane.b32.xlu1 %v4700_v9, %s4535_s28  ;;  %2107 = vrot.lane.b32.xlu0 %v4700_v9, %s4542_s9 }
 0x142   :  { %v4892_v42 = vpop.permute.xlu1 %1001  ;;  %v4894_v43 = vpop.permute.xlu0 %1495 }
 0x143   :  { %6459 = vst [vmem:[#allocation20_spill] sm:$0xff] %v4894_v43 }
 0x144   :  { %2407 = vrot.lane.b32.xlu1 %v4700_v9, %s6436_s30  ;;  %2307 = vrot.lane.b32.xlu0 %v4700_v9, %s4544_s11 }
 0x146   :  { %v4900_v44 = vpop.permute.xlu1 %1098  ;;  %v4902_v45 = vpop.permute.xlu0 %1695 }
 0x147   :  { %6460 = vst [vmem:[#allocation21_spill] sm:$0xff] %v4902_v45 }
 0x148   :  { %2607 = vrot.lane.b32.xlu1 %v4700_v9, %s6434_s6  ;;  %2507 = vrot.lane.b32.xlu0 %v4700_v9, %s4546_s13 }
 0x14a   :  { %v4908_v46 = vpop.permute.xlu1 %1395  ;;  %v4910_v47 = vpop.permute.xlu0 %1895 }
 0x14b   :  { %6461 = vst [vmem:[#allocation22_spill] sm:$0xff] %v4910_v47 }
 0x14c   :  { %2807 = vrot.lane.b32.xlu1 %v4700_v9, %s6432_s8  ;;  %2707 = vrot.lane.b32.xlu0 %v4700_v9, %s4548_s15 }
 0x14e   :  { %v4916_v48 = vpop.permute.xlu1 %1595  ;;  %v4918_v49 = vpop.permute.xlu0 %2095 }
 0x14f   :  { %6462 = vst [vmem:[#allocation23_spill] sm:$0xff] %v4916_v48  ;;  %6463 = vst [vmem:[#allocation24_spill] sm:$0xff] %v4918_v49 }
 0x152   :  { %v4920_v50 = vpop.permute.xlu1 %1795  ;;  %v4922_v51 = vpop.permute.xlu0 %2295 }
 0x153   :  { %6464 = vst [vmem:[#allocation25_spill] sm:$0xff] %v4920_v50  ;;  %6465 = vst [vmem:[#allocation26_spill] sm:$0xff] %v4922_v51 }
 0x156   :  { %v4924_v52 = vpop.permute.xlu1 %1995  ;;  %v4926_v53 = vpop.permute.xlu0 %2495 }
 0x157   :  { %6466 = vst [vmem:[#allocation27_spill] sm:$0xff] %v4924_v52  ;;  %6467 = vst [vmem:[#allocation28_spill] sm:$0xff] %v4926_v53 }
 0x15a   :  { %v4928_v54 = vpop.permute.xlu1 %2195  ;;  %v4930_v55 = vpop.permute.xlu0 %2695 }
 0x15b   :  { %6468 = vst [vmem:[#allocation29_spill] sm:$0xff] %v4928_v54  ;;  %6469 = vst [vmem:[#allocation30_spill] sm:$0xff] %v4930_v55 }
 0x15e   :  { %v4932_v56 = vpop.permute.xlu1 %2395  ;;  %v4934_v57 = vpop.permute.xlu0 %2895 }
 0x15f   :  { %6470 = vst [vmem:[#allocation31_spill] sm:$0xff] %v4932_v56  ;;  %6471 = vst [vmem:[#allocation32_spill] sm:$0xff] %v4934_v57 }
 0x162   :  { %v4936_v58 = vpop.permute.xlu1 %2595  ;;  %v4938_v59 = vpop.permute.xlu0 %616 }
 0x163   :  { %6472 = vst [vmem:[#allocation33_spill] sm:$0xff] %v4936_v58 }
 0x166   :  { %v4940_v60 = vpop.permute.xlu1 %2795  ;;  %v4942_v61 = vpop.permute.xlu0 %713 }
 0x167   :  { %6473 = vst [vmem:[#allocation34_spill] sm:$0xff] %v4940_v60 }
 0x16a   :  { %v4944_v62 = vpop.permute.xlu0 %1201  ;;  %v4946_v63 = vpop.permute.xlu1 %499 }
 0x16e   :  { %v4948_v2 = vpop.permute.xlu0 %1301  ;;  %v4950_v3 = vpop.permute.xlu1 %910 }
 0x172   :  { %v4952_v4 = vpop.permute.xlu0 %1501  ;;  %v4954_v6 = vpop.permute.xlu1 %1007 }
 0x173   :  { %6474 = vst [vmem:[#allocation35_spill] sm:$0xff] %v4952_v4 }
 0x176   :  { %v4962_v0 = vpop.permute.xlu0 %1701  ;;  %v4964_v35 = vpop.permute.xlu1 %1104 }
 0x177   :  { %6475 = vst [vmem:[#allocation36_spill] sm:$0xff] %v4962_v0 }
 0x17a   :  { %v4974_v60 = vpop.permute.xlu0 %1901  ;;  %v4976_v32 = vpop.permute.xlu1 %1401 }
 0x17b   :  { %6476 = vst [vmem:[#allocation37_spill] sm:$0xff] %v4974_v60  ;;  %6477 = vst [vmem:[#allocation38_spill] sm:$0xff] %v4976_v32 }
 0x17e   :  { %v4988_v55 = vpop.permute.xlu1 %1601 }
 0x17f   :  { %6479 = vst [vmem:[#allocation40_spill] sm:$0xff] %v4988_v55 }
 0x182   :  { %v4996_v58 = vpop.permute.xlu1 %1801 }
 0x183   :  { %6481 = vst [vmem:[#allocation42_spill] sm:$0xff] %v4996_v58  ;;  %v5179_v58 = vld [vmem:[%s6423_s2] sm:$0xff] }
 0x186   :  { %v4956_v8 = vpop.f32.mrf.mxu1  ;;  %v5008_v30 = vpop.permute.xlu1 %2001 }
 0x187   :  { %613 = vrot.lane.b32.xlu1 %v4956_v8, %s4553_s20  ;;  %495 = vrot.lane.b32.xlu0 %v4956_v8, %s4554_s23  ;;  %6483 = vst [vmem:[#allocation44_spill] sm:$0xff] %v5008_v30 }
 0x188   :  { %v4116_v10 = vpop.f32.mrf.mxu1 }
 0x18a   :  { %v4966_v34 = vpop.f32.mrf.mxu1  ;;  %v5016_v29 = vpop.permute.xlu1 %2201 }
 0x18b   :  { %1198 = vrot.lane.b32.xlu1 %v4956_v8, %s4536_s29  ;;  %810 = vrot.lane.b32.xlu0 %v4956_v8, %s4528_s19  ;;  %6485 = vst [vmem:[#allocation46_spill] sm:$0xff] %v5016_v29 }
 0x18c   :  { %v4126_v57 = vpop.f32.mrf.mxu1 }
 0x18d   :  { %v4986_v57 = vpop.permute.xlu0 %2101 }
 0x18e   :  { %v4972_v33 = vpop.f32.mrf.mxu1  ;;  %6478 = vst [vmem:[#allocation39_spill] sm:$0xff] %v4986_v57 }
 0x18f   :  { %1298 = vrot.lane.b32.xlu1 %v4956_v8, %s4538_s5  ;;  %907 = vrot.lane.b32.xlu0 %v4956_v8, %s4530_s22 }
 0x190   :  { %v4136_v10 = vpop.f32.mrf.mxu1 }
 0x191   :  { %v4994_v31 = vpop.permute.xlu0 %2301 }
 0x192   :  { %6480 = vst [vmem:[#allocation41_spill] sm:$0xff] %v4994_v31 }
 0x193   :  { %1398 = vrot.lane.b32.xlu1 %v4956_v8, %s4529_s21  ;;  %1004 = vrot.lane.b32.xlu0 %v4956_v8, %s4532_s26 }
 0x195   :  { %v5006_v10 = vpop.permute.xlu0 %2501 }
 0x196   :  { %6482 = vst [vmem:[#allocation43_spill] sm:$0xff] %v5006_v10  ;;  %v5026_v10 = vpop.permute.xlu1 %2401 }
 0x197   :  { %1498 = vrot.lane.b32.xlu1 %v4956_v8, %s4531_s25  ;;  %1101 = vrot.lane.b32.xlu0 %v4956_v8, %s4534_s1  ;;  %6486 = vst [vmem:[#allocation47_spill] sm:$0xff] %v5026_v10 }
 0x199   :  { %v5014_v53 = vpop.permute.xlu0 %2701 }
 0x19a   :  { %6484 = vst [vmem:[#allocation45_spill] sm:$0xff] %v5014_v53  ;;  %v5034_v53 = vpop.permute.xlu1 %2601 }
 0x19b   :  { %1598 = vrot.lane.b32.xlu1 %v4956_v8, %s4540_s7  ;;  %1010 = vrot.lane.b32.xlu0 %v4966_v34, %s4528_s19  ;;  %6487 = vst [vmem:[#allocation48_spill] sm:$0xff] %v5034_v53 }
 0x19d   :  { %v5028_v56 = vpop.permute.xlu0 %507 }
 0x19e   :  { %v5046_v10 = vpop.permute.xlu1 %2801 }
 0x19f   :  { %1698 = vrot.lane.b32.xlu1 %v4956_v8, %s4533_s27  ;;  %1107 = vrot.lane.b32.xlu0 %v4966_v34, %s4530_s22  ;;  %6488 = vst [vmem:[#allocation49_spill] sm:$0xff] %v5046_v10 }
 0x1a1   :  { %v5036_v31 = vpop.permute.xlu0 %622 }
 0x1a2   :  { %v5054_v53 = vpop.permute.xlu1 %1110 }
 0x1a3   :  { %1798 = vrot.lane.b32.xlu1 %v4956_v8, %s4542_s9  ;;  %1204 = vrot.lane.b32.xlu0 %v4966_v34, %s4532_s26 }
 0x1a5   :  { %v5048_v28 = vpop.permute.xlu0 %719 }
 0x1a6   :  { %v5066_v10 = vpop.permute.xlu1 %1207 }
 0x1a7   :  { %1898 = vrot.lane.b32.xlu1 %v4956_v8, %s4535_s28  ;;  %1304 = vrot.lane.b32.xlu0 %v4966_v34, %s4534_s1 }
 0x1a9   :  { %v5056_v51 = vpop.permute.xlu0 %816 }
 0x1aa   :  { %v5074_v27 = vpop.permute.xlu1 %1407 }
 0x1ab   :  { %1998 = vrot.lane.b32.xlu1 %v4956_v8, %s4544_s11  ;;  %1504 = vrot.lane.b32.xlu0 %v4966_v34, %s4538_s5  ;;  %6489 = vst [vmem:[#allocation50_spill] sm:$0xff] %v5074_v27 }
 0x1ad   :  { %v5068_v29 = vpop.permute.xlu0 %913 }
 0x1ae   :  { %v5086_v57 = vpop.permute.xlu1 %1607 }
 0x1af   :  { %2098 = vrot.lane.b32.xlu1 %v4956_v8, %s6436_s30  ;;  %1704 = vrot.lane.b32.xlu0 %v4966_v34, %s4531_s25  ;;  %6491 = vst [vmem:[#allocation52_spill] sm:$0xff] %v5086_v57 }
 0x1b1   :  { %v5076_v54 = vpop.permute.xlu0 %1307 }
 0x1b2   :  { %6490 = vst [vmem:[#allocation51_spill] sm:$0xff] %v5076_v54  ;;  %v5094_v49 = vpop.permute.xlu1 %1807 }
 0x1b3   :  { %2198 = vrot.lane.b32.xlu1 %v4956_v8, %s4546_s13  ;;  %1904 = vrot.lane.b32.xlu0 %v4966_v34, %s4533_s27  ;;  %6493 = vst [vmem:[#allocation54_spill] sm:$0xff] %v5094_v49 }
 0x1b5   :  { %v5088_v26 = vpop.permute.xlu0 %1507 }
 0x1b6   :  { %6492 = vst [vmem:[#allocation53_spill] sm:$0xff] %v5088_v26  ;;  %v5106_v25 = vpop.permute.xlu1 %2007 }
 0x1b7   :  { %2298 = vrot.lane.b32.xlu1 %v4956_v8, %s6434_s6  ;;  %2104 = vrot.lane.b32.xlu0 %v4966_v34, %s4535_s28  ;;  %6496 = vst [vmem:[#allocation56_spill] sm:$0xff] %v5106_v25 }
 0x1b9   :  { %v5096_v30 = vpop.permute.xlu0 %1707 }
 0x1ba   :  { %6494 = vst [vmem:[#allocation55_spill] sm:$0xff] %v5096_v30  ;;  %v5114_v60 = vpop.permute.xlu1 %2207 }
 0x1bb   :  { %2398 = vrot.lane.b32.xlu1 %v4956_v8, %s4548_s15  ;;  %2304 = vrot.lane.b32.xlu0 %v4966_v34, %s6436_s30  ;;  %6498 = vst [vmem:[#allocation58_spill] sm:$0xff] %v5114_v60  ;;  %v5137_v60 = vld [vmem:[%s6423_s2 + $0x18] sm:$0xf] }
 0x1bc   :  { %4138 = vmatpush3.msk.msra.mxu0 %vm535_vm2, %v5137_v60  ;;  %4149 = vmatpush3.msk.msra.mxu1 %vm535_vm2, %v5137_v60 }
 0x1bd   :  { %v5108_v52 = vpop.permute.xlu0 %1907 }
 0x1be   :  { %6497 = vst [vmem:[#allocation57_spill] sm:$0xff] %v5108_v52  ;;  %v5126_v25 = vpop.permute.xlu1 %2407 }
 0x1bf   :  { %2498 = vrot.lane.b32.xlu1 %v4956_v8, %s6432_s8  ;;  %2504 = vrot.lane.b32.xlu0 %v4966_v34, %s6434_s6  ;;  %6500 = vst [vmem:[#allocation60_spill] sm:$0xff] %v5126_v25  ;;  %v5150_v25 = vld [vmem:[%s6423_s2 + $0x10] sm:$0xff]  ;;  %s4558_s6 = smov 24  }
 0x1c1   :  { %v5116_v49 = vpop.permute.xlu0 %2107 }
 0x1c2   :  { %6499 = vst [vmem:[#allocation59_spill] sm:$0xff] %v5116_v49  ;;  %v5139_v49 = vpop.permute.xlu1 %2607 }
 0x1c3   :  { %2598 = vrot.lane.b32.xlu1 %v4956_v8, %s4549_s16  ;;  %2704 = vrot.lane.b32.xlu0 %v4966_v34, %s6432_s8  ;;  %s6495_s8 = smov 36   ;;  %6502 = vst [vmem:[#allocation62_spill] sm:$0xff] %v5139_v49  ;;  %v6504_v49 = vmov 0.0  }
 0x1c4   :  { %4139 = vmatprep.subr.mxu0 %v6504_v49  ;;  %4150 = vmatprep.subr.mxu1 %v6504_v49 }
 0x1c5   :  { %v5128_v52 = vpop.permute.xlu0 %2307  ;;  %4140 = vmatpush3.msra.mxu0 %v5150_v25  ;;  %4151 = vmatpush3.msra.mxu1 %v5150_v25 }
 0x1c6   :  { %6501 = vst [vmem:[#allocation61_spill] sm:$0xff] %v5128_v52  ;;  %4141 = vmatprep.subr.mxu0 %v6504_v49  ;;  %4152 = vmatprep.subr.mxu1 %v6504_v49  ;;  %v5171_v52 = vpop.permute.xlu1 %2807 }
 0x1c7   :  { %2698 = vrot.lane.b32.xlu1 %v4956_v8, %s6438_s10  ;;  %2901 = vrot.lane.b32.xlu0 %v4688_v7, %s6440_s17  ;;  %6506 = vst [vmem:[#allocation64_spill] sm:$0xff] %v5171_v52 }
 0x1c9   :  { %v5141_v24 = vpop.permute.xlu0 %2507 }
 0x1ca   :  { %6503 = vst [vmem:[#allocation63_spill] sm:$0xff] %v5141_v24  ;;  %v5162_v24 = vld [vmem:[%s6423_s2 + $0x8] sm:$0xff] }
 0x1cb   :  { %2798 = vrot.lane.b32.xlu1 %v4956_v8, %s6440_s17  ;;  %2904 = vrot.lane.b32.xlu0 %v4966_v34, %s6438_s10  ;;  %s6505_s10 = smov 32  }
 0x1cc   :  { %4142 = vmatpush3.msra.mxu0 %v5162_v24  ;;  %4153 = vmatpush3.msra.mxu1 %v5162_v24 }
 0x1cd   :  { %v5173_v47 = vpop.permute.xlu0 %2707  ;;  %4143 = vmatprep.subr.mxu0 %v6504_v49  ;;  %4154 = vmatprep.subr.mxu1 %v6504_v49 }
 0x1ce   :  { %6507 = vst [vmem:[#allocation65_spill] sm:$0xff] %v5173_v47  ;;  %4144 = vmatpush3.msra.mxu0 %v5179_v58  ;;  %4155 = vmatpush3.msra.mxu1 %v5179_v58 }
 0x1cf   :  { %2898 = vrot.lane.b32.xlu1 %v4956_v8, %s4545_s12  ;;  %2907 = vrot.lane.b32.xlu0 %v4700_v9, %s4549_s16 }
 0x1d0   :  { %4159 = vmatprep.subr.mxu0 %v6504_v49  ;;  %4170 = vmatprep.subr.mxu1 %v6504_v49 }
 0x1d3   :  { %503 = vrot.lane.b32.xlu1 %v4966_v34, %s4557_s18  ;;  %3095 = vrot.lane.b32.xlu0 %v4678_v5, %s4552_s0 }
 0x1d7   :  { %619 = vrot.lane.b32.xlu1 %v4966_v34, %s4555_s24  ;;  %3192 = vrot.lane.b32.xlu0 %v4588_v1, %s4556_s14 }
 0x1db   :  { %716 = vrot.lane.b32.xlu1 %v4966_v34, %s4554_s23  ;;  %3101 = vrot.lane.b32.xlu0 %v4688_v7, %s6495_s8 }
 0x1df   :  { %813 = vrot.lane.b32.xlu1 %v4966_v34, %s4553_s20  ;;  %3104 = vrot.lane.b32.xlu0 %v4966_v34, %s4545_s12 }
 0x1e3   :  { %1404 = vrot.lane.b32.xlu1 %v4966_v34, %s4536_s29  ;;  %3107 = vrot.lane.b32.xlu0 %v4700_v9, %s6440_s17 }
 0x1e7   :  { %1604 = vrot.lane.b32.xlu1 %v4966_v34, %s4529_s21  ;;  %3295 = vrot.lane.b32.xlu0 %v4678_v5, %s4556_s14 }
 0x1eb   :  { %1804 = vrot.lane.b32.xlu1 %v4966_v34, %s4540_s7  ;;  %3392 = vrot.lane.b32.xlu0 %v4588_v1, %s4555_s24 }
 0x1ef   :  { %2004 = vrot.lane.b32.xlu1 %v4966_v34, %s4542_s9  ;;  %3301 = vrot.lane.b32.xlu0 %v4688_v7, %s4552_s0 }
 0x1f3   :  { %2204 = vrot.lane.b32.xlu1 %v4966_v34, %s4544_s11  ;;  %3304 = vrot.lane.b32.xlu0 %v4966_v34, %s6505_s10 }
 0x1f7   :  { %2404 = vrot.lane.b32.xlu1 %v4966_v34, %s4546_s13  ;;  %3307 = vrot.lane.b32.xlu0 %v4700_v9, %s6495_s8 }
 0x1f9   :  { %v5190_v52 = vpop.permute.xlu1 %613  ;;  %v5192_v47 = vpop.permute.xlu0 %495 }
 0x1fb   :  { %2604 = vrot.lane.b32.xlu1 %v4966_v34, %s4548_s15  ;;  %1210 = vrot.lane.b32.xlu0 %v4972_v33, %s4528_s19  ;;  %s6521_s19 = smov 44  }
 0x1fd   :  { %v5200_v30 = vpop.permute.xlu1 %1198  ;;  %v5202_v23 = vpop.permute.xlu0 %810 }
 0x1ff   :  { %2804 = vrot.lane.b32.xlu1 %v4966_v34, %s4549_s16  ;;  %1310 = vrot.lane.b32.xlu0 %v4972_v33, %s4530_s22 }
 0x201   :  { %v5208_v50 = vpop.permute.xlu1 %1298  ;;  %v5210_v0 = vpop.permute.xlu0 %907 }
 0x203   :  { %1410 = vrot.lane.b32.xlu0 %v4972_v33, %s4532_s26  ;;  %511 = vrot.lane.b32.xlu1 %v4972_v33, %s4558_s6  ;;  %s6527_s26 = smov 72  }
 0x205   :  { %v5216_v57 = vpop.permute.xlu1 %1398  ;;  %v5218_v22 = vpop.permute.xlu0 %1004 }
 0x206   :  { %6508 = vst [vmem:[#allocation66_spill] sm:$0xff] %v5216_v57 }
 0x207   :  { %1510 = vrot.lane.b32.xlu0 %v4972_v33, %s4534_s1  ;;  %625 = vrot.lane.b32.xlu1 %v4972_v33, %s4556_s14 }
 0x209   :  { %v5224_v45 = vpop.permute.xlu1 %1498  ;;  %v5226_v55 = vpop.permute.xlu0 %1101 }
 0x20a   :  { %6509 = vst [vmem:[#allocation67_spill] sm:$0xff] %v5224_v45 }
 0x20b   :  { %1610 = vrot.lane.b32.xlu0 %v4972_v33, %s4536_s29  ;;  %722 = vrot.lane.b32.xlu1 %v4972_v33, %s4557_s18  ;;  %s6532_s29 = smov 64  }
 0x20d   :  { %v5232_v26 = vpop.permute.xlu1 %1598  ;;  %v5234_v21 = vpop.permute.xlu0 %1010 }
 0x20e   :  { %6510 = vst [vmem:[#allocation68_spill] sm:$0xff] %v5232_v26 }
 0x20f   :  { %1710 = vrot.lane.b32.xlu0 %v4972_v33, %s4538_s5  ;;  %819 = vrot.lane.b32.xlu1 %v4972_v33, %s4555_s24 }
 0x211   :  { %v5240_v48 = vpop.permute.xlu1 %1698  ;;  %v5242_v4 = vpop.permute.xlu0 %1107 }
 0x212   :  { %6511 = vst [vmem:[#allocation69_spill] sm:$0xff] %v5240_v48 }
 0x213   :  { %1810 = vrot.lane.b32.xlu0 %v4972_v33, %s4529_s21  ;;  %916 = vrot.lane.b32.xlu1 %v4972_v33, %s4554_s23  ;;  %s6524_s21 = smov 48  }
 0x215   :  { %v5248_v27 = vpop.permute.xlu1 %1798  ;;  %v5250_v26 = vpop.permute.xlu0 %1204 }
 0x216   :  { %6512 = vst [vmem:[#allocation70_spill] sm:$0xff] %v5248_v27 }
 0x217   :  { %1910 = vrot.lane.b32.xlu0 %v4972_v33, %s4531_s25  ;;  %1013 = vrot.lane.b32.xlu1 %v4972_v33, %s4553_s20 }
 0x219   :  { %v5256_v45 = vpop.permute.xlu1 %1898  ;;  %v5258_v48 = vpop.permute.xlu0 %1304 }
 0x21a   :  { %6513 = vst [vmem:[#allocation71_spill] sm:$0xff] %v5256_v45  ;;  %6514 = vst [vmem:[#allocation72_spill] sm:$0xff] %v5258_v48 }
 0x21b   :  { %2010 = vrot.lane.b32.xlu0 %v4972_v33, %s4540_s7  ;;  %2995 = vrot.lane.b32.xlu1 %v4678_v5, %s6505_s10  ;;  %s6537_s7 = smov 56  }
 0x21d   :  { %v5264_v20 = vpop.permute.xlu1 %1998  ;;  %v5266_v27 = vpop.permute.xlu0 %1504 }
 0x21e   :  { %6515 = vst [vmem:[#allocation73_spill] sm:$0xff] %v5264_v20  ;;  %6516 = vst [vmem:[#allocation74_spill] sm:$0xff] %v5266_v27 }
 0x21f   :  { %2110 = vrot.lane.b32.xlu0 %v4972_v33, %s4533_s27  ;;  %2998 = vrot.lane.b32.xlu1 %v4956_v8, %s6495_s8 }
 0x221   :  { %v5272_v43 = vpop.permute.xlu1 %2098  ;;  %v5274_v45 = vpop.permute.xlu0 %1704 }
 0x222   :  { %6517 = vst [vmem:[#allocation75_spill] sm:$0xff] %v5272_v43  ;;  %6518 = vst [vmem:[#allocation76_spill] sm:$0xff] %v5274_v45 }
 0x223   :  { %2210 = vrot.lane.b32.xlu0 %v4972_v33, %s4542_s9  ;;  %3001 = vrot.lane.b32.xlu1 %v4688_v7, %s4545_s12 }
 0x225   :  { %v5280_v32 = vpop.permute.xlu1 %2198  ;;  %v5282_v20 = vpop.permute.xlu0 %1904 }
 0x226   :  { %6519 = vst [vmem:[#allocation77_spill] sm:$0xff] %v5280_v32  ;;  %6520 = vst [vmem:[#allocation78_spill] sm:$0xff] %v5282_v20 }
 0x227   :  { %2310 = vrot.lane.b32.xlu0 %v4972_v33, %s4535_s28  ;;  %3004 = vrot.lane.b32.xlu1 %v4966_v34, %s6521_s19 }
 0x229   :  { %v5288_v27 = vpop.permute.xlu1 %2298  ;;  %v5290_v43 = vpop.permute.xlu0 %2104 }
 0x22a   :  { %6522 = vst [vmem:[#allocation79_spill] sm:$0xff] %v5288_v27  ;;  %6523 = vst [vmem:[#allocation80_spill] sm:$0xff] %v5290_v43 }
 0x22b   :  { %2410 = vrot.lane.b32.xlu0 %v4972_v33, %s4544_s11  ;;  %3007 = vrot.lane.b32.xlu1 %v4700_v9, %s6524_s21 }
 0x22d   :  { %v5296_v45 = vpop.permute.xlu1 %2398  ;;  %v5298_v32 = vpop.permute.xlu0 %2304 }
 0x22e   :  { %6525 = vst [vmem:[#allocation81_spill] sm:$0xff] %v5296_v45  ;;  %6526 = vst [vmem:[#allocation82_spill] sm:$0xff] %v5298_v32 }
 0x22f   :  { %2510 = vrot.lane.b32.xlu0 %v4972_v33, %s6527_s26  ;;  %3092 = vrot.lane.b32.xlu1 %v4588_v1, %s4558_s6 }
 0x231   :  { %v5304_v20 = vpop.permute.xlu1 %2498  ;;  %v5306_v27 = vpop.permute.xlu0 %2504 }
 0x232   :  { %6528 = vst [vmem:[#allocation83_spill] sm:$0xff] %v5304_v20  ;;  %6529 = vst [vmem:[#allocation84_spill] sm:$0xff] %v5306_v27 }
 0x233   :  { %2610 = vrot.lane.b32.xlu0 %v4972_v33, %s4546_s13  ;;  %3098 = vrot.lane.b32.xlu1 %v4956_v8, %s6505_s10 }
 0x235   :  { %v5312_v43 = vpop.permute.xlu1 %2598  ;;  %v5314_v45 = vpop.permute.xlu0 %2704 }
 0x236   :  { %6530 = vst [vmem:[#allocation85_spill] sm:$0xff] %v5312_v43  ;;  %6531 = vst [vmem:[#allocation86_spill] sm:$0xff] %v5314_v45 }
 0x237   :  { %2710 = vrot.lane.b32.xlu0 %v4972_v33, %s6532_s29  ;;  %3195 = vrot.lane.b32.xlu1 %v4678_v5, %s4558_s6 }
 0x239   :  { %v5320_v32 = vpop.permute.xlu1 %2698  ;;  %v5322_v20 = vpop.permute.xlu0 %2901 }
 0x23a   :  { %6533 = vst [vmem:[#allocation87_spill] sm:$0xff] %v5320_v32  ;;  %6534 = vst [vmem:[#allocation88_spill] sm:$0xff] %v5322_v20 }
 0x23b   :  { %2810 = vrot.lane.b32.xlu0 %v4972_v33, %s4548_s15  ;;  %3198 = vrot.lane.b32.xlu1 %v4956_v8, %s4552_s0 }
 0x23d   :  { %v5328_v27 = vpop.permute.xlu1 %2798  ;;  %v5330_v43 = vpop.permute.xlu0 %2904 }
 0x23e   :  { %6535 = vst [vmem:[#allocation89_spill] sm:$0xff] %v5328_v27  ;;  %6536 = vst [vmem:[#allocation90_spill] sm:$0xff] %v5330_v43 }
 0x23f   :  { %2910 = vrot.lane.b32.xlu0 %v4972_v33, %s6537_s7  ;;  %3201 = vrot.lane.b32.xlu1 %v4688_v7, %s6505_s10 }
 0x241   :  { %v5336_v45 = vpop.permute.xlu1 %2898  ;;  %v5338_v32 = vpop.permute.xlu0 %2907 }
 0x242   :  { %6538 = vst [vmem:[#allocation91_spill] sm:$0xff] %v5336_v45  ;;  %6539 = vst [vmem:[#allocation92_spill] sm:$0xff] %v5338_v32 }
 0x243   :  { %3010 = vrot.lane.b32.xlu0 %v4972_v33, %s4549_s16  ;;  %3204 = vrot.lane.b32.xlu1 %v4966_v34, %s6495_s8 }
 0x245   :  { %v504_v20 = vpop.permute.xlu1 %503  ;;  %v5344_v27 = vpop.permute.xlu0 %3095 }
 0x246   :  { %6540 = vst [vmem:[#allocation93_spill] sm:$0xff] %v5344_v27 }
 0x247   :  { %3110 = vrot.lane.b32.xlu0 %v4972_v33, %s6524_s21  ;;  %3207 = vrot.lane.b32.xlu1 %v4700_v9, %s4545_s12 }
 0x249   :  { %v620_v43 = vpop.permute.xlu1 %619  ;;  %v5350_v54 = vpop.permute.xlu0 %3192 }
 0x24a   :  { %6541 = vst [vmem:[#allocation94_spill] sm:$0xff] %v5350_v54 }
 0x24b   :  { %3210 = vrot.lane.b32.xlu0 %v4972_v33, %s6521_s19  ;;  %3292 = vrot.lane.b32.xlu1 %v4588_v1, %s4557_s18 }
 0x24d   :  { %v5356_v32 = vpop.permute.xlu1 %716  ;;  %v5358_v45 = vpop.permute.xlu0 %3101 }
 0x24e   :  { %6542 = vst [vmem:[#allocation95_spill] sm:$0xff] %v5358_v45 }
 0x24f   :  { %3310 = vrot.lane.b32.xlu0 %v4972_v33, %s4545_s12  ;;  %3298 = vrot.lane.b32.xlu1 %v4956_v8, %s4558_s6 }
 0x251   :  { %v5364_v27 = vpop.permute.xlu1 %813  ;;  %v5366_v57 = vpop.permute.xlu0 %3104 }
 0x252   :  { %6543 = vst [vmem:[#allocation96_spill] sm:$0xff] %v5366_v57 }
 0x253   :  { %3410 = vrot.lane.b32.xlu0 %v4972_v33, %s6495_s8  ;;  %3395 = vrot.lane.b32.xlu1 %v4678_v5, %s4557_s18 }
 0x255   :  { %v5372_v54 = vpop.permute.xlu1 %1404  ;;  %v5374_v48 = vpop.permute.xlu0 %3107 }
 0x256   :  { %6544 = vst [vmem:[#allocation97_spill] sm:$0xff] %v5372_v54  ;;  %6545 = vst [vmem:[#allocation98_spill] sm:$0xff] %v5374_v48 }
 0x257   :  { %3495 = vrot.lane.b32.xlu0 %v4678_v5, %s4555_s24  ;;  %3398 = vrot.lane.b32.xlu1 %v4956_v8, %s4556_s14 }
 0x259   :  { %v5380_v45 = vpop.permute.xlu1 %1604  ;;  %v5382_v19 = vpop.permute.xlu0 %3295 }
 0x25a   :  { %6546 = vst [vmem:[#allocation99_spill] sm:$0xff] %v5380_v45  ;;  %6547 = vst [vmem:[#allocation100_spill] sm:$0xff] %v5382_v19 }
 0x25b   :  { %3592 = vrot.lane.b32.xlu0 %v4588_v1, %s4553_s20  ;;  %3401 = vrot.lane.b32.xlu1 %v4688_v7, %s4558_s6 }
 0x25d   :  { %v5388_v57 = vpop.permute.xlu1 %1804  ;;  %v5390_v54 = vpop.permute.xlu0 %3392 }
 0x25e   :  { %6548 = vst [vmem:[#allocation101_spill] sm:$0xff] %v5388_v57  ;;  %6549 = vst [vmem:[#allocation102_spill] sm:$0xff] %v5390_v54 }
 0x25f   :  { %3501 = vrot.lane.b32.xlu0 %v4688_v7, %s4556_s14  ;;  %3404 = vrot.lane.b32.xlu1 %v4966_v34, %s4552_s0 }
 0x261   :  { %v5396_v48 = vpop.permute.xlu1 %2004  ;;  %v5398_v45 = vpop.permute.xlu0 %3301 }
 0x262   :  { %6550 = vst [vmem:[#allocation103_spill] sm:$0xff] %v5396_v48  ;;  %6551 = vst [vmem:[#allocation104_spill] sm:$0xff] %v5398_v45 }
 0x263   :  { %3504 = vrot.lane.b32.xlu0 %v4966_v34, %s4558_s6  ;;  %3407 = vrot.lane.b32.xlu1 %v4700_v9, %s6505_s10 }
 0x265   :  { %v5404_v19 = vpop.permute.xlu1 %2204  ;;  %v5406_v57 = vpop.permute.xlu0 %3304 }
 0x266   :  { %6552 = vst [vmem:[#allocation105_spill] sm:$0xff] %v5404_v19  ;;  %6553 = vst [vmem:[#allocation106_spill] sm:$0xff] %v5406_v57  ;;  %v515_v57 = vsel %vm514_vm3, %v4588_v1, %v4870_v37 }
 0x267   :  { %3507 = vrot.lane.b32.xlu0 %v4700_v9, %s4552_s0  ;;  %3492 = vrot.lane.b32.xlu1 %v4588_v1, %s4554_s23 }
 0x269   :  { %v5412_v54 = vpop.permute.xlu1 %2404  ;;  %v5414_v48 = vpop.permute.xlu0 %3307 }
 0x26a   :  { %6554 = vst [vmem:[#allocation107_spill] sm:$0xff] %v5412_v54  ;;  %6555 = vst [vmem:[#allocation108_spill] sm:$0xff] %v5414_v48  ;;  %v516_v54 = vsel %vm20_vm0, %v515_v57, %v5192_v47  ;;  %v628_v48 = vsel %vm514_vm3, %v4730_v11, %v4678_v5 }
 0x26b   :  { %3510 = vrot.lane.b32.xlu0 %v4972_v33, %s6505_s10  ;;  %3498 = vrot.lane.b32.xlu1 %v4956_v8, %s4557_s18  ;;  %v518_v1 = vsel %vm517_vm4, %v516_v54, %v4946_v63  ;;  %v629_v47 = vsel %vm20_vm0, %v628_v48, %v5190_v52 }
 0x26c   :  { %v520_v57 = vsel %vm519_vm5, %v518_v1, %v504_v20  ;;  %v630_v11 = vsel %vm517_vm4, %v629_v47, %v4938_v59  ;;  %v822_v59 = vsel %vm514_vm3, %v4746_v13, %v4876_v38  ;;  %v919_v13 = vsel %vm514_vm3, %v4752_v14, %v4884_v40 }
 0x26d   :  { %v5423_v45 = vpop.permute.xlu1 %2604  ;;  %v5425_v19 = vpop.permute.xlu0 %1210  ;;  %v522_v48 = vsel %vm521_vm6, %v520_v57, %v5028_v56  ;;  %v631_v20 = vsel %vm519_vm5, %v630_v11, %v620_v43  ;;  %v920_v38 = vsel %vm20_vm0, %v919_v13, %v5210_v0 }
 0x26e   :  { %6556 = vst [vmem:[#allocation109_spill] sm:$0xff] %v5423_v45  ;;  %v632_v43 = vsel %vm521_vm6, %v631_v20, %v5036_v31  ;;  %v921_v0 = vsel %vm517_vm4, %v920_v38, %v4950_v3 }
 0x26f   :  { %3610 = vrot.lane.b32.xlu0 %v4972_v33, %s4552_s0  ;;  %3595 = vrot.lane.b32.xlu1 %v4678_v5, %s4554_s23  ;;  %v725_v5 = vsel %vm514_vm3, %v4736_v12, %v4868_v36  ;;  %v922_v11 = vsel %vm519_vm5, %v921_v0, %v4966_v34 }
 0x270   :  { %v726_v63 = vsel %vm20_vm0, %v725_v5, %v4956_v8  ;;  %v1016_v5 = vsel %vm514_vm3, %v4762_v15, %v4892_v42  ;;  %v923_v15 = vsel %vm521_vm6, %v922_v11, %v5068_v29 }
 0x271   :  { %v5438_v37 = vpop.permute.xlu1 %2804  ;;  %v5440_v45 = vpop.permute.xlu0 %1310  ;;  %v727_v12 = vsel %vm517_vm4, %v726_v63, %v4942_v61  ;;  %v823_v61 = vsel %vm20_vm0, %v822_v59, %v5202_v23 }
 0x272   :  { %v824_v57 = vsel %vm517_vm4, %v823_v61, %v4688_v7  ;;  %v6560_v61 = vld [vmem:[#allocation51_spill] sm:$0xff] }
 0x273   :  { %3598 = vrot.lane.b32.xlu1 %v4956_v8, %s4555_s24  ;;  %v728_v8 = vsel %vm519_vm5, %v727_v12, %v5356_v32  ;;  %v825_v40 = vsel %vm519_vm5, %v824_v57, %v5364_v27 }
 0x274   :  { %v729_v23 = vsel %vm521_vm6, %v728_v8, %v5048_v28  ;;  %v826_v27 = vsel %vm521_vm6, %v825_v40, %v5056_v51  ;;  %v1017_v51 = vsel %vm20_vm0, %v1016_v5, %v5218_v22  ;;  %v1113_v22 = vsel %vm514_vm3, %v4770_v17, %v4900_v44  ;;  %v6563_v40 = vld [vmem:[#allocation4_spill] sm:$0xff]  ;;  %v6566_v5 = vld [vmem:[#allocation50_spill] sm:$0xff] }
 0x275   :  { %v5452_v54 = vpop.permute.xlu0 %1410  ;;  %v512_v52 = vpop.permute.xlu1 %511  ;;  %v1114_v20 = vsel %vm20_vm0, %v1113_v22, %v5226_v55 }
 0x276   :  { %v524_v1 = vsel %vm523_vm8, %v522_v48, %v512_v52  ;;  %v1115_v44 = vsel %vm517_vm4, %v1114_v20, %v4964_v35  ;;  %v6569_v20 = vld [vmem:[#allocation5_spill] sm:$0xff] }
 0x277   :  { %3601 = vrot.lane.b32.xlu1 %v4688_v7, %s4557_s18  ;;  %4146 = vmatmul.mubr.msk.f32.vlgmr.msra.gmra.mxu0 %vm531_vm7, %v524_v1  ;;  %v1116_v55 = vsel %vm519_vm5, %v1115_v44, %v5242_v4 }
 0x278   :  { %4160 = vmatpush3.msk.msra.mxu0 %vm535_vm2, %v5137_v60  ;;  %4167 = vmatprep.mubr.msk.f32.mxu0 %vm4527_vm1, %v6504_v49  ;;  %v1117_v12 = vsel %vm521_vm6, %v1116_v55, %v5054_v53  ;;  %v1313_v53 = vsel %vm514_vm3, %v4780_v18, %v4886_v41 }
 0x279   :  { %4161 = vmatprep.subr.mxu0 %v6504_v49  ;;  %v5470_v36 = vpop.permute.xlu0 %1510  ;;  %v626_v56 = vpop.permute.xlu1 %625 }
 0x27a   :  { %4162 = vmatpush3.msra.mxu0 %v5150_v25  ;;  %v633_v47 = vsel %vm523_vm8, %v632_v43, %v626_v56 }
 0x27b   :  { %4163 = vmatprep.subr.mxu0 %v6504_v49  ;;  %3604 = vrot.lane.b32.xlu1 %v4966_v34, %s4556_s14  ;;  %v1018_v34 = vsel %vm517_vm4, %v1017_v51, %v4954_v6 }
 0x27c   :  { %4157 = vmatmul.mubr.msk.f32.vlgmr.msra.gmra.mxu1 %vm531_vm7, %v633_v47  ;;  %4164 = vmatpush3.msra.mxu0 %v5162_v24  ;;  %v1019_v63 = vsel %vm519_vm5, %v1018_v34, %v5234_v21  ;;  %v6559_v47 = vld [vmem:[#allocation66_spill] sm:$0xff] }
 0x27d   :  { %4171 = vmatpush3.msk.msra.mxu1 %vm535_vm2, %v5137_v60  ;;  %4165 = vmatprep.subr.mxu0 %v6504_v49  ;;  %v5494_v31 = vpop.permute.xlu0 %1610  ;;  %v723_v32 = vpop.permute.xlu1 %722  ;;  %v1020_v21 = vsel %vm521_vm6, %v1019_v63, %v4700_v9 }
 0x27e   :  { %4172 = vmatprep.subr.mxu1 %v6504_v49  ;;  %4166 = vmatpush3.msra.mxu0 %v5179_v58  ;;  %v730_v14 = vsel %vm523_vm8, %v729_v23, %v723_v32  ;;  %v6561_v23 = vld [vmem:[#allocation38_spill] sm:$0xff] }
 0x27f   :  { %4173 = vmatpush3.msra.mxu1 %v5150_v25  ;;  %4181 = vmatprep.subr.mxu0 %v6504_v49 }
 0x280   :  { %4174 = vmatprep.subr.mxu1 %v6504_v49  ;;  %3607 = vrot.lane.b32.xlu1 %v4700_v9, %s4558_s6  ;;  %v1213_v9 = vsel %vm514_vm3, %v4768_v16, %v4878_v39  ;;  %v1118_v39 = vsel %vm523_vm8, %v1117_v12, %v4972_v33 }
 0x281   :  { %4168 = vmatmul.mubr.msk.f32.vlgmr.msra.gmra.mxu0 %vm531_vm7, %v730_v14  ;;  %4175 = vmatpush3.msra.mxu1 %v5162_v24  ;;  %v5516_v7 = vpop.permute.xlu0 %1710  ;;  %v820_v28 = vpop.permute.xlu1 %819  ;;  %v1214_v4 = vsel %vm20_vm0, %v1213_v9, %v5200_v30  ;;  %v6562_v14 = vld [vmem:[#allocation20_spill] sm:$0xff] }
 0x282   :  { %4182 = vmatpush3.msk.msra.mxu0 %vm535_vm2, %v5137_v60  ;;  %4176 = vmatprep.subr.mxu1 %v6504_v49  ;;  %v827_v3 = vsel %vm523_vm8, %v826_v27, %v820_v28  ;;  %v1215_v30 = vsel %vm517_vm4, %v1214_v4, %v4944_v62  ;;  %v1314_v62 = vsel %vm20_vm0, %v1313_v53, %v5208_v50  ;;  %v6557_v50 = vld [vmem:[#allocation3_spill] sm:$0xff]  ;;  %v6564_v28 = vld [vmem:[#allocation97_spill] sm:$0xff]  ;;  %v6573_v4 = vld [vmem:[#allocation40_spill] sm:$0xff] }
 0x283   :  { %4183 = vmatprep.subr.mxu0 %v6504_v49  ;;  %4177 = vmatpush3.msra.mxu1 %v5179_v58  ;;  %v1216_v43 = vsel %vm519_vm5, %v1215_v30, %v5250_v26  ;;  %v1315_v26 = vsel %vm517_vm4, %v1314_v62, %v4948_v2  ;;  %v1413_v59 = vsel %vm514_vm3, %v6557_v50, %v4908_v46  ;;  %v6574_v53 = vld [vmem:[#allocation21_spill] sm:$0xff] }
 0x284   :  { %4184 = vmatpush3.msra.mxu0 %v5150_v25  ;;  %4178 = vmatprep.mubr.msk.f32.mxu1 %vm4527_vm1, %v6504_v49  ;;  %v1217_v18 = vsel %vm521_vm6, %v1216_v43, %v5066_v10  ;;  %v6558_v10 = vld [vmem:[#allocation72_spill] sm:$0xff]  ;;  %v1513_v0 = vsel %vm514_vm3, %v6563_v40, %v6562_v14  ;;  %v6575_v43 = vld [vmem:[#allocation6_spill] sm:$0xff] }
 0x285   :  { %4185 = vmatprep.subr.mxu0 %v6504_v49  ;;  %4192 = vmatprep.subr.mxu1 %v6504_v49  ;;  %v5538_v48 = vpop.permute.xlu0 %1810  ;;  %v917_v52 = vpop.permute.xlu1 %916  ;;  %v1218_v41 = vsel %vm523_vm8, %v1217_v18, %v5425_v19  ;;  %v1316_v8 = vsel %vm519_vm5, %v1315_v26, %v6558_v10  ;;  %v1414_v19 = vsel %vm20_vm0, %v1413_v59, %v6559_v47  ;;  %v6576_v18 = vld [vmem:[#allocation99_spill] sm:$0xff]  ;;  %v6578_v59 = vld [vmem:[#allocation52_spill] sm:$0xff] }
 0x286   :  { %4179 = vmatmul.mubr.msk.f32.vlgmr.msra.gmra.mxu1 %vm531_vm7, %v827_v3  ;;  %4186 = vmatpush3.msra.mxu0 %v5162_v24  ;;  %v924_v42 = vsel %vm523_vm8, %v923_v15, %v917_v52  ;;  %v1317_v13 = vsel %vm521_vm6, %v1316_v8, %v6560_v61  ;;  %v1415_v32 = vsel %vm517_vm4, %v1414_v19, %v6561_v23  ;;  %v6565_v3 = vld [vmem:[#allocation67_spill] sm:$0xff]  ;;  %v6579_v8 = vld [vmem:[#allocation36_spill] sm:$0xff]  ;;  %v6580_v61 = vld [vmem:[#allocation25_spill] sm:$0xff] }
 0x287   :  { %4193 = vmatpush3.msk.msra.mxu1 %vm535_vm2, %v5137_v60  ;;  %4187 = vmatprep.subr.mxu0 %v6504_v49  ;;  %v1318_v38 = vsel %vm523_vm8, %v1317_v13, %v5440_v45  ;;  %v1416_v27 = vsel %vm519_vm5, %v1415_v32, %v6564_v28  ;;  %v1514_v45 = vsel %vm20_vm0, %v1513_v0, %v6565_v3  ;;  %v6567_v15 = vld [vmem:[#allocation35_spill] sm:$0xff]  ;;  %v6582_v32 = vld [vmem:[#allocation76_spill] sm:$0xff]  ;;  %v6585_v3 = vld [vmem:[#allocation42_spill] sm:$0xff] }
 0x288   :  { %4194 = vmatprep.subr.mxu1 %v6504_v49  ;;  %4188 = vmatpush3.msra.mxu0 %v5179_v58  ;;  %v1417_v11 = vsel %vm521_vm6, %v1416_v27, %v6566_v5  ;;  %v1515_v22 = vsel %vm517_vm4, %v1514_v45, %v6567_v15  ;;  %v1713_v62 = vsel %vm514_vm3, %v6575_v43, %v6574_v53  ;;  %v6581_v13 = vld [vmem:[#allocation7_spill] sm:$0xff]  ;;  %v6586_v15 = vld [vmem:[#allocation22_spill] sm:$0xff] }
 0x289   :  { %4195 = vmatpush3.msra.mxu1 %v5150_v25  ;;  %4189 = vmatprep.mubr.msk.f32.mxu0 %vm4527_vm1, %v6504_v49  ;;  %v5562_v17 = vpop.permute.xlu0 %1910  ;;  %v1014_v29 = vpop.permute.xlu1 %1013  ;;  %v1418_v34 = vsel %vm523_vm8, %v1417_v11, %v5452_v54  ;;  %v1813_v23 = vsel %vm514_vm3, %v6581_v13, %v6580_v61  ;;  %v6584_v28 = vld [vmem:[#allocation55_spill] sm:$0xff]  ;;  %v6594_v43 = vld [vmem:[#allocation78_spill] sm:$0xff] }
 0x28a   :  { %4196 = vmatprep.subr.mxu1 %v6504_v49  ;;  %4203 = vmatprep.subr.mxu0 %v6504_v49  ;;  %v1021_v6 = vsel %vm523_vm8, %v1020_v21, %v1014_v29  ;;  %v6570_v29 = vld [vmem:[#allocation74_spill] sm:$0xff]  ;;  %v6571_v21 = vld [vmem:[#allocation68_spill] sm:$0xff] }
 0x28b   :  { %4190 = vmatmul.mubr.msk.f32.vlgmr.msra.gmra.mxu0 %vm531_vm7, %v924_v42  ;;  %4197 = vmatpush3.msra.mxu1 %v5162_v24  ;;  %v6568_v42 = vld [vmem:[#allocation23_spill] sm:$0xff]  ;;  %v1516_v44 = vsel %vm519_vm5, %v1515_v22, %v6570_v29  ;;  %v6587_v22 = vld [vmem:[#allocation8_spill] sm:$0xff]  ;;  %v6599_v61 = vld [vmem:[#allocation10_spill] sm:$0xff] }
 0x28c   :  { %4204 = vmatpush3.msk.msra.mxu0 %vm535_vm2, %v5137_v60  ;;  %4198 = vmatprep.subr.mxu1 %v6504_v49  ;;  %v1613_v63 = vsel %vm514_vm3, %v6569_v20, %v6568_v42  ;;  %v6588_v42 = vld [vmem:[#allocation101_spill] sm:$0xff] }
 0x28d   :  { %4205 = vmatprep.subr.mxu0 %v6504_v49  ;;  %4199 = vmatpush3.msra.mxu1 %v5179_v58  ;;  %v5580_v1 = vpop.permute.xlu1 %2995  ;;  %v5590_v35 = vpop.permute.xlu0 %2010  ;;  %v1614_v55 = vsel %vm20_vm0, %v1613_v63, %v6571_v21  ;;  %v6589_v63 = vld [vmem:[#allocation71_spill] sm:$0xff] }
 0x28e   :  { %4206 = vmatpush3.msra.mxu0 %v5150_v25  ;;  %4200 = vmatprep.mubr.msk.f32.mxu1 %vm4527_vm1, %v6504_v49  ;;  %v1615_v12 = vsel %vm517_vm4, %v1614_v55, %v6573_v4 }
 0x28f   :  { %4207 = vmatprep.subr.mxu0 %v6504_v49  ;;  %4214 = vmatprep.subr.mxu1 %v6504_v49  ;;  %v1616_v26 = vsel %vm519_vm5, %v1615_v12, %v6576_v18  ;;  %v6592_v12 = vld [vmem:[#allocation27_spill] sm:$0xff]  ;;  %v6595_v18 = vld [vmem:[#allocation73_spill] sm:$0xff] }
 0x290   :  { %4201 = vmatmul.mubr.msk.f32.vlgmr.msra.gmra.mxu1 %vm531_vm7, %v1021_v6  ;;  %4208 = vmatpush3.msra.mxu0 %v5162_v24  ;;  %v6572_v6 = vld [vmem:[#allocation53_spill] sm:$0xff]  ;;  %v1617_v10 = vsel %vm521_vm6, %v1616_v26, %v6578_v59 }
 0x291   :  { %4215 = vmatpush3.msk.msra.mxu1 %vm535_vm2, %v5137_v60  ;;  %4209 = vmatprep.subr.mxu0 %v6504_v49  ;;  %v5601_v16 = vpop.permute.xlu1 %2998  ;;  %v5623_v56 = vpop.permute.xlu0 %2110  ;;  %v1517_v9 = vsel %vm521_vm6, %v1516_v44, %v6572_v6  ;;  %v1618_v19 = vsel %vm523_vm8, %v1617_v10, %v5494_v31  ;;  %v6583_v31 = vld [vmem:[#allocation70_spill] sm:$0xff]  ;;  %v6591_v6 = vld [vmem:[#allocation37_spill] sm:$0xff]  ;;  %v6597_v10 = vld [vmem:[#allocation44_spill] sm:$0xff] }
 0x292   :  { %4216 = vmatprep.subr.mxu1 %v6504_v49  ;;  %4210 = vmatpush3.msra.mxu0 %v5179_v58  ;;  %v1518_v30 = vsel %vm523_vm8, %v1517_v9, %v5470_v36  ;;  %v1814_v0 = vsel %vm20_vm0, %v1813_v23, %v6583_v31  ;;  %v6590_v44 = vld [vmem:[#allocation54_spill] sm:$0xff]  ;;  %v6600_v23 = vld [vmem:[#allocation103_spill] sm:$0xff] }
 0x293   :  { %4211 = vmatprep.mubr.msk.f32.mxu0 %vm4527_vm1, %v6504_v49  ;;  %4217 = vmatpush3.msra.mxu1 %v5150_v25  ;;  %v1815_v45 = vsel %vm517_vm4, %v1814_v0, %v6585_v3  ;;  %v6602_v0 = vld [vmem:[#allocation56_spill] sm:$0xff]  ;;  %v6603_v3 = vld [vmem:[#allocation39_spill] sm:$0xff] }
 0x294   :  { %4212 = vmatmul.mubr.msk.f32.vlgmr.msra.gmra.mxu0 %vm531_vm7, %v1118_v39  ;;  %4218 = vmatprep.subr.mxu1 %v6504_v49  ;;  %v1816_v20 = vsel %vm519_vm5, %v1815_v45, %v6588_v42  ;;  %v6606_v42 = vld [vmem:[#allocation80_spill] sm:$0xff] }
 0x295   :  { %4225 = vmatprep.subr.mxu0 %v6504_v49  ;;  %4219 = vmatpush3.msra.mxu1 %v5162_v24  ;;  %v5625_v33 = vpop.permute.xlu1 %3001  ;;  %v5657_v46 = vpop.permute.xlu0 %2210  ;;  %v1817_v21 = vsel %vm521_vm6, %v1816_v20, %v6590_v44  ;;  %v6608_v44 = vld [vmem:[#allocation59_spill] sm:$0xff] }
 0x296   :  { %4226 = vmatpush3.msk.msra.mxu0 %vm535_vm2, %v5137_v60  ;;  %4220 = vmatprep.subr.mxu1 %v6504_v49  ;;  %v1818_v4 = vsel %vm523_vm8, %v1817_v21, %v5538_v48 }
 0x297   :  { %4227 = vmatprep.subr.mxu0 %v6504_v49  ;;  %4221 = vmatpush3.msra.mxu1 %v5179_v58 }
 0x298   :  { %4222 = vmatprep.mubr.msk.f32.mxu1 %vm4527_vm1, %v6504_v49  ;;  %4228 = vmatpush3.msra.mxu0 %v5150_v25 }
 0x299   :  { %4223 = vmatmul.mubr.msk.f32.vlgmr.msra.gmra.mxu1 %vm531_vm7, %v1218_v41  ;;  %4229 = vmatprep.subr.mxu0 %v6504_v49  ;;  %v5648_v2 = vpop.permute.xlu1 %3004  ;;  %v5689_v51 = vpop.permute.xlu0 %2310  ;;  %v6577_v41 = vld [vmem:[#allocation69_spill] sm:$0xff] }
 0x29a   :  { %4236 = vmatprep.subr.mxu1 %v6504_v49  ;;  %4230 = vmatpush3.msra.mxu0 %v5162_v24  ;;  %v1714_v36 = vsel %vm20_vm0, %v1713_v62, %v6577_v41 }
 0x29b   :  { %4237 = vmatpush3.msk.msra.mxu1 %vm535_vm2, %v5137_v60  ;;  %4231 = vmatprep.subr.mxu0 %v6504_v49  ;;  %v1715_v47 = vsel %vm517_vm4, %v1714_v36, %v6579_v8  ;;  %v6596_v36 = vld [vmem:[#allocation57_spill] sm:$0xff] }
 0x29c   :  { %4238 = vmatprep.subr.mxu1 %v6504_v49  ;;  %4232 = vmatpush3.msra.mxu0 %v5179_v58 }
 0x29d   :  { %4239 = vmatpush3.msra.mxu1 %v5150_v25  ;;  %4233 = vmatprep.mubr.msk.f32.mxu0 %vm4527_vm1, %v6504_v49  ;;  %v5670_v57 = vpop.permute.xlu1 %3007  ;;  %v5725_v39 = vpop.permute.xlu0 %2410 }
 0x29e   :  { %4234 = vmatmul.mubr.msk.f32.vlgmr.msra.gmra.mxu0 %vm531_vm7, %v1318_v38  ;;  %4240 = vmatprep.subr.mxu1 %v6504_v49  ;;  %v1716_v38 = vsel %vm519_vm5, %v1715_v47, %v6582_v32 }
 0x29f   :  { %4247 = vmatprep.subr.mxu0 %v6504_v49  ;;  %4241 = vmatpush3.msra.mxu1 %v5162_v24  ;;  %v1717_v27 = vsel %vm521_vm6, %v1716_v38, %v6584_v28  ;;  %v6601_v38 = vld [vmem:[#allocation75_spill] sm:$0xff] }
 0x2a0   :  { %4248 = vmatpush3.msk.msra.mxu0 %vm535_vm2, %v5137_v60  ;;  %4242 = vmatprep.subr.mxu1 %v6504_v49  ;;  %v1718_v5 = vsel %vm523_vm8, %v1717_v27, %v5516_v7 }
 0x2a1   :  { %4249 = vmatprep.subr.mxu0 %v6504_v49  ;;  %4243 = vmatpush3.msra.mxu1 %v5179_v58  ;;  %v5692_v52 = vpop.permute.xlu1 %3092  ;;  %v5762_v14 = vpop.permute.xlu0 %2510 }
 0x2a2   :  { %4244 = vmatprep.mubr.msk.f32.mxu1 %vm4527_vm1, %v6504_v49  ;;  %4250 = vmatpush3.msra.mxu0 %v5150_v25 }
 0x2a3   :  { %4245 = vmatmul.mubr.msk.f32.vlgmr.msra.gmra.mxu1 %vm531_vm7, %v1418_v34  ;;  %4251 = vmatprep.subr.mxu0 %v6504_v49  ;;  %v1913_v34 = vsel %vm514_vm3, %v6587_v22, %v6586_v15  ;;  %v6604_v15 = vld [vmem:[#allocation29_spill] sm:$0xff]  ;;  %v6605_v22 = vld [vmem:[#allocation11_spill] sm:$0xff] }
 0x2a4   :  { %4258 = vmatprep.subr.mxu1 %v6504_v49  ;;  %4252 = vmatpush3.msra.mxu0 %v5162_v24  ;;  %v1914_v7 = vsel %vm20_vm0, %v1913_v34, %v6589_v63  ;;  %v2213_v34 = vsel %vm514_vm3, %v6605_v22, %v6604_v15  ;;  %v6622_v15 = vld [vmem:[#allocation61_spill] sm:$0xff] }
 0x2a5   :  { %4259 = vmatpush3.msk.msra.mxu1 %vm535_vm2, %v5137_v60  ;;  %4253 = vmatprep.subr.mxu0 %v6504_v49  ;;  %v5715_v54 = vpop.permute.xlu1 %3098  ;;  %v5797_v29 = vpop.permute.xlu0 %2610  ;;  %v1915_v9 = vsel %vm517_vm4, %v1914_v7, %v6591_v6  ;;  %v6607_v7 = vld [vmem:[#allocation77_spill] sm:$0xff]  ;;  %v6609_v6 = vld [vmem:[#allocation46_spill] sm:$0xff] }
 0x2a6   :  { %4260 = vmatprep.subr.mxu1 %v6504_v49  ;;  %4254 = vmatpush3.msra.mxu0 %v5179_v58  ;;  %v1916_v62 = vsel %vm519_vm5, %v1915_v9, %v6594_v43 }
 0x2a7   :  { %4261 = vmatpush3.msra.mxu1 %v5150_v25  ;;  %4255 = vmatprep.mubr.msk.f32.mxu0 %vm4527_vm1, %v6504_v49  ;;  %v1917_v59 = vsel %vm521_vm6, %v1916_v62, %v6596_v36  ;;  %v6612_v62 = vld [vmem:[#allocation105_spill] sm:$0xff] }
 0x2a8   :  { %4256 = vmatmul.mubr.msk.f32.vlgmr.msra.gmra.mxu0 %vm531_vm7, %v1518_v30  ;;  %4262 = vmatprep.subr.mxu1 %v6504_v49  ;;  %v6593_v30 = vld [vmem:[#allocation9_spill] sm:$0xff]  ;;  %v1918_v47 = vsel %vm523_vm8, %v1917_v59, %v5562_v17  ;;  %v6614_v59 = vld [vmem:[#allocation58_spill] sm:$0xff] }
 0x2a9   :  { %4269 = vmatprep.subr.mxu0 %v6504_v49  ;;  %4263 = vmatpush3.msra.mxu1 %v5162_v24  ;;  %v5741_v50 = vpop.permute.xlu1 %3195  ;;  %v2013_v53 = vsel %vm514_vm3, %v6593_v30, %v6592_v12  ;;  %v5828_v48 = vpop.permute.xlu0 %2710  ;;  %v6610_v30 = vld [vmem:[#allocation26_spill] sm:$0xff] }
 0x2aa   :  { %4270 = vmatpush3.msk.msra.mxu0 %vm535_vm2, %v5137_v60  ;;  %4264 = vmatprep.subr.mxu1 %v6504_v49  ;;  %v2014_v26 = vsel %vm20_vm0, %v2013_v53, %v6595_v18  ;;  %v6611_v53 = vld [vmem:[#allocation12_spill] sm:$0xff] }
 0x2ab   :  { %4271 = vmatprep.subr.mxu0 %v6504_v49  ;;  %4265 = vmatpush3.msra.mxu1 %v5179_v58  ;;  %v2015_v8 = vsel %vm517_vm4, %v2014_v26, %v6597_v10  ;;  %v2313_v43 = vsel %vm514_vm3, %v6611_v53, %v6610_v30  ;;  %v6627_v30 = vld [vmem:[#allocation60_spill] sm:$0xff] }
 0x2ac   :  { %4266 = vmatprep.mubr.msk.f32.mxu1 %vm4527_vm1, %v6504_v49  ;;  %4272 = vmatpush3.msra.mxu0 %v5150_v25  ;;  %v2016_v32 = vsel %vm519_vm5, %v2015_v8, %v6600_v23  ;;  %v6615_v8 = vld [vmem:[#allocation41_spill] sm:$0xff] }
 0x2ad   :  { %4267 = vmatmul.mubr.msk.f32.vlgmr.msra.gmra.mxu1 %vm531_vm7, %v1618_v19  ;;  %4273 = vmatprep.subr.mxu0 %v6504_v49  ;;  %v5766_v40 = vpop.permute.xlu1 %3198  ;;  %v6598_v19 = vld [vmem:[#allocation24_spill] sm:$0xff]  ;;  %v2017_v28 = vsel %vm521_vm6, %v2016_v32, %v6602_v0  ;;  %v5864_v27 = vpop.permute.xlu0 %2810  ;;  %v6618_v32 = vld [vmem:[#allocation82_spill] sm:$0xff]  ;;  %v6619_v0 = vld [vmem:[#allocation81_spill] sm:$0xff] }
 0x2ae   :  { %4280 = vmatprep.subr.mxu1 %v6504_v49  ;;  %4274 = vmatpush3.msra.mxu0 %v5162_v24  ;;  %v2113_v13 = vsel %vm514_vm3, %v6599_v61, %v6598_v19  ;;  %v6616_v61 = vld [vmem:[#allocation31_spill] sm:$0xff] }
 0x2af   :  { %4281 = vmatpush3.msk.msra.mxu1 %vm535_vm2, %v5137_v60  ;;  %4275 = vmatprep.subr.mxu0 %v6504_v49  ;;  %v2114_v31 = vsel %vm20_vm0, %v2113_v13, %v6601_v38  ;;  %v6617_v13 = vld [vmem:[#allocation13_spill] sm:$0xff] }
 0x2b0   :  { %4282 = vmatprep.subr.mxu1 %v6504_v49  ;;  %4276 = vmatpush3.msra.mxu0 %v5179_v58  ;;  %v2115_v45 = vsel %vm517_vm4, %v2114_v31, %v6603_v3  ;;  %v2413_v23 = vsel %vm514_vm3, %v6617_v13, %v6616_v61  ;;  %v6620_v3 = vld [vmem:[#allocation28_spill] sm:$0xff]  ;;  %v6634_v61 = vld [vmem:[#allocation63_spill] sm:$0xff] }
 0x2b1   :  { %4283 = vmatpush3.msra.mxu1 %v5150_v25  ;;  %4277 = vmatprep.mubr.msk.f32.mxu0 %vm4527_vm1, %v6504_v49  ;;  %v5786_v11 = vpop.permute.xlu1 %3201  ;;  %v2116_v20 = vsel %vm519_vm5, %v2115_v45, %v6606_v42  ;;  %v5899_v12 = vpop.permute.xlu0 %2910  ;;  %v6621_v45 = vld [vmem:[#allocation14_spill] sm:$0xff] }
 0x2b2   :  { %4278 = vmatmul.mubr.msk.f32.vlgmr.msra.gmra.mxu0 %vm531_vm7, %v1718_v5  ;;  %4284 = vmatprep.subr.mxu1 %v6504_v49  ;;  %v2018_v5 = vsel %vm523_vm8, %v2017_v28, %v5590_v35  ;;  %v2214_v35 = vsel %vm20_vm0, %v2213_v34, %v6607_v7  ;;  %v2117_v21 = vsel %vm521_vm6, %v2116_v20, %v6608_v44  ;;  %v6623_v34 = vld [vmem:[#allocation83_spill] sm:$0xff] }
 0x2b3   :  { %4291 = vmatprep.subr.mxu0 %v6504_v49  ;;  %4285 = vmatpush3.msra.mxu1 %v5162_v24  ;;  %v2215_v9 = vsel %vm517_vm4, %v2214_v35, %v6609_v6  ;;  %v6624_v20 = vld [vmem:[#allocation47_spill] sm:$0xff] }
 0x2b4   :  { %4292 = vmatpush3.msk.msra.mxu0 %vm535_vm2, %v5137_v60  ;;  %4286 = vmatprep.subr.mxu1 %v6504_v49  ;;  %v2216_v18 = vsel %vm519_vm5, %v2215_v9, %v6612_v62  ;;  %v6625_v44 = vld [vmem:[#allocation107_spill] sm:$0xff] }
 0x2b5   :  { %4293 = vmatprep.subr.mxu0 %v6504_v49  ;;  %4287 = vmatpush3.msra.mxu1 %v5179_v58  ;;  %v5808_v55 = vpop.permute.xlu1 %3204  ;;  %v2217_v10 = vsel %vm521_vm6, %v2216_v18, %v6614_v59  ;;  %v5936_v31 = vpop.permute.xlu0 %3010  ;;  %v6626_v9 = vld [vmem:[#allocation43_spill] sm:$0xff]  ;;  %v6631_v59 = vld [vmem:[#allocation85_spill] sm:$0xff] }
 0x2b6   :  { %4288 = vmatprep.mubr.msk.f32.mxu1 %vm4527_vm1, %v6504_v49  ;;  %4294 = vmatpush3.msra.mxu0 %v5150_v25  ;;  %v2218_v19 = vsel %vm523_vm8, %v2217_v10, %v5657_v46  ;;  %v2414_v46 = vsel %vm20_vm0, %v2413_v23, %v6619_v0  ;;  %v6629_v62 = vld [vmem:[#allocation15_spill] sm:$0xff] }
 0x2b7   :  { %4289 = vmatmul.mubr.msk.f32.vlgmr.msra.gmra.mxu1 %vm531_vm7, %v1818_v4  ;;  %4295 = vmatprep.subr.mxu0 %v6504_v49  ;;  %v2118_v4 = vsel %vm523_vm8, %v2117_v21, %v5623_v56  ;;  %v6613_v56 = vld [vmem:[#allocation79_spill] sm:$0xff]  ;;  %v2415_v7 = vsel %vm517_vm4, %v2414_v46, %v6624_v20 }
 0x2b8   :  { %4302 = vmatprep.subr.mxu1 %v6504_v49  ;;  %4296 = vmatpush3.msra.mxu0 %v5162_v24  ;;  %v2314_v36 = vsel %vm20_vm0, %v2313_v43, %v6613_v56  ;;  %v2416_v21 = vsel %vm519_vm5, %v2415_v7, %v6625_v44  ;;  %v6630_v56 = vld [vmem:[#allocation84_spill] sm:$0xff]  ;;  %v6635_v23 = vld [vmem:[#allocation87_spill] sm:$0xff]  ;;  %v6640_v44 = vld [vmem:[#allocation34_spill] sm:$0xff] }
 0x2b9   :  { %4303 = vmatpush3.msk.msra.mxu1 %vm535_vm2, %v5137_v60  ;;  %4297 = vmatprep.subr.mxu0 %v6504_v49  ;;  %v5833_v41 = vpop.permute.xlu1 %3207  ;;  %v5969_v6 = vpop.permute.xlu0 %3110  ;;  %v2417_v53 = vsel %vm521_vm6, %v2416_v21, %v6627_v30  ;;  %v6057_v20 = vld [vmem:[%s6423_s2] sm:$0xff]  ;;  %v6641_v21 = vld [vmem:[#allocation17_spill] sm:$0xff] }
 0x2ba   :  { %4304 = vmatprep.subr.mxu1 %v6504_v49  ;;  %4298 = vmatpush3.msra.mxu0 %v5179_v58  ;;  %v2418_v43 = vsel %vm523_vm8, %v2417_v53, %v5725_v39  ;;  %v6643_v53 = vld [vmem:[#allocation89_spill] sm:$0xff] }
 0x2bb   :  { %4305 = vmatpush3.msra.mxu1 %v5150_v25  ;;  %4299 = vmatprep.mubr.msk.f32.mxu0 %vm4527_vm1, %v6504_v49 }
 0x2bc   :  { %4300 = vmatmul.mubr.msk.f32.vlgmr.msra.gmra.mxu0 %vm531_vm7, %v1918_v47  ;;  %4306 = vmatprep.subr.mxu1 %v6504_v49  ;;  %v2315_v47 = vsel %vm517_vm4, %v2314_v36, %v6615_v8  ;;  %v6632_v8 = vld [vmem:[#allocation30_spill] sm:$0xff] }
 0x2bd   :  { %4313 = vmatprep.subr.mxu0 %v6504_v49  ;;  %4307 = vmatpush3.msra.mxu1 %v5162_v24  ;;  %v5857_v17 = vpop.permute.xlu1 %3292  ;;  %v2316_v38 = vsel %vm519_vm5, %v2315_v47, %v6618_v32  ;;  %v6000_v39 = vpop.permute.xlu0 %3210  ;;  %v6633_v47 = vld [vmem:[#allocation16_spill] sm:$0xff] }
 0x2be   :  { %4314 = vmatpush3.msk.msra.mxu0 %vm535_vm2, %v5137_v60  ;;  %4308 = vmatprep.subr.mxu1 %v6504_v49  ;;  %v2317_v22 = vsel %vm521_vm6, %v2316_v38, %v6622_v15  ;;  %v6636_v38 = vld [vmem:[#allocation48_spill] sm:$0xff] }
 0x2bf   :  { %4315 = vmatprep.subr.mxu0 %v6504_v49  ;;  %4309 = vmatpush3.msra.mxu1 %v5179_v58  ;;  %v2318_v35 = vsel %vm523_vm8, %v2317_v22, %v5689_v51  ;;  %v6639_v22 = vld [vmem:[#allocation62_spill] sm:$0xff] }
 0x2c0   :  { %4310 = vmatprep.mubr.msk.f32.mxu1 %vm4527_vm1, %v6504_v49  ;;  %4316 = vmatpush3.msra.mxu0 %v5150_v25 }
 0x2c1   :  { %4311 = vmatmul.mubr.msk.f32.vlgmr.msra.gmra.mxu1 %vm531_vm7, %v2018_v5  ;;  %4317 = vmatprep.subr.mxu0 %v6504_v49  ;;  %v5882_v63 = vpop.permute.xlu1 %3298  ;;  %v2513_v5 = vsel %vm514_vm3, %v6621_v45, %v6620_v3  ;;  %v6028_v3 = vld [vmem:[%s6423_s2 + $0x10] sm:$0xff] }
 0x2c2   :  { %4324 = vmatprep.subr.mxu1 %v6504_v49  ;;  %4318 = vmatpush3.msra.mxu0 %v5162_v24  ;;  %v2514_v42 = vsel %vm20_vm0, %v2513_v5, %v6623_v34  ;;  %v6638_v5 = vld [vmem:[#allocation45_spill] sm:$0xff] }
 0x2c3   :  { %4325 = vmatpush3.msk.msra.mxu1 %vm535_vm2, %v5137_v60  ;;  %4319 = vmatprep.subr.mxu0 %v6504_v49  ;;  %v2515_v51 = vsel %vm517_vm4, %v2514_v42, %v6626_v9  ;;  %v6051_v42 = vpop.permute.xlu0 %3310  ;;  %v2813_v9 = vsel %vm514_vm3, %v6641_v21, %v6640_v44 }
 0x2c4   :  { %4326 = vmatprep.subr.mxu1 %v6504_v49  ;;  %4320 = vmatpush3.msra.mxu0 %v5179_v58  ;;  %v2516_v36 = vsel %vm519_vm5, %v2515_v51, %v6630_v56  ;;  %v6642_v51 = vld [vmem:[#allocation86_spill] sm:$0xff] }
 0x2c5   :  { %4327 = vmatpush3.msra.mxu1 %v5150_v25  ;;  %4321 = vmatprep.mubr.msk.f32.mxu0 %vm4527_vm1, %v6504_v49  ;;  %v5911_v26 = vpop.permute.xlu1 %3395  ;;  %v2517_v13 = vsel %vm521_vm6, %v2516_v36, %v6634_v61  ;;  %v6647_v36 = vld [vmem:[#allocation91_spill] sm:$0xff] }
 0x2c6   :  { %4322 = vmatmul.mubr.msk.f32.vlgmr.msra.gmra.mxu0 %vm531_vm7, %v2118_v4  ;;  %4328 = vmatprep.subr.mxu1 %v6504_v49  ;;  %v2518_v46 = vsel %vm523_vm8, %v2517_v13, %v5762_v14  ;;  %v6041_v14 = vld [vmem:[%s6423_s2 + $0x8] sm:$0xff] }
 0x2c7   :  { %4335 = vmatprep.subr.mxu0 %v6504_v49  ;;  %4329 = vmatpush3.msra.mxu1 %v5162_v24 }
 0x2c8   :  { %4336 = vmatpush3.msk.msra.mxu0 %vm535_vm2, %v5137_v60  ;;  %4330 = vmatprep.subr.mxu1 %v6504_v49 }
 0x2c9   :  { %4337 = vmatprep.subr.mxu0 %v6504_v49  ;;  %4331 = vmatpush3.msra.mxu1 %v5179_v58  ;;  %v5944_v28 = vpop.permute.xlu1 %3398 }
 0x2ca   :  { %4332 = vmatprep.mubr.msk.f32.mxu1 %vm4527_vm1, %v6504_v49  ;;  %4338 = vmatpush3.msra.mxu0 %v5150_v25 }
 0x2cb   :  { %4333 = vmatmul.mubr.msk.f32.vlgmr.msra.gmra.mxu1 %vm531_vm7, %v2218_v19  ;;  %4339 = vmatprep.subr.mxu0 %v6504_v49  ;;  %v2713_v19 = vsel %vm514_vm3, %v6633_v47, %v6632_v8 }
 0x2cc   :  { %4346 = vmatprep.subr.mxu1 %v6504_v49  ;;  %4340 = vmatpush3.msra.mxu0 %v5162_v24  ;;  %v2714_v32 = vsel %vm20_vm0, %v2713_v19, %v6635_v23  ;;  %v6094_v19 = vpop.permute.xlu0 %3410 }
 0x2cd   :  { %4347 = vmatpush3.msk.msra.mxu1 %vm535_vm2, %v5137_v60  ;;  %4341 = vmatprep.subr.mxu0 %v6504_v49  ;;  %v5978_v4 = vpop.permute.xlu1 %3401  ;;  %v2715_v15 = vsel %vm517_vm4, %v2714_v32, %v6638_v5  ;;  %v6650_v32 = vld [vmem:[#allocation64_spill] sm:$0xff] }
 0x2ce   :  { %4348 = vmatprep.subr.mxu1 %v6504_v49  ;;  %4342 = vmatpush3.msra.mxu0 %v5179_v58  ;;  %v2716_v30 = vsel %vm519_vm5, %v2715_v15, %v6642_v51  ;;  %v6653_v15 = vld [vmem:[#allocation93_spill] sm:$0xff] }
 0x2cf   :  { %4349 = vmatpush3.msra.mxu1 %v5150_v25  ;;  %4343 = vmatprep.mubr.msk.f32.mxu0 %vm4527_vm1, %v6504_v49 }
 0x2d0   :  { %4344 = vmatmul.mubr.msk.f32.vlgmr.msra.gmra.mxu0 %vm531_vm7, %v2318_v35  ;;  %4350 = vmatprep.subr.mxu1 %v6504_v49 }
 0x2d1   :  { %4357 = vmatprep.subr.mxu0 %v6504_v49  ;;  %4351 = vmatpush3.msra.mxu1 %v5162_v24 }
 0x2d2   :  { %4358 = vmatpush3.msk.msra.mxu0 %vm535_vm2, %v5137_v60  ;;  %4352 = vmatprep.subr.mxu1 %v6504_v49  ;;  %v6628_v60 = vld [vmem:[#allocation33_spill] sm:$0xff] }
 0x2d3   :  { %4359 = vmatprep.subr.mxu0 %v6504_v49  ;;  %4353 = vmatpush3.msra.mxu1 %v5179_v58  ;;  %v2613_v18 = vsel %vm514_vm3, %v6629_v62, %v6628_v60  ;;  %v6645_v60 = vld [vmem:[#allocation18_spill] sm:$0xff] }
 0x2d4   :  { %4354 = vmatprep.mubr.msk.f32.mxu1 %vm4527_vm1, %v6504_v49  ;;  %4360 = vmatpush3.msra.mxu0 %v5150_v25  ;;  %v2614_v10 = vsel %vm20_vm0, %v2613_v18, %v6631_v59  ;;  %v6005_v25 = vld [vmem:[%s6423_s2 + $0x18] sm:$0xf]  ;;  %v6646_v18 = vld [vmem:[#allocation65_spill] sm:$0xff] }
 0x2d5   :  { %4355 = vmatmul.mubr.msk.f32.vlgmr.msra.gmra.mxu1 %vm531_vm7, %v2418_v43  ;;  %4361 = vmatprep.subr.mxu0 %v6504_v49  ;;  %v2615_v0 = vsel %vm517_vm4, %v2614_v10, %v6636_v38  ;;  %v6644_v43 = vld [vmem:[#allocation32_spill] sm:$0xff]  ;;  %v2717_v56 = vsel %vm521_vm6, %v2716_v30, %v6646_v18  ;;  %v6648_v10 = vld [vmem:[#allocation49_spill] sm:$0xff]  ;;  %v6659_v18 = vld [vmem:[#allocation94_spill] sm:$0xff] }
 0x2d6   :  { %4368 = vmatprep.subr.mxu1 %v6504_v49  ;;  %4362 = vmatpush3.msra.mxu0 %v5162_v24  ;;  %v6017_v24 = vpop.permute.xlu1 %3404  ;;  %v2913_v62 = vsel %vm514_vm3, %v6645_v60, %v6644_v43  ;;  %v2718_v47 = vsel %vm523_vm8, %v2717_v56, %v5828_v48  ;;  %v6649_v48 = vld [vmem:[#allocation88_spill] sm:$0xff]  ;;  %v6658_v60 = vld [vmem:[#allocation98_spill] sm:$0xff]  ;;  %v3213_v56 = vsel %vm514_vm3, %v6659_v18, %v5741_v50 }
 0x2d7   :  { %4369 = vmatpush3.msk.msra.mxu1 %vm535_vm2, %v6005_v25  ;;  %4363 = vmatprep.subr.mxu0 %v6504_v49  ;;  %v2914_v59 = vsel %vm20_vm0, %v2913_v62, %v6647_v36  ;;  %v6656_v30 = vld [vmem:[#allocation96_spill] sm:$0xff]  ;;  %v3214_v36 = vsel %vm20_vm0, %v3213_v56, %v5766_v40 }
 0x2d8   :  { %4370 = vmatprep.subr.mxu1 %v6504_v49  ;;  %4364 = vmatpush3.msra.mxu0 %v5179_v58  ;;  %v6637_v58 = vld [vmem:[#allocation109_spill] sm:$0xff]  ;;  %v2915_v23 = vsel %vm517_vm4, %v2914_v59, %v6649_v48  ;;  %v6660_v59 = vld [vmem:[#allocation104_spill] sm:$0xff]  ;;  %v3215_v50 = vsel %vm517_vm4, %v3214_v36, %v5786_v11 }
 0x2d9   :  { %4371 = vmatpush3.msra.mxu1 %v6028_v3  ;;  %4365 = vmatprep.mubr.msk.f32.mxu0 %vm4527_vm1, %v6504_v49  ;;  %v2616_v45 = vsel %vm519_vm5, %v2615_v0, %v6637_v58  ;;  %v6651_v0 = vld [vmem:[#allocation90_spill] sm:$0xff]  ;;  %v6123_v58 = vpop.permute.xlu0 %3495 }
 0x2da   :  { %4366 = vmatmul.mubr.msk.f32.vlgmr.msra.gmra.mxu0 %vm531_vm7, %v2518_v46  ;;  %4372 = vmatprep.subr.mxu1 %v6504_v49  ;;  %v2617_v34 = vsel %vm521_vm6, %v2616_v45, %v6639_v22  ;;  %v6065_v35 = vpop.permute.xlu1 %3407  ;;  %v2916_v46 = vsel %vm519_vm5, %v2915_v23, %v6651_v0  ;;  %v3113_v22 = vsel %vm514_vm3, %v5692_v52, %v6653_v15 }
 0x2db   :  { %4379 = vmatprep.subr.mxu0 %v6504_v49  ;;  %4373 = vmatpush3.msra.mxu1 %v6041_v14  ;;  %v2618_v7 = vsel %vm523_vm8, %v2617_v34, %v5797_v29  ;;  %v2814_v29 = vsel %vm20_vm0, %v2813_v9, %v6643_v53  ;;  %v6654_v34 = vld [vmem:[#allocation19_spill] sm:$0xff]  ;;  %v3114_v44 = vsel %vm20_vm0, %v3113_v22, %v5715_v54 }
 0x2dc   :  { %4380 = vmatpush3.msk.msra.mxu0 %vm535_vm2, %v6005_v25  ;;  %4374 = vmatprep.subr.mxu1 %v6504_v49  ;;  %v2815_v8 = vsel %vm517_vm4, %v2814_v29, %v6648_v10 }
 0x2dd   :  { %4381 = vmatprep.subr.mxu0 %v6504_v49  ;;  %4375 = vmatpush3.msra.mxu1 %v6057_v20  ;;  %v2816_v61 = vsel %vm519_vm5, %v2815_v8, %v5438_v37  ;;  %v6157_v9 = vpop.permute.xlu0 %3592  ;;  %v6661_v8 = vld [vmem:[#allocation106_spill] sm:$0xff] }
 0x2de   :  { %4376 = vmatprep.mubr.msk.f32.mxu1 %vm4527_vm1, %v6504_v49  ;;  %4382 = vmatpush3.msra.mxu0 %v6028_v3  ;;  %v6103_v13 = vpop.permute.xlu1 %3492  ;;  %v2817_v37 = vsel %vm521_vm6, %v2816_v61, %v6650_v32  ;;  %v6663_v32 = vld [vmem:[#allocation102_spill] sm:$0xff] }
 0x2df   :  { %4377 = vmatmul.mubr.msk.f32.vlgmr.msra.gmra.mxu1 %vm531_vm7, %v2618_v7  ;;  %4383 = vmatprep.subr.mxu0 %v6504_v49  ;;  %v2818_v38 = vsel %vm523_vm8, %v2817_v37, %v5864_v27  ;;  %v6652_v27 = vld [vmem:[#allocation92_spill] sm:$0xff]  ;;  %v3013_v7 = vsel %vm514_vm3, %v6654_v34, %v5580_v1  ;;  %v3413_v37 = vsel %vm514_vm3, %v6663_v32, %v5911_v26 }
 0x2e0   :  { %4390 = vmatprep.subr.mxu1 %v6504_v49  ;;  %4384 = vmatpush3.msra.mxu0 %v6041_v14  ;;  %v2917_v5 = vsel %vm521_vm6, %v2916_v46, %v6652_v27  ;;  %v3014_v52 = vsel %vm20_vm0, %v3013_v7, %v5601_v16 }
 0x2e1   :  { %4391 = vmatpush3.msk.msra.mxu1 %vm535_vm2, %v6005_v25  ;;  %4385 = vmatprep.subr.mxu0 %v6504_v49  ;;  %v2918_v21 = vsel %vm523_vm8, %v2917_v5, %v5899_v12  ;;  %v3015_v1 = vsel %vm517_vm4, %v3014_v52, %v5625_v33  ;;  %v6655_v12 = vld [vmem:[#allocation95_spill] sm:$0xff]  ;;  %v3502_v43 = vpop.permute.xlu0 %3501 }
 0x2e2   :  { %4392 = vmatprep.subr.mxu1 %v6504_v49  ;;  %4386 = vmatpush3.msra.mxu0 %v6057_v20  ;;  %v6129_v45 = vpop.permute.xlu1 %3498  ;;  %v3016_v54 = vsel %vm519_vm5, %v3015_v1, %v5648_v2  ;;  %v3115_v51 = vsel %vm517_vm4, %v3114_v44, %v6655_v12 }
 0x2e3   :  { %4393 = vmatpush3.msra.mxu1 %v6028_v3  ;;  %4387 = vmatprep.mubr.msk.f32.mxu0 %vm4527_vm1, %v6504_v49  ;;  %v3017_v33 = vsel %vm521_vm6, %v3016_v54, %v5670_v57  ;;  %v3116_v53 = vsel %vm519_vm5, %v3115_v51, %v6656_v30  ;;  %v6657_v57 = vld [vmem:[#allocation100_spill] sm:$0xff] }
 0x2e4   :  { %4388 = vmatmul.mubr.msk.f32.vlgmr.msra.gmra.mxu0 %vm531_vm7, %v2718_v47  ;;  %4394 = vmatprep.subr.mxu1 %v6504_v49  ;;  %v3018_v2 = vsel %vm523_vm8, %v3017_v33, %v5936_v31  ;;  %v3313_v29 = vsel %vm514_vm3, %v5857_v17, %v6657_v57  ;;  %v3117_v62 = vsel %vm521_vm6, %v3116_v53, %v6658_v60 }
 0x2e5   :  { %4401 = vmatprep.subr.mxu0 %v6504_v49  ;;  %4395 = vmatpush3.msra.mxu1 %v6041_v14  ;;  %v3314_v31 = vsel %vm20_vm0, %v3313_v29, %v5882_v63  ;;  %v3118_v63 = vsel %vm523_vm8, %v3117_v62, %v5969_v6  ;;  %v3216_v6 = vsel %vm519_vm5, %v3215_v50, %v5808_v55  ;;  %v3505_v61 = vpop.permute.xlu0 %3504 }
 0x2e6   :  { %4402 = vmatpush3.msk.msra.mxu0 %vm535_vm2, %v6005_v25  ;;  %4396 = vmatprep.subr.mxu1 %v6504_v49  ;;  %v6168_v16 = vpop.permute.xlu1 %3595  ;;  %v3315_v10 = vsel %vm517_vm4, %v3314_v31, %v6660_v59  ;;  %v3217_v40 = vsel %vm521_vm6, %v3216_v6, %v5833_v41  ;;  %v3513_v41 = vsel %vm514_vm3, %v6103_v13, %v6123_v58 }
 0x2e7   :  { %4403 = vmatprep.subr.mxu0 %v6504_v49  ;;  %4397 = vmatpush3.msra.mxu1 %v6057_v20  ;;  %v3316_v47 = vsel %vm519_vm5, %v3315_v10, %v6661_v8  ;;  %v3218_v11 = vsel %vm523_vm8, %v3217_v40, %v6000_v39  ;;  %v3514_v48 = vsel %vm20_vm0, %v3513_v41, %v6129_v45  ;;  %v6662_v39 = vld [vmem:[#allocation108_spill] sm:$0xff] }
 0x2e8   :  { %4398 = vmatprep.mubr.msk.f32.mxu1 %vm4527_vm1, %v6504_v49  ;;  %4404 = vmatpush3.msra.mxu0 %v6028_v3  ;;  %v3317_v23 = vsel %vm521_vm6, %v3316_v47, %v6662_v39  ;;  %v3414_v13 = vsel %vm20_vm0, %v3413_v37, %v5944_v28  ;;  %v3515_v46 = vsel %vm517_vm4, %v3514_v48, %v3502_v43 }
 0x2e9   :  { %4399 = vmatmul.mubr.msk.f32.vlgmr.msra.gmra.mxu1 %vm531_vm7, %v2818_v38  ;;  %4405 = vmatprep.subr.mxu0 %v6504_v49  ;;  %v3415_v38 = vsel %vm517_vm4, %v3414_v13, %v5978_v4  ;;  %v3508_v0 = vpop.permute.xlu0 %3507  ;;  %v3318_v26 = vsel %vm523_vm8, %v3317_v23, %v6051_v42  ;;  %v3516_v45 = vsel %vm519_vm5, %v3515_v46, %v3505_v61 }
 0x2ea   :  { %4412 = vmatprep.subr.mxu1 %v6504_v49  ;;  %4406 = vmatpush3.msra.mxu0 %v6041_v14  ;;  %v6197_v17 = vpop.permute.xlu1 %3598  ;;  %v3416_v28 = vsel %vm519_vm5, %v3415_v38, %v6017_v24  ;;  %v3517_v27 = vsel %vm521_vm6, %v3516_v45, %v3508_v0 }
 0x2eb   :  { %4413 = vmatpush3.msk.msra.mxu1 %vm535_vm2, %v6005_v25  ;;  %4407 = vmatprep.subr.mxu0 %v6504_v49  ;;  %v3417_v4 = vsel %vm521_vm6, %v3416_v28, %v6065_v35  ;;  %v3613_v35 = vsel %vm514_vm3, %v6157_v9, %v6168_v16  ;;  %vm3773_vm3 = vcmask 850944  }
 0x2ec   :  { %4414 = vmatprep.subr.mxu1 %v6504_v49  ;;  %4408 = vmatpush3.msra.mxu0 %v6057_v20  ;;  %v3418_v24 = vsel %vm523_vm8, %v3417_v4, %v6094_v19  ;;  %v3614_v5 = vsel %vm20_vm0, %v3613_v35, %v6197_v17 }
 0x2ed   :  { %4415 = vmatpush3.msra.mxu1 %v6028_v3  ;;  %4409 = vmatprep.mubr.msk.f32.mxu0 %vm4527_vm1, %v6504_v49  ;;  %v3511_v42 = vpop.permute.xlu0 %3510 }
 0x2ee   :  { %4410 = vmatmul.mubr.msk.f32.vlgmr.msra.gmra.mxu0 %vm531_vm7, %v2918_v21  ;;  %4416 = vmatprep.subr.mxu1 %v6504_v49  ;;  %v3602_v55 = vpop.permute.xlu1 %3601  ;;  %v3518_v34 = vsel %vm523_vm8, %v3517_v27, %v3511_v42 }
 0x2ef   :  { %4423 = vmatprep.subr.mxu0 %v6504_v49  ;;  %4417 = vmatpush3.msra.mxu1 %v6041_v14  ;;  %v3615_v15 = vsel %vm517_vm4, %v3614_v5, %v3602_v55  ;;  %vm3775_vm4 = vcmask 916480  }
 0x2f0   :  { %4424 = vmatpush3.msk.msra.mxu0 %vm535_vm2, %v6005_v25  ;;  %4418 = vmatprep.subr.mxu1 %v6504_v49 }
 0x2f1   :  { %4425 = vmatprep.subr.mxu0 %v6504_v49  ;;  %4419 = vmatpush3.msra.mxu1 %v6057_v20 }
 0x2f2   :  { %4420 = vmatprep.mubr.msk.f32.mxu1 %vm4527_vm1, %v6504_v49  ;;  %4426 = vmatpush3.msra.mxu0 %v6028_v3  ;;  %v3605_v58 = vpop.permute.xlu1 %3604 }
 0x2f3   :  { %4421 = vmatmul.mubr.msk.f32.vlgmr.msra.gmra.mxu1 %vm531_vm7, %v3018_v2  ;;  %4427 = vmatprep.subr.mxu0 %v6504_v49  ;;  %v3616_v22 = vsel %vm519_vm5, %v3615_v15, %v3605_v58 }
 0x2f4   :  { %4434 = vmatprep.subr.mxu1 %v6504_v49  ;;  %4428 = vmatpush3.msra.mxu0 %v6041_v14 }
 0x2f5   :  { %4435 = vmatpush3.msk.msra.mxu1 %vm535_vm2, %v6005_v25  ;;  %4429 = vmatprep.subr.mxu0 %v6504_v49 }
 0x2f6   :  { %4436 = vmatprep.subr.mxu1 %v6504_v49  ;;  %4430 = vmatpush3.msra.mxu0 %v6057_v20  ;;  %v3608_v19 = vpop.permute.xlu1 %3607 }
 0x2f7   :  { %4437 = vmatpush3.msra.mxu1 %v6028_v3  ;;  %4431 = vmatprep.mubr.msk.f32.mxu0 %vm4527_vm1, %v6504_v49  ;;  %v3617_v7 = vsel %vm521_vm6, %v3616_v22, %v3608_v19  ;;  %vm3777_vm6 = vcmask 982016  }
 0x2f8   :  { %4432 = vmatmul.mubr.msk.f32.vlgmr.msra.gmra.mxu0 %vm531_vm7, %v3118_v63  ;;  %4438 = vmatprep.subr.mxu1 %v6504_v49 }
 0x2f9   :  { %4445 = vmatprep.subr.mxu0 %v6504_v49  ;;  %4439 = vmatpush3.msra.mxu1 %v6041_v14 }
 0x2fa   :  { %4446 = vmatpush3.msk.msra.mxu0 %vm535_vm2, %v6005_v25  ;;  %4440 = vmatprep.subr.mxu1 %v6504_v49 }
 0x2fb   :  { %4447 = vmatprep.subr.mxu0 %v6504_v49  ;;  %4441 = vmatpush3.msra.mxu1 %v6057_v20 }
 0x2fc   :  { %4442 = vmatprep.mubr.msk.f32.mxu1 %vm4527_vm1, %v6504_v49  ;;  %4448 = vmatpush3.msra.mxu0 %v6028_v3 }
 0x2fd   :  { %4443 = vmatmul.mubr.msk.f32.vlgmr.msra.gmra.mxu1 %vm531_vm7, %v3218_v11  ;;  %4449 = vmatprep.subr.mxu0 %v6504_v49 }
 0x2fe   :  { %4456 = vmatprep.subr.mxu1 %v6504_v49  ;;  %4450 = vmatpush3.msra.mxu0 %v6041_v14 }
 0x2ff   :  { %4457 = vmatpush3.msk.msra.mxu1 %vm535_vm2, %v6005_v25  ;;  %4451 = vmatprep.subr.mxu0 %v6504_v49 }
 0x300   :  { %4458 = vmatprep.subr.mxu1 %v6504_v49  ;;  %4452 = vmatpush3.msra.mxu0 %v6057_v20 }
 0x301   :  { %4459 = vmatpush3.msra.mxu1 %v6028_v3  ;;  %4453 = vmatprep.mubr.msk.f32.mxu0 %vm4527_vm1, %v6504_v49 }
 0x302   :  { %4454 = vmatmul.mubr.msk.f32.vlgmr.msra.gmra.mxu0 %vm531_vm7, %v3318_v26  ;;  %4460 = vmatprep.subr.mxu1 %v6504_v49 }
 0x303   :  { %4467 = vmatprep.subr.mxu0 %v6504_v49  ;;  %4461 = vmatpush3.msra.mxu1 %v6041_v14 }
 0x304   :  { %4468 = vmatpush3.msk.msra.mxu0 %vm535_vm2, %v6005_v25  ;;  %4462 = vmatprep.subr.mxu1 %v6504_v49 }
 0x305   :  { %4469 = vmatprep.subr.mxu0 %v6504_v49  ;;  %4463 = vmatpush3.msra.mxu1 %v6057_v20 }
 0x306   :  { %4464 = vmatprep.mubr.msk.f32.mxu1 %vm4527_vm1, %v6504_v49  ;;  %4470 = vmatpush3.msra.mxu0 %v6028_v3 }
 0x307   :  { %4465 = vmatmul.mubr.msk.f32.vlgmr.msra.gmra.mxu1 %vm531_vm7, %v3418_v24  ;;  %4471 = vmatprep.subr.mxu0 %v6504_v49 }
 0x308   :  { %4472 = vmatpush3.msra.mxu0 %v6041_v14  ;;  %4478 = vmatprep.subr.mxu1 %v6504_v49 }
 0x309   :  { %4473 = vmatprep.subr.mxu0 %v6504_v49  ;;  %4479 = vmatpush3.msk.msra.mxu1 %vm535_vm2, %v6005_v25  ;;  %v3611_v25 = vpop.permute.xlu0 %3610  ;;  %vm3771_vm2 = vcmask 785408  }
 0x30a   :  { %4474 = vmatpush3.msra.mxu0 %v6057_v20  ;;  %4475 = vmatprep.mubr.msk.f32.mxu0 %vm4527_vm1, %v6504_v49  ;;  %v3618_v44 = vsel %vm523_vm8, %v3617_v7, %v3611_v25 }
 0x30b   :  { %4476 = vmatmul.mubr.msk.f32.vlgmr.msra.gmra.mxu0 %vm531_vm7, %v3518_v34  ;;  %4480 = vmatprep.subr.mxu1 %v6504_v49 }
 0x30c   :  { %4481 = vmatpush3.msra.mxu1 %v6028_v3  ;;  %4486 = vmatprep.mubr.msk.f32.mxu1 %vm4527_vm1, %v6504_v49  ;;  %v6317_v3 = vld [vmem:[%s6424_s3] ss:$0 sm:$0xff]  ;;  %vm3769_vm1 = vcmask 719872  }
 0x30d   :  { %4482 = vmatprep.subr.mxu1 %v6504_v49 }
 0x30e   :  { %4483 = vmatpush3.msra.mxu1 %v6041_v14 }
 0x30f   :  { %4484 = vmatprep.subr.mxu1 %v6504_v49 }
 0x310   :  { %4485 = vmatpush3.msra.mxu1 %v6057_v20 }
 0x311   :  { %4487 = vmatmul.mubr.msk.f32.vlgmr.msra.gmra.mxu1 %vm531_vm7, %v3618_v44 }
 0x337   :  { %v6312_v21 = vpop.f32.mrf.mxu0 }
 0x339   :  { %v4147_v52 = vpop.f32.mrf.mxu0 }
 0x33c   :  { %v703_v1 = vpop.f32.mrf.mxu1 }
 0x33d   :  { %v704_v9 = vadd.f32 %v6317_v3, %v703_v1 }
 0x33e   :  { %v4158_v14 = vpop.f32.mrf.mxu1 }
 0x33f   :  { %3693 = vrot.lane.b32.xlu1 %v704_v9, %s4554_s23 }
 0x341   :  { %v800_v54 = vpop.f32.mrf.mxu0 }
 0x342   :  { %v801_v49 = vadd.f32 %v6317_v3, %v800_v54 }
 0x343   :  { %v4169_v20 = vpop.f32.mrf.mxu0 }
 0x344   :  { %3697 = vrot.lane.b32.xlu1 %v801_v49, %s4557_s18 }
 0x346   :  { %v897_v12 = vpop.f32.mrf.mxu1 }
 0x347   :  { %v898_v51 = vadd.f32 %v6317_v3, %v897_v12 }
 0x348   :  { %v4180_v16 = vpop.f32.mrf.mxu1 }
 0x349   :  { %3701 = vrot.lane.b32.xlu1 %v898_v51, %s4558_s6 }
 0x34b   :  { %v994_v33 = vpop.f32.mrf.mxu0 }
 0x34c   :  { %v995_v2 = vadd.f32 %v6317_v3, %v994_v33 }
 0x34d   :  { %v4191_v30 = vpop.f32.mrf.mxu0 }
 0x34e   :  { %3705 = vrot.lane.b32.xlu1 %v995_v2, %s6505_s10 }
 0x350   :  { %v1091_v53 = vpop.f32.mrf.mxu1 }
 0x351   :  { %v1092_v57 = vadd.f32 %v6317_v3, %v1091_v53 }
 0x352   :  { %v4202_v29 = vpop.f32.mrf.mxu1 }
 0x353   :  { %3709 = vrot.lane.b32.xlu1 %v1092_v57, %s4545_s12 }
 0x354   :  { %v1188_v31 = vpop.f32.mrf.mxu0 }
 0x355   :  { %v1189_v43 = vadd.f32 %v6317_v3, %v1188_v31 }
 0x356   :  { %v4213_v60 = vpop.f32.mrf.mxu0 }
 0x357   :  { %3713 = vrot.lane.b32.xlu1 %v1189_v43, %s6524_s21 }
 0x359   :  { %v1288_v62 = vpop.f32.mrf.mxu1 }
 0x35a   :  { %v1289_v17 = vadd.f32 %v6317_v3, %v1288_v62 }
 0x35b   :  { %v4224_v18 = vpop.f32.mrf.mxu1 }
 0x35c   :  { %3717 = vrot.lane.b32.xlu1 %v1289_v17, %s6537_s7 }
 0x35e   :  { %v1388_v56 = vpop.f32.mrf.mxu0 }
 0x35f   :  { %v1389_v63 = vadd.f32 %v6317_v3, %v1388_v56 }
 0x360   :  { %v4235_v36 = vpop.f32.mrf.mxu0 }
 0x361   :  { %3721 = vrot.lane.b32.xlu1 %v1389_v63, %s6532_s29 }
 0x363   :  { %v1488_v59 = vpop.f32.mrf.mxu1 }
 0x364   :  { %v1489_v10 = vadd.f32 %v6317_v3, %v1488_v59 }
 0x365   :  { %v4246_v50 = vpop.f32.mrf.mxu1 }
 0x366   :  { %3725 = vrot.lane.b32.xlu1 %v1489_v10, %s6527_s26 }
 0x368   :  { %v1588_v6 = vpop.f32.mrf.mxu0 }
 0x369   :  { %v1589_v40 = vadd.f32 %v6317_v3, %v1588_v6 }
 0x36a   :  { %v4257_v8 = vpop.f32.mrf.mxu0 }
 0x36b   :  { %3729 = vrot.lane.b32.xlu1 %v1589_v40, %s4535_s28 }
 0x36d   :  { %v1688_v47 = vpop.f32.mrf.mxu1 }
 0x36e   :  { %v1689_v61 = vadd.f32 %v6317_v3, %v1688_v47 }
 0x36f   :  { %v4268_v11 = vpop.f32.mrf.mxu1 }
 0x370   :  { %3733 = vrot.lane.b32.xlu1 %v1689_v61, %s4533_s27 }
 0x372   :  { %v1788_v55 = vpop.f32.mrf.mxu0 }
 0x373   :  { %v1789_v41 = vadd.f32 %v6317_v3, %v1788_v55 }
 0x374   :  { %v4279_v48 = vpop.f32.mrf.mxu0 }
 0x375   :  { %3737 = vrot.lane.b32.xlu1 %v1789_v41, %s4531_s25 }
 0x377   :  { %v1888_v39 = vpop.f32.mrf.mxu1 }
 0x378   :  { %v1889_v23 = vadd.f32 %v6317_v3, %v1888_v39 }
 0x379   :  { %v4290_v32 = vpop.f32.mrf.mxu1 }
 0x37a   :  { %3741 = vrot.lane.b32.xlu1 %v1889_v23, %s4538_s5 }
 0x37c   :  { %v1988_v37 = vpop.f32.mrf.mxu0 }
 0x37d   :  { %v1989_v13 = vadd.f32 %v6317_v3, %v1988_v37 }
 0x37e   :  { %v4301_v38 = vpop.f32.mrf.mxu0 }
 0x37f   :  { %3745 = vrot.lane.b32.xlu1 %v1989_v13, %s4534_s1  ;;  %v606_v38 = vadd.f32 %v6317_v3, %v6312_v21 }
 0x381   :  { %v2088_v0 = vpop.f32.mrf.mxu1 }
 0x382   :  { %v2089_v46 = vadd.f32 %v6317_v3, %v2088_v0 }
 0x383   :  { %v4312_v26 = vpop.f32.mrf.mxu1 }
 0x384   :  { %3749 = vrot.lane.b32.xlu1 %v2089_v46, %s4530_s22 }
 0x386   :  { %v6349_v28 = vpop.f32.mrf.mxu0 }
 0x388   :  { %v4323_v58 = vpop.f32.mrf.mxu0 }
 0x38b   :  { %v2288_v4 = vpop.f32.mrf.mxu1 }
 0x38c   :  { %v2289_v45 = vadd.f32 %v6317_v3, %v2288_v4 }
 0x38d   :  { %v4334_v24 = vpop.f32.mrf.mxu1 }
 0x38e   :  { %3780 = vrot.lane.b32.xlu0 %v2289_v45, %s4554_s23 }
 0x390   :  { %v2388_v42 = vpop.f32.mrf.mxu0 }
 0x391   :  { %v2389_v35 = vadd.f32 %v6317_v3, %v2388_v42 }
 0x392   :  { %v4345_v27 = vpop.f32.mrf.mxu0 }
 0x393   :  { %3784 = vrot.lane.b32.xlu0 %v2389_v35, %s4557_s18 }
 0x395   :  { %v2488_v5 = vpop.f32.mrf.mxu1 }
 0x396   :  { %v2489_v19 = vadd.f32 %v6317_v3, %v2488_v5 }
 0x397   :  { %v4356_v15 = vpop.f32.mrf.mxu1 }
 0x398   :  { %3788 = vrot.lane.b32.xlu0 %v2489_v19, %s4558_s6 }
 0x39a   :  { %v2588_v22 = vpop.f32.mrf.mxu0 }
 0x39b   :  { %v2589_v34 = vadd.f32 %v6317_v3, %v2588_v22 }
 0x39c   :  { %v4367_v7 = vpop.f32.mrf.mxu0 }
 0x39d   :  { %3792 = vrot.lane.b32.xlu0 %v2589_v34, %s6505_s10 }
 0x39f   :  { %v2688_v25 = vpop.f32.mrf.mxu1 }
 0x3a0   :  { %v2689_v44 = vadd.f32 %v6317_v3, %v2688_v25 }
 0x3a1   :  { %v4378_v52 = vpop.f32.mrf.mxu1 }
 0x3a2   :  { %3796 = vrot.lane.b32.xlu0 %v2689_v44, %s4545_s12 }
 0x3a4   :  { %v2788_v1 = vpop.f32.mrf.mxu0 }
 0x3a5   :  { %v2789_v9 = vadd.f32 %v6317_v3, %v2788_v1 }
 0x3a6   :  { %v4389_v14 = vpop.f32.mrf.mxu0 }
 0x3a7   :  { %3800 = vrot.lane.b32.xlu0 %v2789_v9, %s6524_s21 }
 0x3a9   :  { %v2888_v54 = vpop.f32.mrf.mxu1 }
 0x3aa   :  { %v2889_v49 = vadd.f32 %v6317_v3, %v2888_v54 }
 0x3ab   :  { %v4400_v20 = vpop.f32.mrf.mxu1 }
 0x3ac   :  { %3804 = vrot.lane.b32.xlu0 %v2889_v49, %s6537_s7 }
 0x3ae   :  { %v2988_v12 = vpop.f32.mrf.mxu0 }
 0x3af   :  { %v2989_v51 = vadd.f32 %v6317_v3, %v2988_v12 }
 0x3b0   :  { %v4411_v16 = vpop.f32.mrf.mxu0 }
 0x3b1   :  { %3808 = vrot.lane.b32.xlu0 %v2989_v51, %s6532_s29  ;;  %v3694_v33 = vpop.permute.xlu1 %3693 }
 0x3b2   :  { %v3752_v46 = vsel %vm20_vm0, %v606_v38, %v3694_v33 }
 0x3b3   :  { %v3088_v2 = vpop.f32.mrf.mxu1 }
 0x3b4   :  { %v3089_v30 = vadd.f32 %v6317_v3, %v3088_v2  ;;  %v2189_v2 = vadd.f32 %v6317_v3, %v6349_v28 }
 0x3b5   :  { %v4422_v53 = vpop.f32.mrf.mxu1 }
 0x3b6   :  { %3812 = vrot.lane.b32.xlu0 %v3089_v30, %s6527_s26  ;;  %v3698_v57 = vpop.permute.xlu1 %3697 }
 0x3b7   :  { %v3753_v26 = vsel %vm519_vm5, %v3752_v46, %v3698_v57 }
 0x3b8   :  { %v3188_v29 = vpop.f32.mrf.mxu0 }
 0x3b9   :  { %v3189_v31 = vadd.f32 %v6317_v3, %v3188_v29 }
 0x3ba   :  { %v4433_v43 = vpop.f32.mrf.mxu0 }
 0x3bb   :  { %3816 = vrot.lane.b32.xlu0 %v3189_v31, %s4535_s28  ;;  %v3702_v60 = vpop.permute.xlu1 %3701 }
 0x3bc   :  { %v3754_v58 = vsel %vm523_vm8, %v3753_v26, %v3702_v60 }
 0x3bd   :  { %v3288_v62 = vpop.f32.mrf.mxu1 }
 0x3be   :  { %v3289_v17 = vadd.f32 %v6317_v3, %v3288_v62 }
 0x3bf   :  { %v4444_v18 = vpop.f32.mrf.mxu1 }
 0x3c0   :  { %3820 = vrot.lane.b32.xlu0 %v3289_v17, %s4533_s27  ;;  %v3706_v56 = vpop.permute.xlu1 %3705 }
 0x3c1   :  { %v3756_v4 = vsel %vm3755_vm9, %v3754_v58, %v3706_v56 }
 0x3c2   :  { %v3388_v63 = vpop.f32.mrf.mxu0 }
 0x3c3   :  { %v3389_v36 = vadd.f32 %v6317_v3, %v3388_v63 }
 0x3c4   :  { %v4455_v59 = vpop.f32.mrf.mxu0 }
 0x3c5   :  { %3824 = vrot.lane.b32.xlu0 %v3389_v36, %s4531_s25  ;;  %v3710_v10 = vpop.permute.xlu1 %3709 }
 0x3c6   :  { %v3758_v24 = vsel %vm3757_vm10, %v3756_v4, %v3710_v10 }
 0x3c7   :  { %v3488_v50 = vpop.f32.mrf.mxu1 }
 0x3c8   :  { %v3489_v6 = vadd.f32 %v6317_v3, %v3488_v50 }
 0x3c9   :  { %v4466_v40 = vpop.f32.mrf.mxu1  ;;  %v3714_v8 = vpop.permute.xlu1 %3713 }
 0x3ca   :  { %3828 = vrot.lane.b32.xlu0 %v3489_v6, %s4538_s5  ;;  %v3760_v42 = vsel %vm3759_vm11, %v3758_v24, %v3714_v8 }
 0x3cb   :  { %v3588_v47 = vpop.f32.mrf.mxu0 }
 0x3cc   :  { %v3589_v61 = vadd.f32 %v6317_v3, %v3588_v47 }
 0x3cd   :  { %v4477_v11 = vpop.f32.mrf.mxu0 }
 0x3ce   :  { %3832 = vrot.lane.b32.xlu0 %v3589_v61, %s4534_s1  ;;  %v3718_v55 = vpop.permute.xlu1 %3717 }
 0x3cf   :  { %v3762_v21 = vsel %vm3761_vm12, %v3760_v42, %v3718_v55 }
 0x3d1   :  { %v3688_v41 = vpop.f32.mrf.mxu1 }
 0x3d2   :  { %v3689_v48 = vadd.f32 %v6317_v3, %v3688_v41 }
 0x3d3   :  { %v4488_v39 = vpop.f32.mrf.mxu1  ;;  %v3722_v23 = vpop.permute.xlu1 %3721 }
 0x3d4   :  { %3836 = vrot.lane.b32.xlu0 %v3689_v48, %s4530_s22  ;;  %v3764_v35 = vsel %vm3763_vm13, %v3762_v21, %v3722_v23 }
 0x3d8   :  { %v3726_v32 = vpop.permute.xlu1 %3725 }
 0x3d9   :  { %v3766_v27 = vsel %vm3765_vm14, %v3764_v35, %v3726_v32 }
 0x3dd   :  { %v3730_v37 = vpop.permute.xlu1 %3729 }
 0x3de   :  { %v3768_v19 = vsel %vm3767_vm15, %v3766_v27, %v3730_v37 }
 0x3e2   :  { %v3734_v13 = vpop.permute.xlu1 %3733 }
 0x3e3   :  { %v3770_v15 = vsel %vm3769_vm1, %v3768_v19, %v3734_v13 }
 0x3e7   :  { %v3738_v0 = vpop.permute.xlu1 %3737 }
 0x3e8   :  { %v3772_v22 = vsel %vm3771_vm2, %v3770_v15, %v3738_v0 }
 0x3ec   :  { %v3742_v45 = vpop.permute.xlu1 %3741 }
 0x3ed   :  { %v3774_v34 = vsel %vm3773_vm3, %v3772_v22, %v3742_v45 }
 0x3f1   :  { %v3746_v5 = vpop.permute.xlu1 %3745 }
 0x3f2   :  { %v3776_v7 = vsel %vm3775_vm4, %v3774_v34, %v3746_v5 }
 0x3f6   :  { %v3750_v25 = vpop.permute.xlu1 %3749 }
 0x3f7   :  { %v3778_v44 = vsel %vm3777_vm6, %v3776_v7, %v3750_v25 }
 0x3f8   :  { %3854 = vst [vmem:[%s6425_s4] sm:$0xff] %v3778_v44 }
 0x400   :  { %v3781_v52 = vpop.permute.xlu0 %3780 }
 0x401   :  { %v3839_v53 = vsel %vm20_vm0, %v2189_v2, %v3781_v52 }
 0x405   :  { %v3785_v1 = vpop.permute.xlu0 %3784 }
 0x406   :  { %v3840_v57 = vsel %vm519_vm5, %v3839_v53, %v3785_v1 }
 0x40a   :  { %v3789_v9 = vpop.permute.xlu0 %3788 }
 0x40b   :  { %v3841_v29 = vsel %vm523_vm8, %v3840_v57, %v3789_v9 }
 0x40f   :  { %v3793_v14 = vpop.permute.xlu0 %3792 }
 0x410   :  { %v3842_v31 = vsel %vm3755_vm9, %v3841_v29, %v3793_v14 }
 0x414   :  { %v3797_v54 = vpop.permute.xlu0 %3796 }
 0x415   :  { %v3843_v60 = vsel %vm3757_vm10, %v3842_v31, %v3797_v54 }
 0x419   :  { %v3801_v49 = vpop.permute.xlu0 %3800 }
 0x41a   :  { %v3844_v62 = vsel %vm3759_vm11, %v3843_v60, %v3801_v49 }
 0x41e   :  { %v3805_v20 = vpop.permute.xlu0 %3804 }
 0x41f   :  { %v3845_v17 = vsel %vm3761_vm12, %v3844_v62, %v3805_v20 }
 0x423   :  { %v3809_v12 = vpop.permute.xlu0 %3808 }
 0x424   :  { %v3846_v18 = vsel %vm3763_vm13, %v3845_v17, %v3809_v12 }
 0x428   :  { %v3813_v51 = vpop.permute.xlu0 %3812 }
 0x429   :  { %v3847_v3 = vsel %vm3765_vm14, %v3846_v18, %v3813_v51 }
 0x42d   :  { %v3817_v16 = vpop.permute.xlu0 %3816 }
 0x42e   :  { %v3848_v28 = vsel %vm3767_vm15, %v3847_v3, %v3817_v16 }
 0x432   :  { %v3821_v33 = vpop.permute.xlu0 %3820 }
 0x433   :  { %v3849_v63 = vsel %vm3769_vm1, %v3848_v28, %v3821_v33 }
 0x437   :  { %v3825_v30 = vpop.permute.xlu0 %3824 }
 0x438   :  { %v3850_v36 = vsel %vm3771_vm2, %v3849_v63, %v3825_v30 }
 0x43c   :  { %v3829_v43 = vpop.permute.xlu0 %3828 }
 0x43d   :  { %v3851_v59 = vsel %vm3773_vm3, %v3850_v36, %v3829_v43 }
 0x440   :  { %v3833_v56 = vpop.permute.xlu0 %3832 }
 0x441   :  { %v3852_v10 = vsel %vm3775_vm4, %v3851_v59, %v3833_v56 }
 0x446   :  { %v3837_v50 = vpop.permute.xlu0 %3836 }
 0x447   :  { %v3853_v6 = vsel %vm3777_vm6, %v3852_v10, %v3837_v50 }
 0x448   :  { %3855 = vst [vmem:[%s6425_s4 + $0x8] sm:$0xff] %v3853_v6 }

</bundles_post_ra>
